<compile_context>
chip_gen: v7x
topology: tpu7x:2x2x1
jax: 0.10.0
libtpu: 0.0.40
codegen_flags: <defaults>
</compile_context>

<pallas_src>
import jax
import jax.numpy as jnp
from jax.experimental import pallas as pl
from jax.experimental.pallas import tpu as pltpu

EPS = 1e-5
NEG_SLOPE = 0.2

Z_DIM = 100
Z_PAD = 128      # pad K of first matmul to a full lane tile
OUT_DIM = 784
OUT_PAD = 896    # 7 * 128, lane-dense output store


def _bn_lrelu(h, gamma, beta):
    # Training-mode BatchNorm1d (batch mean, biased variance) folded into a single
    # per-feature scale/shift, then LeakyReLU(0.2) via max (no cmp/select).
    mu = jnp.mean(h, axis=0, keepdims=True)
    var = jnp.mean((h - mu) ** 2, axis=0, keepdims=True)
    scale = gamma * jax.lax.rsqrt(var + EPS)
    shift = beta - mu * scale
    hn = h * scale + shift
    return jnp.maximum(hn, NEG_SLOPE * hn)


def generator_kernel(z_ref,
                     w1_ref, g1_ref, be1_ref,
                     w2_ref, g2_ref, be2_ref,
                     w3_ref, g3_ref, be3_ref,
                     w4_ref, b4_ref,
                     o_ref):
    # bf16 weights on the MXU with f32 accumulation; f32 epilogues everywhere.
    h = jnp.dot(z_ref[...].astype(jnp.bfloat16), w1_ref[...],
                preferred_element_type=jnp.float32)
    h = _bn_lrelu(h, g1_ref[...], be1_ref[...])

    h = jnp.dot(h.astype(jnp.bfloat16), w2_ref[...],
                preferred_element_type=jnp.float32)
    h = _bn_lrelu(h, g2_ref[...], be2_ref[...])

    h = jnp.dot(h.astype(jnp.bfloat16), w3_ref[...],
                preferred_element_type=jnp.float32)
    h = _bn_lrelu(h, g3_ref[...], be3_ref[...])

    h = jnp.dot(h.astype(jnp.bfloat16), w4_ref[...],
                preferred_element_type=jnp.float32) + b4_ref[...]
    o_ref[...] = jnp.tanh(h)


def generator_forward(z, params):
    """z: (B, 100) float32 -> (B, 784) float32."""
    B = z.shape[0]
    (w1, _b1, g1, be1), (w2, _b2, g2, be2), (w3, _b3, g3, be3), (w4, b4) = params

    # Zero-pad ragged dims (exact): K 100 -> 128 on z / w1 rows, N 784 -> 896 on w4 / b4.
    z_p = jnp.pad(z, ((0, 0), (0, Z_PAD - Z_DIM)))
    w1_p = jnp.pad(w1, ((0, Z_PAD - Z_DIM), (0, 0))).astype(jnp.bfloat16)
    w2_b = w2.astype(jnp.bfloat16)
    w3_b = w3.astype(jnp.bfloat16)
    w4_p = jnp.pad(w4, ((0, 0), (0, OUT_PAD - OUT_DIM))).astype(jnp.bfloat16)
    b4_p = jnp.pad(b4, ((0, 0), (0, OUT_PAD - OUT_DIM)))

    # b1/b2/b3 dropped: cancelled exactly by training-mode BN mean subtraction.
    flat_args = [z_p, w1_p, g1, be1, w2_b, g2, be2, w3_b, g3, be3, w4_p, b4_p]

    vmem = pl.BlockSpec(memory_space=pltpu.MemorySpace.VMEM)
    out = pl.pallas_call(
        generator_kernel,
        out_shape=jax.ShapeDtypeStruct((B, OUT_PAD), jnp.float32),
        in_specs=[vmem] * len(flat_args),
        out_specs=vmem,
        compiler_params=pltpu.CompilerParams(
            # ~3 MB bf16 weights + tiny activations; 32 MiB fits every TPU
            # generation, including v7x's 64 MiB physical VMEM.
            vmem_limit_bytes=32 * 1024 * 1024),
    )(*flat_args)
    return out[:, :OUT_DIM]


def init_params(key):
    """Deterministic parameter init (PyTorch-style bounds). Weights as (in, out)."""
    dims = [(100, 256), (256, 512), (512, 1024), (1024, 784)]
    params = []
    keys = jax.random.split(key, len(dims) * 2)
    for i, (fin, fout) in enumerate(dims):
        kw, kb = keys[2 * i], keys[2 * i + 1]
        bound = 1.0 / jnp.sqrt(jnp.float32(fin))
        w = jax.random.uniform(kw, (fin, fout), jnp.float32, -bound, bound)
        b = jax.random.uniform(kb, (1, fout), jnp.float32, -bound, bound)
        if i < 3:
            gamma = jnp.ones((1, fout), jnp.float32)
            beta = jnp.zeros((1, fout), jnp.float32)
            params.append((w, b, gamma, beta))
        else:
            params.append((w, b))
    return params


def reference_forward(z, params):
    """Pure-JAX reference of the PyTorch module (with biases, unfused BN),
    with matmul inputs quantized to bf16 (f32 accumulate) to match the kernel's
    weight precision."""
    def mm(h, w):
        return jnp.dot(h.astype(jnp.bfloat16), w.astype(jnp.bfloat16),
                       preferred_element_type=jnp.float32)

    h = z
    for i, p in enumerate(params):
        if i < 3:
            w, b, g, be = p
            h = mm(h, w) + b
            mu = jnp.mean(h, axis=0, keepdims=True)
            var = jnp.mean((h - mu) ** 2, axis=0, keepdims=True)
            h = (h - mu) * jax.lax.rsqrt(var + EPS) * g + be
            h = jnp.where(h >= 0, h, NEG_SLOPE * h)
        else:
            w, b = p
            h = jnp.tanh(mm(h, w) + b)
    return h


if __name__ == "__main__":
    key = jax.random.PRNGKey(0)
    kz, kp = jax.random.split(key)

    B = 8  # small batch; BatchNorm1d (training mode) needs B > 1
    z = jax.random.normal(kz, (B, Z_DIM), dtype=jnp.float32)
    params = init_params(kp)

    out = generator_forward(z, params)
    out = jax.block_until_ready(out)

    ref = reference_forward(z, params)
    assert out.shape == (B, OUT_DIM)
    assert jnp.allclose(out, ref, atol=1e-2, rtol=1e-2), "mismatch vs JAX reference"

    print("KERNEL_OK")
</pallas_src>

<mosaic_0001>
module attributes {stable_mosaic.version = 11 : i64} {
  func.func @generator_kernel(%arg0: memref<8x128xf32, #tpu.memory_space<vmem>>, %arg1: memref<128x256xbf16, #tpu.memory_space<vmem>>, %arg2: memref<1x256xf32, #tpu.memory_space<vmem>>, %arg3: memref<1x256xf32, #tpu.memory_space<vmem>>, %arg4: memref<256x512xbf16, #tpu.memory_space<vmem>>, %arg5: memref<1x512xf32, #tpu.memory_space<vmem>>, %arg6: memref<1x512xf32, #tpu.memory_space<vmem>>, %arg7: memref<512x1024xbf16, #tpu.memory_space<vmem>>, %arg8: memref<1x1024xf32, #tpu.memory_space<vmem>>, %arg9: memref<1x1024xf32, #tpu.memory_space<vmem>>, %arg10: memref<1024x896xbf16, #tpu.memory_space<vmem>>, %arg11: memref<1x896xf32, #tpu.memory_space<vmem>>, %arg12: memref<8x896xf32, #tpu.memory_space<vmem>>) attributes {dimension_semantics = [], scalar_prefetch = 0 : i64, scratch_operands = 0 : i64, tpu.core_type = #tpu.core_type<tc>} {
    %c0 = arith.constant 0 : index
    %c0_0 = arith.constant 0 : index
    %0 = vector.load %arg0[%c0, %c0_0] : memref<8x128xf32, #tpu.memory_space<vmem>>, vector<8x128xf32>
    %1 = arith.truncf %0 : vector<8x128xf32> to vector<8x128xbf16>
    %c0_1 = arith.constant 0 : index
    %c0_2 = arith.constant 0 : index
    %2 = vector.load %arg1[%c0_1, %c0_2] : memref<128x256xbf16, #tpu.memory_space<vmem>>, vector<128x256xbf16>
    %cst = arith.constant dense<0.000000e+00> : vector<8x256xf32>
    %3 = tpu.matmul %1, %2, %cst {dimension_numbers = #tpu.dot_dimension_numbers<[1], [0], [0], [1], [0, 0, 1, 1], [], []>} : vector<8x128xbf16>, vector<128x256xbf16>, vector<8x256xf32> -> vector<8x256xf32>
    %c0_3 = arith.constant 0 : index
    %c0_4 = arith.constant 0 : index
    %4 = vector.load %arg2[%c0_3, %c0_4] : memref<1x256xf32, #tpu.memory_space<vmem>>, vector<1x256xf32>
    %c0_5 = arith.constant 0 : index
    %c0_6 = arith.constant 0 : index
    %5 = vector.load %arg3[%c0_5, %c0_6] : memref<1x256xf32, #tpu.memory_space<vmem>>, vector<1x256xf32>
    %cst_7 = arith.constant dense<0.000000e+00> : vector<256xf32>
    %6 = vector.multi_reduction <add>, %3, %cst_7 [0] : vector<8x256xf32> to vector<256xf32>
    %7 = vector.shape_cast %6 : vector<256xf32> to vector<1x256xf32>
    %cst_8 = arith.constant 8.000000e+00 : f32
    %8 = vector.broadcast %cst_8 : f32 to vector<1x256xf32>
    %9 = arith.divf %7, %8 : vector<1x256xf32>
    %10 = vector.broadcast %9 : vector<1x256xf32> to vector<8x256xf32>
    %11 = arith.subf %3, %10 : vector<8x256xf32>
    %12 = arith.mulf %11, %11 : vector<8x256xf32>
    %cst_9 = arith.constant dense<0.000000e+00> : vector<256xf32>
    %13 = vector.multi_reduction <add>, %12, %cst_9 [0] : vector<8x256xf32> to vector<256xf32>
    %14 = vector.shape_cast %13 : vector<256xf32> to vector<1x256xf32>
    %cst_10 = arith.constant 8.000000e+00 : f32
    %15 = vector.broadcast %cst_10 : f32 to vector<1x256xf32>
    %16 = arith.divf %14, %15 : vector<1x256xf32>
    %cst_11 = arith.constant 9.99999974E-6 : f32
    %17 = vector.broadcast %cst_11 : f32 to vector<1x256xf32>
    %18 = arith.addf %16, %17 : vector<1x256xf32>
    %19 = math.rsqrt %18 : vector<1x256xf32>
    %20 = arith.mulf %4, %19 : vector<1x256xf32>
    %21 = arith.mulf %9, %20 : vector<1x256xf32>
    %22 = arith.subf %5, %21 : vector<1x256xf32>
    %23 = vector.broadcast %20 : vector<1x256xf32> to vector<8x256xf32>
    %24 = arith.mulf %3, %23 : vector<8x256xf32>
    %25 = vector.broadcast %22 : vector<1x256xf32> to vector<8x256xf32>
    %26 = arith.addf %24, %25 : vector<8x256xf32>
    %cst_12 = arith.constant 2.000000e-01 : f32
    %27 = vector.broadcast %cst_12 : f32 to vector<8x256xf32>
    %28 = arith.mulf %27, %26 : vector<8x256xf32>
    %29 = arith.maximumf %26, %28 : vector<8x256xf32>
    %30 = arith.truncf %29 : vector<8x256xf32> to vector<8x256xbf16>
    %c0_13 = arith.constant 0 : index
    %c0_14 = arith.constant 0 : index
    %31 = vector.load %arg4[%c0_13, %c0_14] : memref<256x512xbf16, #tpu.memory_space<vmem>>, vector<256x512xbf16>
    %cst_15 = arith.constant dense<0.000000e+00> : vector<8x512xf32>
    %32 = tpu.matmul %30, %31, %cst_15 {dimension_numbers = #tpu.dot_dimension_numbers<[1], [0], [0], [1], [0, 0, 1, 1], [], []>} : vector<8x256xbf16>, vector<256x512xbf16>, vector<8x512xf32> -> vector<8x512xf32>
    %c0_16 = arith.constant 0 : index
    %c0_17 = arith.constant 0 : index
    %33 = vector.load %arg5[%c0_16, %c0_17] : memref<1x512xf32, #tpu.memory_space<vmem>>, vector<1x512xf32>
    %c0_18 = arith.constant 0 : index
    %c0_19 = arith.constant 0 : index
    %34 = vector.load %arg6[%c0_18, %c0_19] : memref<1x512xf32, #tpu.memory_space<vmem>>, vector<1x512xf32>
    %cst_20 = arith.constant dense<0.000000e+00> : vector<512xf32>
    %35 = vector.multi_reduction <add>, %32, %cst_20 [0] : vector<8x512xf32> to vector<512xf32>
    %36 = vector.shape_cast %35 : vector<512xf32> to vector<1x512xf32>
    %cst_21 = arith.constant 8.000000e+00 : f32
    %37 = vector.broadcast %cst_21 : f32 to vector<1x512xf32>
    %38 = arith.divf %36, %37 : vector<1x512xf32>
    %39 = vector.broadcast %38 : vector<1x512xf32> to vector<8x512xf32>
    %40 = arith.subf %32, %39 : vector<8x512xf32>
    %41 = arith.mulf %40, %40 : vector<8x512xf32>
    %cst_22 = arith.constant dense<0.000000e+00> : vector<512xf32>
    %42 = vector.multi_reduction <add>, %41, %cst_22 [0] : vector<8x512xf32> to vector<512xf32>
    %43 = vector.shape_cast %42 : vector<512xf32> to vector<1x512xf32>
    %cst_23 = arith.constant 8.000000e+00 : f32
    %44 = vector.broadcast %cst_23 : f32 to vector<1x512xf32>
    %45 = arith.divf %43, %44 : vector<1x512xf32>
    %cst_24 = arith.constant 9.99999974E-6 : f32
    %46 = vector.broadcast %cst_24 : f32 to vector<1x512xf32>
    %47 = arith.addf %45, %46 : vector<1x512xf32>
    %48 = math.rsqrt %47 : vector<1x512xf32>
    %49 = arith.mulf %33, %48 : vector<1x512xf32>
    %50 = arith.mulf %38, %49 : vector<1x512xf32>
    %51 = arith.subf %34, %50 : vector<1x512xf32>
    %52 = vector.broadcast %49 : vector<1x512xf32> to vector<8x512xf32>
    %53 = arith.mulf %32, %52 : vector<8x512xf32>
    %54 = vector.broadcast %51 : vector<1x512xf32> to vector<8x512xf32>
    %55 = arith.addf %53, %54 : vector<8x512xf32>
    %cst_25 = arith.constant 2.000000e-01 : f32
    %56 = vector.broadcast %cst_25 : f32 to vector<8x512xf32>
    %57 = arith.mulf %56, %55 : vector<8x512xf32>
    %58 = arith.maximumf %55, %57 : vector<8x512xf32>
    %59 = arith.truncf %58 : vector<8x512xf32> to vector<8x512xbf16>
    %c0_26 = arith.constant 0 : index
    %c0_27 = arith.constant 0 : index
    %60 = vector.load %arg7[%c0_26, %c0_27] : memref<512x1024xbf16, #tpu.memory_space<vmem>>, vector<512x1024xbf16>
    %cst_28 = arith.constant dense<0.000000e+00> : vector<8x1024xf32>
    %61 = tpu.matmul %59, %60, %cst_28 {dimension_numbers = #tpu.dot_dimension_numbers<[1], [0], [0], [1], [0, 0, 1, 1], [], []>} : vector<8x512xbf16>, vector<512x1024xbf16>, vector<8x1024xf32> -> vector<8x1024xf32>
    %c0_29 = arith.constant 0 : index
    %c0_30 = arith.constant 0 : index
    %62 = vector.load %arg8[%c0_29, %c0_30] : memref<1x1024xf32, #tpu.memory_space<vmem>>, vector<1x1024xf32>
    %c0_31 = arith.constant 0 : index
    %c0_32 = arith.constant 0 : index
    %63 = vector.load %arg9[%c0_31, %c0_32] : memref<1x1024xf32, #tpu.memory_space<vmem>>, vector<1x1024xf32>
    %cst_33 = arith.constant dense<0.000000e+00> : vector<1024xf32>
    %64 = vector.multi_reduction <add>, %61, %cst_33 [0] : vector<8x1024xf32> to vector<1024xf32>
    %65 = vector.shape_cast %64 : vector<1024xf32> to vector<1x1024xf32>
    %cst_34 = arith.constant 8.000000e+00 : f32
    %66 = vector.broadcast %cst_34 : f32 to vector<1x1024xf32>
    %67 = arith.divf %65, %66 : vector<1x1024xf32>
    %68 = vector.broadcast %67 : vector<1x1024xf32> to vector<8x1024xf32>
    %69 = arith.subf %61, %68 : vector<8x1024xf32>
    %70 = arith.mulf %69, %69 : vector<8x1024xf32>
    %cst_35 = arith.constant dense<0.000000e+00> : vector<1024xf32>
    %71 = vector.multi_reduction <add>, %70, %cst_35 [0] : vector<8x1024xf32> to vector<1024xf32>
    %72 = vector.shape_cast %71 : vector<1024xf32> to vector<1x1024xf32>
    %cst_36 = arith.constant 8.000000e+00 : f32
    %73 = vector.broadcast %cst_36 : f32 to vector<1x1024xf32>
    %74 = arith.divf %72, %73 : vector<1x1024xf32>
    %cst_37 = arith.constant 9.99999974E-6 : f32
    %75 = vector.broadcast %cst_37 : f32 to vector<1x1024xf32>
    %76 = arith.addf %74, %75 : vector<1x1024xf32>
    %77 = math.rsqrt %76 : vector<1x1024xf32>
    %78 = arith.mulf %62, %77 : vector<1x1024xf32>
    %79 = arith.mulf %67, %78 : vector<1x1024xf32>
    %80 = arith.subf %63, %79 : vector<1x1024xf32>
    %81 = vector.broadcast %78 : vector<1x1024xf32> to vector<8x1024xf32>
    %82 = arith.mulf %61, %81 : vector<8x1024xf32>
    %83 = vector.broadcast %80 : vector<1x1024xf32> to vector<8x1024xf32>
    %84 = arith.addf %82, %83 : vector<8x1024xf32>
    %cst_38 = arith.constant 2.000000e-01 : f32
    %85 = vector.broadcast %cst_38 : f32 to vector<8x1024xf32>
    %86 = arith.mulf %85, %84 : vector<8x1024xf32>
    %87 = arith.maximumf %84, %86 : vector<8x1024xf32>
    %88 = arith.truncf %87 : vector<8x1024xf32> to vector<8x1024xbf16>
    %c0_39 = arith.constant 0 : index
    %c0_40 = arith.constant 0 : index
    %89 = vector.load %arg10[%c0_39, %c0_40] : memref<1024x896xbf16, #tpu.memory_space<vmem>>, vector<1024x896xbf16>
    %cst_41 = arith.constant dense<0.000000e+00> : vector<8x896xf32>
    %90 = tpu.matmul %88, %89, %cst_41 {dimension_numbers = #tpu.dot_dimension_numbers<[1], [0], [0], [1], [0, 0, 1, 1], [], []>} : vector<8x1024xbf16>, vector<1024x896xbf16>, vector<8x896xf32> -> vector<8x896xf32>
    %c0_42 = arith.constant 0 : index
    %c0_43 = arith.constant 0 : index
    %91 = vector.load %arg11[%c0_42, %c0_43] : memref<1x896xf32, #tpu.memory_space<vmem>>, vector<1x896xf32>
    %92 = vector.broadcast %91 : vector<1x896xf32> to vector<8x896xf32>
    %93 = arith.addf %90, %92 : vector<8x896xf32>
    %94 = math.tanh %93 : vector<8x896xf32>
    %c0_44 = arith.constant 0 : index
    %c0_45 = arith.constant 0 : index
    %95 = vector.load %arg12[%c0_44, %c0_45] : memref<8x896xf32, #tpu.memory_space<vmem>>, vector<8x896xf32>
    tpu.vector_store %arg12[%c0_44, %c0_45], %94 {strides = array<i32>} : memref<8x896xf32, #tpu.memory_space<vmem>>, vector<8x896xf32>,
    return
  }
}

</mosaic_0001>

<bundles_post_ra>
// kernel: tpu_custom_call.1
= control target key start
LH: loop header
LB: loop body
LE: loop exit
PB: predicated region body
PF: predicated region fallthrough
CT: control target
= control target key end

     0   :  { %17 = vsyncpa [#allocation3], 0  ;;  %s9534_s0 = inlined_call_operand.hbm [shape: f32[8,128], index: 0, kind: input, shape index: {}]   ;;  %s9535_s1 = inlined_call_operand.hbm [shape: bf16[128,256], index: 1, kind: input, shape index: {}]   ;;  %s9536_s2 = inlined_call_operand.hbm [shape: f32[1,256], index: 2, kind: input, shape index: {}]   ;;  %s9537_s3 = inlined_call_operand.hbm [shape: f32[1,256], index: 3, kind: input, shape index: {}]   ;;  %s9538_s4 = inlined_call_operand.hbm [shape: bf16[256,512], index: 4, kind: input, shape index: {}]   ;;  %s9539_s5 = inlined_call_operand.hbm [shape: f32[1,512], index: 5, kind: input, shape index: {}]   ;;  %s9540_s6 = inlined_call_operand.hbm [shape: f32[1,512], index: 6, kind: input, shape index: {}]   ;;  %s9541_s7 = inlined_call_operand.hbm [shape: bf16[512,1024], index: 7, kind: input, shape index: {}]   ;;  %s9542_s8 = inlined_call_operand.hbm [shape: f32[1,1024], index: 8, kind: input, shape index: {}]   ;;  %s9543_s9 = inlined_call_operand.hbm [shape: f32[1,1024], index: 9, kind: input, shape index: {}]   ;;  %s9544_s10 = inlined_call_operand.hbm [shape: bf16[1024,896], index: 10, kind: input, shape index: {}]   ;;  %s9545_s11 = inlined_call_operand.hbm [shape: f32[1,896], index: 11, kind: input, shape index: {}]   ;;  %s9546_s12 = inlined_call_operand.hbm [shape: f32[8,896], index: 12, kind: output, shape index: {}]  }
   0x1   :  { %18 = vsyncpa [#allocation6], 0 }
   0x2   :  { %19 = vsyncpa [#allocation9], 0 }
   0x3   :  { %20 = vsyncpa [#allocation12], 0 }
   0x4   :  { %21 = vsyncpa [#allocation15], 0 }
   0x5   :  { %22 = vsyncpa [#allocation18], 0 }
   0x6   :  { %23 = vsyncpa [#allocation21], 0 }
   0x7   :  { %24 = vsyncpa [#allocation4], 0  ;;  %s8961_s21 = smov [#allocation5]   ;;  %s8659_s25 = scalar_lea.hbm %s9535_s1, 2048 }
   0x8   :  { %s40_s22 = sshll.u32 %s8961_s21, 4  ;;  %p8660_p0 = scmp.ne.s32.totalorder %s9535_s1, %s8659_s25  ;;  %s41_s22 = int_to_ptr.vmem [resolvable:$true] %s40_s22 }
   0x9   :  { %p8663_p1 = scmp.lt.u32.totalorder %s8659_s25, %s9535_s1 }
   0xb   :  { %p8665_p2 = pnand %p8663_p1, %p8660_p0 }
   0xd   :  { %8668 = shalt.err (!%p8665_p2)
}
   0xe   :  { %s8669_s30 = scalar_lea.vmem %s41_s22, 2048  ;;  %p8674_p4 = scmp.lt.s32.totalorder %s41_s22, %s41_s22 }
   0xf   :  { %p8670_p3 = scmp.ne.s32.totalorder %s41_s22, %s8669_s30  ;;  %p8675_p5 = scmp.lt.s32.totalorder %s8669_s30, %s8669_s30 }
  0x11   :  { %p8676_p6 = por %p8675_p5, %p8674_p4 }
  0x13   :  { %p8677_p7 = pnand %p8676_p6, %p8670_p3 }
  0x15   :  { %8680 = shalt.err (!%p8677_p7)
}
  0x16   :  { %s8962_s13 = smov 128   ;;  %s8963_s14 = smov 8  }
  0x17   :  { %46 = dma.hbm_to_vmem [thread:$0]  %s9535_s1, 2048, %s41_s22, [#allocation6], %s8962_s13, %s8962_s13, %s8963_s14  }
  0x18   :  { %s8964_s17 = smov [#allocation8]   ;;  %s8965_s19 = smov [#allocation11]  }
  0x19   :  { %s63_s18 = sshll.u32 %s8964_s17, 4  ;;  %s85_s20 = sshll.u32 %s8965_s19, 4  ;;  %s64_s18 = int_to_ptr.vmem [resolvable:$true] %s63_s18  ;;  %s86_s20 = int_to_ptr.vmem [resolvable:$true] %s85_s20 }
  0x1a   :  { %s8681_s24 = scalar_lea.hbm %s9537_s3, 32 }
  0x1b   :  { %p8682_p8 = scmp.ne.s32.totalorder %s9537_s3, %s8681_s24  ;;  %p8685_p9 = scmp.lt.u32.totalorder %s8681_s24, %s9537_s3 }
  0x1d   :  { %p8687_p10 = pnand %p8685_p9, %p8682_p8 }
  0x1f   :  { %8690 = shalt.err (!%p8687_p10)
}
  0x20   :  { %s8691_s1 = scalar_lea.vmem %s64_s18, 32  ;;  %p8696_p12 = scmp.lt.s32.totalorder %s64_s18, %s64_s18 }
  0x21   :  { %p8692_p11 = scmp.ne.s32.totalorder %s64_s18, %s8691_s1  ;;  %p8697_p13 = scmp.lt.s32.totalorder %s8691_s1, %s8691_s1 }
  0x23   :  { %p8698_p0 = por %p8697_p13, %p8696_p12 }
  0x25   :  { %p8699_p1 = pnand %p8698_p0, %p8692_p11 }
  0x27   :  { %8702 = shalt.err (!%p8699_p1)
}
  0x28   :  { %66 = dma.hbm_to_vmem [thread:$0]  %s9537_s3, 32, %s64_s18, [#allocation9]  }
  0x29   :  { %s8703_s14 = scalar_lea.hbm %s9539_s5, 64 }
  0x2a   :  { %p8704_p2 = scmp.ne.s32.totalorder %s9539_s5, %s8703_s14  ;;  %p8707_p3 = scmp.lt.u32.totalorder %s8703_s14, %s9539_s5 }
  0x2c   :  { %p8709_p4 = pnand %p8707_p3, %p8704_p2 }
  0x2e   :  { %8712 = shalt.err (!%p8709_p4)
}
  0x2f   :  { %s8713_s21 = scalar_lea.vmem %s86_s20, 64  ;;  %p8718_p6 = scmp.lt.s32.totalorder %s86_s20, %s86_s20 }
  0x30   :  { %p8714_p5 = scmp.ne.s32.totalorder %s86_s20, %s8713_s21  ;;  %p8719_p7 = scmp.lt.s32.totalorder %s8713_s21, %s8713_s21 }
  0x32   :  { %p8720_p8 = por %p8719_p7, %p8718_p6 }
  0x34   :  { %p8721_p9 = pnand %p8720_p8, %p8714_p5 }
  0x36   :  { %8724 = shalt.err (!%p8721_p9)
}
  0x37   :  { %88 = dma.hbm_to_vmem [thread:$0]  %s9539_s5, 64, %s86_s20, [#allocation12]  }
  0x38   :  { %s8966_s23 = smov [#allocation14]   ;;  %s8725_s27 = scalar_lea.hbm %s9541_s7, 32768 }
  0x39   :  { %s104_s24 = sshll.u32 %s8966_s23, 4  ;;  %p8726_p10 = scmp.ne.s32.totalorder %s9541_s7, %s8725_s27  ;;  %s105_s24 = int_to_ptr.vmem [resolvable:$true] %s104_s24 }
  0x3a   :  { %p8729_p11 = scmp.lt.u32.totalorder %s8725_s27, %s9541_s7 }
  0x3c   :  { %p8731_p12 = pnand %p8729_p11, %p8726_p10 }
  0x3e   :  { %8734 = shalt.err (!%p8731_p12)
}
  0x3f   :  { %s8735_s30 = scalar_lea.vmem %s105_s24, 32768  ;;  %p8740_p0 = scmp.lt.s32.totalorder %s105_s24, %s105_s24 }
  0x40   :  { %p8736_p13 = scmp.ne.s32.totalorder %s105_s24, %s8735_s30  ;;  %p8741_p1 = scmp.lt.s32.totalorder %s8735_s30, %s8735_s30 }
  0x42   :  { %p8742_p2 = por %p8741_p1, %p8740_p0 }
  0x44   :  { %p8743_p3 = pnand %p8742_p2, %p8736_p13 }
  0x46   :  { %8746 = shalt.err (!%p8743_p3)
}
  0x47   :  { %s8967_s5 = smov 512   ;;  %s8968_s20 = smov 32  }
  0x48   :  { %110 = dma.hbm_to_vmem [thread:$0]  %s9541_s7, 32768, %s105_s24, [#allocation15], %s8967_s5, %s8967_s5, %s8968_s20  }
  0x49   :  { %s8969_s15 = smov [#allocation17]   ;;  %s8970_s17 = smov [#allocation2]  }
  0x4a   :  { %s127_s16 = sshll.u32 %s8969_s15, 4  ;;  %s31_s19 = sshll.u32 %s8970_s17, 4  ;;  %s128_s16 = int_to_ptr.vmem [resolvable:$true] %s127_s16  ;;  %s32_s19 = int_to_ptr.vmem [resolvable:$true] %s31_s19 }
  0x4b   :  { %s8747_s18 = scalar_lea.hbm %s9543_s9, 128 }
  0x4c   :  { %p8748_p4 = scmp.ne.s32.totalorder %s9543_s9, %s8747_s18  ;;  %p8751_p5 = scmp.lt.u32.totalorder %s8747_s18, %s9543_s9 }
  0x4e   :  { %p8753_p6 = pnand %p8751_p5, %p8748_p4 }
  0x50   :  { %8756 = shalt.err (!%p8753_p6)
}
  0x51   :  { %s8757_s7 = scalar_lea.vmem %s128_s16, 128  ;;  %p8762_p8 = scmp.lt.s32.totalorder %s128_s16, %s128_s16 }
  0x52   :  { %p8758_p7 = scmp.ne.s32.totalorder %s128_s16, %s8757_s7  ;;  %p8763_p9 = scmp.lt.s32.totalorder %s8757_s7, %s8757_s7 }
  0x54   :  { %p8764_p10 = por %p8763_p9, %p8762_p8 }
  0x56   :  { %p8765_p11 = pnand %p8764_p10, %p8758_p7 }
  0x58   :  { %8768 = shalt.err (!%p8765_p11)
}
  0x59   :  { %130 = dma.hbm_to_vmem [thread:$0]  %s9543_s9, 128, %s128_s16, [#allocation18]  }
  0x5a   :  { %s8769_s29 = scalar_lea.hbm %s9534_s0, 128 }
  0x5b   :  { %p8770_p12 = scmp.ne.s32.totalorder %s9534_s0, %s8769_s29  ;;  %p8773_p13 = scmp.lt.u32.totalorder %s8769_s29, %s9534_s0 }
  0x5d   :  { %p8775_p0 = pnand %p8773_p13, %p8770_p12 }
  0x5f   :  { %8778 = shalt.err (!%p8775_p0)
}
  0x60   :  { %s8779_s14 = scalar_lea.vmem %s32_s19, 128  ;;  %p8784_p2 = scmp.lt.s32.totalorder %s32_s19, %s32_s19 }
  0x61   :  { %p8780_p1 = scmp.ne.s32.totalorder %s32_s19, %s8779_s14  ;;  %p8785_p3 = scmp.lt.s32.totalorder %s8779_s14, %s8779_s14 }
  0x63   :  { %p8786_p4 = por %p8785_p3, %p8784_p2 }
  0x65   :  { %p8787_p5 = pnand %p8786_p4, %p8780_p1 }
  0x67   :  { %8790 = shalt.err (!%p8787_p5)
}
  0x68   :  { %34 = dma.hbm_to_vmem [thread:$0]  %s9534_s0, 128, %s32_s19, [#allocation3]  }
  0x69   :  { %s8971_s16 = smov [#allocation7]   ;;  %s8972_s21 = smov [#allocation10]  }
  0x6a   :  { %s53_s17 = sshll.u32 %s8971_s16, 4  ;;  %s72_s3 = sshll.u32 %s8972_s21, 4  ;;  %s54_s17 = int_to_ptr.vmem [resolvable:$true] %s53_s17  ;;  %s9121_s3 = int_to_ptr.vmem [resolvable:$true] %s72_s3 }
  0x6b   :  { %s8791_s25 = scalar_lea.hbm %s9536_s2, 32 }
  0x6c   :  { %p8792_p6 = scmp.ne.s32.totalorder %s9536_s2, %s8791_s25  ;;  %p8795_p7 = scmp.lt.u32.totalorder %s8791_s25, %s9536_s2 }
  0x6e   :  { %p8797_p8 = pnand %p8795_p7, %p8792_p6 }
  0x70   :  { %8800 = shalt.err (!%p8797_p8)
}
  0x71   :  { %s8801_s0 = scalar_lea.vmem %s54_s17, 32  ;;  %p8806_p10 = scmp.lt.s32.totalorder %s54_s17, %s54_s17 }
  0x72   :  { %p8802_p9 = scmp.ne.s32.totalorder %s54_s17, %s8801_s0  ;;  %p8807_p11 = scmp.lt.s32.totalorder %s8801_s0, %s8801_s0 }
  0x74   :  { %p8808_p12 = por %p8807_p11, %p8806_p10 }
  0x76   :  { %p8809_p13 = pnand %p8808_p12, %p8802_p9 }
  0x78   :  { %8812 = shalt.err (!%p8809_p13)
}
  0x79   :  { %56 = dma.hbm_to_vmem [thread:$0]  %s9536_s2, 32, %s54_s17, [#allocation6]  }
  0x7a   :  { %s8813_s29 = scalar_lea.hbm %s9538_s4, 8192 }
  0x7b   :  { %p8814_p0 = scmp.ne.s32.totalorder %s9538_s4, %s8813_s29  ;;  %p8817_p1 = scmp.lt.u32.totalorder %s8813_s29, %s9538_s4 }
  0x7d   :  { %p8819_p2 = pnand %p8817_p1, %p8814_p0 }
  0x7f   :  { %8822 = shalt.err (!%p8819_p2)
}
  0x80   :  { %s8823_s14 = scalar_lea.vmem %s9121_s3, 8192  ;;  %p8828_p4 = scmp.lt.s32.totalorder %s9121_s3, %s9121_s3 }
  0x81   :  { %p8824_p3 = scmp.ne.s32.totalorder %s9121_s3, %s8823_s14  ;;  %p8829_p5 = scmp.lt.s32.totalorder %s8823_s14, %s8823_s14 }
  0x83   :  { %p8830_p6 = por %p8829_p5, %p8828_p4 }
  0x85   :  { %p8831_p7 = pnand %p8830_p6, %p8824_p3 }
  0x87   :  { %8834 = shalt.err (!%p8831_p7)
}
  0x88   :  { %s8973_s2 = smov 256   ;;  %s8974_s9 = smov 16  }
  0x89   :  { %78 = dma.hbm_to_vmem [thread:$0]  %s9538_s4, 8192, %s9121_s3, [#allocation9], %s8973_s2, %s8973_s2, %s8974_s9  }
  0x8a   :  { %s8975_s17 = smov [#allocation13]   ;;  %s8976_s18 = smov [#allocation16]  }
  0x8b   :  { %s95_s21 = sshll.u32 %s8975_s17, 4  ;;  %s117_s23 = sshll.u32 %s8976_s18, 4  ;;  %s96_s21 = int_to_ptr.vmem [resolvable:$true] %s95_s21  ;;  %s118_s23 = int_to_ptr.vmem [resolvable:$true] %s117_s23 }
  0x8c   :  { %s8835_s27 = scalar_lea.hbm %s9540_s6, 64 }
  0x8d   :  { %p8836_p8 = scmp.ne.s32.totalorder %s9540_s6, %s8835_s27  ;;  %p8839_p9 = scmp.lt.u32.totalorder %s8835_s27, %s9540_s6 }
  0x8f   :  { %p8841_p10 = pnand %p8839_p9, %p8836_p8 }
  0x91   :  { %8844 = shalt.err (!%p8841_p10)
}
  0x92   :  { %s8845_s4 = scalar_lea.vmem %s96_s21, 64  ;;  %p8850_p12 = scmp.lt.s32.totalorder %s96_s21, %s96_s21 }
  0x93   :  { %p8846_p11 = scmp.ne.s32.totalorder %s96_s21, %s8845_s4  ;;  %p8851_p13 = scmp.lt.s32.totalorder %s8845_s4, %s8845_s4 }
  0x95   :  { %p8852_p0 = por %p8851_p13, %p8850_p12 }
  0x97   :  { %p8853_p1 = pnand %p8852_p0, %p8846_p11 }
  0x99   :  { %8856 = shalt.err (!%p8853_p1)
}
  0x9a   :  { %98 = dma.hbm_to_vmem [thread:$0]  %s9540_s6, 64, %s96_s21, [#allocation12]  }
  0x9b   :  { %s8857_s29 = scalar_lea.hbm %s9542_s8, 128 }
  0x9c   :  { %p8858_p2 = scmp.ne.s32.totalorder %s9542_s8, %s8857_s29  ;;  %p8861_p3 = scmp.lt.u32.totalorder %s8857_s29, %s9542_s8 }
  0x9e   :  { %p8863_p4 = pnand %p8861_p3, %p8858_p2 }
  0xa0   :  { %8866 = shalt.err (!%p8863_p4)
}
  0xa1   :  { %s8867_s14 = scalar_lea.vmem %s118_s23, 128  ;;  %p8872_p6 = scmp.lt.s32.totalorder %s118_s23, %s118_s23 }
  0xa2   :  { %p8868_p5 = scmp.ne.s32.totalorder %s118_s23, %s8867_s14  ;;  %p8873_p7 = scmp.lt.s32.totalorder %s8867_s14, %s8867_s14 }
  0xa4   :  { %p8874_p8 = por %p8873_p7, %p8872_p6 }
  0xa6   :  { %p8875_p9 = pnand %p8874_p8, %p8868_p5 }
  0xa8   :  { %8878 = shalt.err (!%p8875_p9)
}
  0xa9   :  { %120 = dma.hbm_to_vmem [thread:$0]  %s9542_s8, 128, %s118_s23, [#allocation15]  }
  0xaa   :  { %s8977_s9 = smov [#allocation19]   ;;  %s8879_s21 = scalar_lea.hbm %s9544_s10, 57344 }
  0xab   :  { %s136_s15 = sshll.u32 %s8977_s9, 4  ;;  %p8880_p10 = scmp.ne.s32.totalorder %s9544_s10, %s8879_s21  ;;  %s137_s15 = int_to_ptr.vmem [resolvable:$true] %s136_s15 }
  0xac   :  { %p8883_p11 = scmp.lt.u32.totalorder %s8879_s21, %s9544_s10 }
  0xae   :  { %p8885_p12 = pnand %p8883_p11, %p8880_p10 }
  0xb0   :  { %8888 = shalt.err (!%p8885_p12)
}
  0xb1   :  { %s8889_s7 = scalar_lea.vmem %s137_s15, 57344  ;;  %p8894_p0 = scmp.lt.s32.totalorder %s137_s15, %s137_s15 }
  0xb2   :  { %p8890_p13 = scmp.ne.s32.totalorder %s137_s15, %s8889_s7  ;;  %p8895_p1 = scmp.lt.s32.totalorder %s8889_s7, %s8889_s7 }
  0xb4   :  { %p8896_p2 = por %p8895_p1, %p8894_p0 }
  0xb6   :  { %p8897_p3 = pnand %p8896_p2, %p8890_p13 }
  0xb8   :  { %8900 = shalt.err (!%p8897_p3)
}
  0xb9   :  { %s8978_s8 = smov 448   ;;  %s8979_s23 = smov 28  }
  0xba   :  { %142 = dma.hbm_to_vmem [thread:$0]  %s9544_s10, 57344, %s137_s15, [#allocation18], %s8978_s8, %s8978_s8, %s8979_s23  }
  0xbb   :  { %s8980_s19 = smov [#allocation20]   ;;  %s8901_s1 = scalar_lea.hbm %s9545_s11, 112 }
  0xbc   :  { %s149_s4 = sshll.u32 %s8980_s19, 4  ;;  %p8902_p4 = scmp.ne.s32.totalorder %s9545_s11, %s8901_s1  ;;  %s150_s4 = int_to_ptr.vmem [resolvable:$true] %s149_s4 }
  0xbd   :  { %p8905_p5 = scmp.lt.u32.totalorder %s8901_s1, %s9545_s11 }
  0xbf   :  { %p8907_p6 = pnand %p8905_p5, %p8902_p4 }
  0xc1   :  { %8910 = shalt.err (!%p8907_p6)
}
  0xc2   :  { %s8911_s20 = scalar_lea.vmem %s150_s4, 112  ;;  %s8915_s10 = scalar_lea.vmem %s150_s4, 128 }
  0xc3   :  { %p8912_p7 = scmp.ne.s32.totalorder %s150_s4, %s8911_s20  ;;  %p8916_p8 = scmp.lt.s32.totalorder %s150_s4, %s150_s4 }
  0xc4   :  { %p8917_p9 = scmp.lt.s32.totalorder %s8915_s10, %s8911_s20 }
  0xc6   :  { %p8918_p10 = por %p8917_p9, %p8916_p8 }
  0xc8   :  { %p8919_p11 = pnand %p8918_p10, %p8912_p7 }
  0xca   :  { %8922 = shalt.err (!%p8919_p11)
}
  0xcb   :  { %152 = dma.hbm_to_vmem [thread:$0]  %s9545_s11, 112, %s150_s4, [#allocation21]  }
  0xcc   :  { %8945 = dma.done.wait [#allocation3], 128  }
  0xcd   :  { %8946 = vsyncadd [#allocation3], 4294967168 }
  0xce   :  { %8947 = dma.done.wait [#allocation6], 2080  }
  0xcf   :  { %8948 = vsyncadd [#allocation6], 4294965216 }
  0xd0   :  { %8949 = dma.done.wait [#allocation9], 8224  }
  0xd1   :  { %8950 = vsyncadd [#allocation9], 4294959072 }
  0xd2   :  { %8951 = dma.done.wait [#allocation12], 128  }
  0xd3   :  { %8952 = vsyncadd [#allocation12], 4294967168 }
  0xd4   :  { %8953 = dma.done.wait [#allocation15], 32896  }
  0xd5   :  { %8954 = vsyncadd [#allocation15], 4294934400 }
  0xd6   :  { %8955 = dma.done.wait [#allocation18], 57472  }
  0xd7   :  { %8956 = vsyncadd [#allocation18], 4294909824 }
  0xd8   :  { %8957 = dma.done.wait [#allocation21], 112  }
  0xd9   :  { %8958 = vsyncadd [#allocation21], 4294967184  ;;  %v8981_v0 = vmov 0   ;;  %v7857_v1 = vld [vmem:[#allocation5 + $0x4] ss:$8 sps:$4 sm:$0xff]   ;;  %v190_v17 = vld [vmem:[#allocation2] sm:$0xff] }
  0xda   :  { %320 = vmatprep.mubr.bf16.mxu0 %v8981_v0  ;;  %v7859_v2 = vld [vmem:[#allocation5] ss:$8 sps:$4 sm:$0xff]   ;;  %288 = vmatprep.subr.bf16.mxu0 %v7857_v1  ;;  %v7860_v3 = vld [vmem:[#allocation5 + $0x14] ss:$8 sps:$4 sm:$0xff]   ;;  %v7862_v4 = vld [vmem:[#allocation5 + $0x10] ss:$8 sps:$4 sm:$0xff]   ;;  %v191_v18 = vpack.c.bf16 %v190_v17, %v190_v17 }
  0xdb   :  { %289 = vmatpush1.bf16.msra.mxu0 %v7859_v2  ;;  %v7863_v5 = vld [vmem:[#allocation5 + $0x24] ss:$8 sps:$4 sm:$0xff]   ;;  %v7865_v6 = vld [vmem:[#allocation5 + $0x20] ss:$8 sps:$4 sm:$0xff]   ;;  %v7866_v7 = vld [vmem:[#allocation5 + $0x34] ss:$8 sps:$4 sm:$0xff]  }
  0xdc   :  { %290 = vmatprep.subr.bf16.mxu0 %v7860_v3  ;;  %v7868_v8 = vld [vmem:[#allocation5 + $0x30] ss:$8 sps:$4 sm:$0xff]   ;;  %v7869_v9 = vld [vmem:[#allocation5 + $0x44] ss:$8 sps:$4 sm:$0xff]   ;;  %v7871_v10 = vld [vmem:[#allocation5 + $0x40] ss:$8 sps:$4 sm:$0xff]  }
  0xdd   :  { %v7872_v11 = vld [vmem:[#allocation5 + $0x54] ss:$8 sps:$4 sm:$0xff]   ;;  %v7874_v12 = vld [vmem:[#allocation5 + $0x50] ss:$8 sps:$4 sm:$0xff]   ;;  %v7875_v13 = vld [vmem:[#allocation5 + $0x64] ss:$8 sps:$4 sm:$0xff]  }
  0xde   :  { %v7877_v14 = vld [vmem:[#allocation5 + $0x60] ss:$8 sps:$4 sm:$0xff]   ;;  %v7878_v15 = vld [vmem:[#allocation5 + $0x74] ss:$8 sps:$4 sm:$0xff]   ;;  %v7880_v16 = vld [vmem:[#allocation5 + $0x70] ss:$8 sps:$4 sm:$0xff]  }
  0xdf   :  { %291 = vmatpush1.bf16.msra.mxu0 %v7862_v4  ;;  %v7883_v19 = vld [vmem:[#allocation10 + $0x4] ss:$16 sps:$4 sm:$0xff]   ;;  %v7881_v20 = vld [vmem:[#allocation10] ss:$16 sps:$4 sm:$0xff]   ;;  %v7931_v51 = vld [vmem:[#allocation10 + $0xc] ss:$16 sps:$4 sm:$0xff]  }
  0xe0   :  { %292 = vmatprep.subr.bf16.mxu0 %v7863_v5  ;;  %v7886_v21 = vld [vmem:[#allocation10 + $0x24] ss:$16 sps:$4 sm:$0xff]   ;;  %v7884_v22 = vld [vmem:[#allocation10 + $0x20] ss:$16 sps:$4 sm:$0xff]   ;;  %s8983_s11 = smov [#allocation22]  }
  0xe1   :  { %v7889_v23 = vld [vmem:[#allocation10 + $0x44] ss:$16 sps:$4 sm:$0xff]   ;;  %v7887_v24 = vld [vmem:[#allocation10 + $0x40] ss:$16 sps:$4 sm:$0xff]   ;;  %s6889_s6 = sshll.u32 %s8983_s11, 4  ;;  %s6890_s6 = int_to_ptr.vmem [resolvable:$true] %s6889_s6 }
  0xe2   :  { %v7892_v25 = vld [vmem:[#allocation10 + $0x64] ss:$16 sps:$4 sm:$0xff]   ;;  %v7890_v26 = vld [vmem:[#allocation10 + $0x60] ss:$16 sps:$4 sm:$0xff]   ;;  %s8923_s2 = scalar_lea.vmem %s6890_s6, 896  ;;  %p8928_p13 = scmp.lt.s32.totalorder %s6890_s6, %s6890_s6 }
  0xe3   :  { %293 = vmatpush1.bf16.msra.mxu0 %v7865_v6  ;;  %v7895_v27 = vld [vmem:[#allocation10 + $0x84] ss:$16 sps:$4 sm:$0xff]   ;;  %v7893_v28 = vld [vmem:[#allocation10 + $0x80] ss:$16 sps:$4 sm:$0xff]   ;;  %p8924_p12 = scmp.ne.s32.totalorder %s6890_s6, %s8923_s2  ;;  %p8929_p0 = scmp.lt.s32.totalorder %s8923_s2, %s8923_s2 }
  0xe4   :  { %294 = vmatprep.subr.bf16.mxu0 %v7866_v7  ;;  %v7898_v29 = vld [vmem:[#allocation10 + $0xa4] ss:$16 sps:$4 sm:$0xff]   ;;  %v7896_v30 = vld [vmem:[#allocation10 + $0xa0] ss:$16 sps:$4 sm:$0xff]  }
  0xe5   :  { %v7901_v31 = vld [vmem:[#allocation10 + $0xc4] ss:$16 sps:$4 sm:$0xff]   ;;  %v7899_v32 = vld [vmem:[#allocation10 + $0xc0] ss:$16 sps:$4 sm:$0xff]   ;;  %p8930_p1 = por %p8929_p0, %p8928_p13 }
  0xe6   :  { %v7904_v33 = vld [vmem:[#allocation10 + $0xe4] ss:$16 sps:$4 sm:$0xff]   ;;  %v7902_v34 = vld [vmem:[#allocation10 + $0xe0] ss:$16 sps:$4 sm:$0xff]  }
  0xe7   :  { %295 = vmatpush1.bf16.msra.mxu0 %v7868_v8  ;;  %v7907_v35 = vld [vmem:[#allocation10 + $0x104] ss:$16 sps:$4 sm:$0xff]   ;;  %v7905_v36 = vld [vmem:[#allocation10 + $0x100] ss:$16 sps:$4 sm:$0xff]   ;;  %p8931_p2 = pnand %p8930_p1, %p8924_p12 }
  0xe8   :  { %296 = vmatprep.subr.bf16.mxu0 %v7869_v9  ;;  %v7910_v37 = vld [vmem:[#allocation10 + $0x124] ss:$16 sps:$4 sm:$0xff]   ;;  %v7908_v38 = vld [vmem:[#allocation10 + $0x120] ss:$16 sps:$4 sm:$0xff]  }
  0xe9   :  { %v7913_v39 = vld [vmem:[#allocation10 + $0x144] ss:$16 sps:$4 sm:$0xff]   ;;  %v7911_v40 = vld [vmem:[#allocation10 + $0x140] ss:$16 sps:$4 sm:$0xff]  }
  0xea   :  { %v7916_v41 = vld [vmem:[#allocation10 + $0x164] ss:$16 sps:$4 sm:$0xff]   ;;  %v7914_v42 = vld [vmem:[#allocation10 + $0x160] ss:$16 sps:$4 sm:$0xff]  }
  0xeb   :  { %297 = vmatpush1.bf16.msra.mxu0 %v7871_v10  ;;  %v7919_v43 = vld [vmem:[#allocation10 + $0x184] ss:$16 sps:$4 sm:$0xff]   ;;  %v7917_v44 = vld [vmem:[#allocation10 + $0x180] ss:$16 sps:$4 sm:$0xff]  }
  0xec   :  { %298 = vmatprep.subr.bf16.mxu0 %v7872_v11  ;;  %v7922_v45 = vld [vmem:[#allocation10 + $0x1a4] ss:$16 sps:$4 sm:$0xff]   ;;  %v7920_v46 = vld [vmem:[#allocation10 + $0x1a0] ss:$16 sps:$4 sm:$0xff]  }
  0xed   :  { %v7925_v47 = vld [vmem:[#allocation10 + $0x1c4] ss:$16 sps:$4 sm:$0xff]   ;;  %v7923_v48 = vld [vmem:[#allocation10 + $0x1c0] ss:$16 sps:$4 sm:$0xff]  }
  0xee   :  { %v7928_v49 = vld [vmem:[#allocation10 + $0x1e4] ss:$16 sps:$4 sm:$0xff]   ;;  %v7926_v50 = vld [vmem:[#allocation10 + $0x1e0] ss:$16 sps:$4 sm:$0xff]  }
  0xef   :  { %299 = vmatpush1.bf16.msra.mxu0 %v7874_v12 }
  0xf0   :  { %300 = vmatprep.subr.bf16.mxu0 %v7875_v13 }
  0xf3   :  { %301 = vmatpush1.bf16.msra.mxu0 %v7877_v14 }
  0xf4   :  { %302 = vmatprep.subr.bf16.mxu0 %v7878_v15 }
  0xf7   :  { %303 = vmatpush1.bf16.msra.mxu0 %v7880_v16 }
  0xf8   :  { %824 = vmatprep.subr.bf16.mxu0 %v7883_v19 }
  0xfa   :  { %321 = vmatmul.mubr.bf16.vlgmr.msra.gmra.mrb[0].mxu0 %v191_v18 }
  0xfb   :  { %825 = vmatpush1.bf16.msra.mxu0 %v7881_v20 }
  0xfc   :  { %826 = vmatprep.subr.bf16.mxu0 %v7886_v21 }
  0xff   :  { %827 = vmatpush1.bf16.msra.mxu0 %v7884_v22 }
 0x100   :  { %828 = vmatprep.subr.bf16.mxu0 %v7889_v23 }
 0x103   :  { %829 = vmatpush1.bf16.msra.mxu0 %v7887_v24 }
 0x104   :  { %830 = vmatprep.subr.bf16.mxu0 %v7892_v25 }
 0x107   :  { %831 = vmatpush1.bf16.msra.mxu0 %v7890_v26  ;;  %v8982_v26 = vmov 1966171168  }
 0x108   :  { %832 = vmatprep.subr.bf16.mxu0 %v7895_v27  ;;  %v372_v27 = vunpack.c.l.s4 %v8982_v26  ;;  %v7971_v26 = vld [vmem:[#allocation10 + $0x1c8] ss:$16 sps:$4 sm:$0xff]  }
 0x10b   :  { %833 = vmatpush1.bf16.msra.mxu0 %v7893_v28  ;;  %v374_v28 = vlaneseq }
 0x10c   :  { %834 = vmatprep.subr.bf16.mxu0 %v7898_v29  ;;  %v373_v29 = vunpack.c.0.s8 %v372_v27  ;;  %v7976_v27 = vld [vmem:[#allocation10 + $0x1ec] ss:$16 sps:$4 sm:$0xff]  }
 0x10f   :  { %835 = vmatpush1.bf16.msra.mxu0 %v7896_v30  ;;  %v9200_v30 = vshrl.u32 %v374_v28, 7  ;;  %v7974_v28 = vld [vmem:[#allocation10 + $0x1e8] ss:$16 sps:$4 sm:$0xff]  }
 0x110   :  { %836 = vmatprep.subr.bf16.mxu0 %v7901_v31 }
 0x113   :  { %837 = vmatpush1.bf16.msra.mxu0 %v7899_v32  ;;  %v9203_v32 = vsub.s32 %v373_v29, %v9200_v30  ;;  %v1106_v29 = vld [vmem:[#allocation14] sm:$0xff] }
 0x114   :  { %838 = vmatprep.subr.bf16.mxu0 %v7904_v33 }
 0x117   :  { %839 = vmatpush1.bf16.msra.mxu0 %v7902_v34 }
 0x118   :  { %840 = vmatprep.subr.bf16.mxu0 %v7907_v35 }
 0x11b   :  { %841 = vmatpush1.bf16.msra.mxu0 %v7905_v36  ;;  %v329_v36 = vld [vmem:[#allocation7] sm:$0x3] }
 0x11c   :  { %842 = vmatprep.subr.bf16.mxu0 %v7910_v37 }
 0x11f   :  { %843 = vmatpush1.bf16.msra.mxu0 %v7908_v38  ;;  %v9208_v38 = vsub.s32 0, %v9200_v30 }
 0x120   :  { %844 = vmatprep.subr.bf16.mxu0 %v7913_v39  ;;  %v9211_v39 = vsub.s32 1, %v9200_v30 }
 0x123   :  { %845 = vmatpush1.bf16.msra.mxu0 %v7911_v40 }
 0x124   :  { %846 = vmatprep.subr.bf16.mxu0 %v7916_v41 }
 0x127   :  { %847 = vmatpush1.bf16.msra.mxu0 %v7914_v42 }
 0x128   :  { %848 = vmatprep.subr.bf16.mxu0 %v7919_v43 }
 0x12b   :  { %849 = vmatpush1.bf16.msra.mxu0 %v7917_v44 }
 0x12c   :  { %850 = vmatprep.subr.bf16.mxu0 %v7922_v45 }
 0x12f   :  { %851 = vmatpush1.bf16.msra.mxu0 %v7920_v46 }
 0x130   :  { %852 = vmatprep.subr.bf16.mxu0 %v7925_v47 }
 0x133   :  { %853 = vmatpush1.bf16.msra.mxu0 %v7923_v48 }
 0x134   :  { %854 = vmatprep.subr.bf16.mxu0 %v7928_v49  ;;  %v330_v49 = vld [vmem:[#allocation8] sm:$0x3] }
 0x137   :  { %855 = vmatpush1.bf16.msra.mxu0 %v7926_v50 }
 0x138   :  { %865 = vmatprep.subr.bf16.mxu0 %v7931_v51 }
 0x1cd   :  { %v322_v52 = vpop.f32.mrb[0].mxu0 }
 0x1ce   :  { %v331_v53 = vrot.slane %v322_v52, 4  ;;  %v324_v54 = vpop.f32.mrb[1].mxu0 }
 0x1cf   :  { %v337_v55 = vrot.slane %v324_v54, 4  ;;  %v326_v56 = vpop.f32.mrb[2].mxu0 }
 0x1d0   :  { %v332_v57 = vadd.f32 %v331_v53, %v322_v52  ;;  %v327_v58 = vpop.f32.mrb[3].mxu0 }
 0x1d1   :  { %v338_v59 = vadd.f32 %v337_v55, %v324_v54 }
 0x1d2   :  { %v333_v60 = vrot.slane %v332_v57, 2 }
 0x1d3   :  { %v339_v61 = vrot.slane %v338_v59, 2 }
 0x1d4   :  { %v334_v62 = vadd.f32 %v333_v60, %v332_v57 }
 0x1d5   :  { %v340_v63 = vadd.f32 %v339_v61, %v338_v59 }
 0x1d6   :  { %v335_v0 = vrot.slane %v334_v62, 1 }
 0x1d7   :  { %v341_v1 = vrot.slane %v340_v63, 1 }
 0x1d8   :  { %v336_v2 = vadd.f32 %v335_v0, %v334_v62  ;;  %v7932_v0 = vld [vmem:[#allocation10 + $0x28] ss:$16 sps:$4 sm:$0xff]  }
 0x1d9   :  { %v342_v3 = vadd.f32 %v341_v1, %v340_v63  ;;  %v7934_v63 = vld [vmem:[#allocation10 + $0x2c] ss:$16 sps:$4 sm:$0xff]  }
 0x1da   :  { %v344_v4 = vmul.f32 0.125, %v336_v2  ;;  %v7937_v1 = vld [vmem:[#allocation10 + $0x4c] ss:$16 sps:$4 sm:$0xff]   ;;  %v7935_v2 = vld [vmem:[#allocation10 + $0x48] ss:$16 sps:$4 sm:$0xff]  }
 0x1db   :  { %v345_v5 = vmul.f32 0.125, %v342_v3  ;;  %v7940_v3 = vld [vmem:[#allocation10 + $0x6c] ss:$16 sps:$4 sm:$0xff]  }
 0x1dc   :  { %v346_v6 = vsub.f32 %v322_v52, %v344_v4 }
 0x1dd   :  { %v347_v7 = vsub.f32 %v324_v54, %v345_v5 }
 0x1de   :  { %v348_v8 = vmul.f32 %v346_v6, %v346_v6  ;;  %v7941_v6 = vld [vmem:[#allocation10 + $0x88] ss:$16 sps:$4 sm:$0xff]  }
 0x1df   :  { %v349_v9 = vmul.f32 %v347_v7, %v347_v7  ;;  %v7946_v7 = vld [vmem:[#allocation10 + $0xac] ss:$16 sps:$4 sm:$0xff]  }
 0x1e0   :  { %v350_v10 = vrot.slane %v348_v8, 4 }
 0x1e1   :  { %v356_v11 = vrot.slane %v349_v9, 4 }
 0x1e2   :  { %v351_v12 = vadd.f32 %v350_v10, %v348_v8  ;;  %v7944_v8 = vld [vmem:[#allocation10 + $0xa8] ss:$16 sps:$4 sm:$0xff]  }
 0x1e3   :  { %v357_v13 = vadd.f32 %v356_v11, %v349_v9  ;;  %v7949_v9 = vld [vmem:[#allocation10 + $0xcc] ss:$16 sps:$4 sm:$0xff]   ;;  %v7947_v10 = vld [vmem:[#allocation10 + $0xc8] ss:$16 sps:$4 sm:$0xff]  }
 0x1e4   :  { %v352_v14 = vrot.slane %v351_v12, 2  ;;  %v7952_v11 = vld [vmem:[#allocation10 + $0xec] ss:$16 sps:$4 sm:$0xff]  }
 0x1e5   :  { %v358_v15 = vrot.slane %v357_v13, 2 }
 0x1e6   :  { %v353_v16 = vadd.f32 %v352_v14, %v351_v12  ;;  %v7950_v12 = vld [vmem:[#allocation10 + $0xe8] ss:$16 sps:$4 sm:$0xff]  }
 0x1e7   :  { %v359_v17 = vadd.f32 %v358_v15, %v357_v13  ;;  %v7955_v13 = vld [vmem:[#allocation10 + $0x10c] ss:$16 sps:$4 sm:$0xff]   ;;  %v7953_v14 = vld [vmem:[#allocation10 + $0x108] ss:$16 sps:$4 sm:$0xff]  }
 0x1e8   :  { %v354_v18 = vrot.slane %v353_v16, 1  ;;  %v7958_v15 = vld [vmem:[#allocation10 + $0x12c] ss:$16 sps:$4 sm:$0xff]  }
 0x1e9   :  { %v360_v19 = vrot.slane %v359_v17, 1 }
 0x1ea   :  { %v355_v20 = vadd.f32 %v354_v18, %v353_v16  ;;  %v7956_v16 = vld [vmem:[#allocation10 + $0x128] ss:$16 sps:$4 sm:$0xff]  }
 0x1eb   :  { %v361_v21 = vadd.f32 %v360_v19, %v359_v17  ;;  %v7961_v17 = vld [vmem:[#allocation10 + $0x14c] ss:$16 sps:$4 sm:$0xff]   ;;  %v7959_v18 = vld [vmem:[#allocation10 + $0x148] ss:$16 sps:$4 sm:$0xff]  }
 0x1ec   :  { %v362_v22 = vmul.f32 0.125, %v355_v20  ;;  %v7964_v19 = vld [vmem:[#allocation10 + $0x16c] ss:$16 sps:$4 sm:$0xff]   ;;  %v7962_v20 = vld [vmem:[#allocation10 + $0x168] ss:$16 sps:$4 sm:$0xff]  }
 0x1ed   :  { %v363_v23 = vmul.f32 0.125, %v361_v21  ;;  %v7967_v21 = vld [vmem:[#allocation10 + $0x18c] ss:$16 sps:$4 sm:$0xff]  }
 0x1ee   :  { %v364_v24 = vadd.f32 1e-05, %v362_v22  ;;  %v7965_v22 = vld [vmem:[#allocation10 + $0x188] ss:$16 sps:$4 sm:$0xff]  }
 0x1ef   :  { %v365_v25 = vadd.f32 1e-05, %v363_v23  ;;  %v7970_v23 = vld [vmem:[#allocation10 + $0x1ac] ss:$16 sps:$4 sm:$0xff]  }
 0x1f0   :  { %8617 = vrsqrt.f32 %v364_v24  ;;  %v7968_v24 = vld [vmem:[#allocation10 + $0x1a8] ss:$16 sps:$4 sm:$0xff]  }
 0x1f1   :  { %8619 = vrsqrt.f32 %v365_v25  ;;  %v7973_v25 = vld [vmem:[#allocation10 + $0x1cc] ss:$16 sps:$4 sm:$0xff]  }
 0x1fa   :  { %v8618_v31 = vpop.eup %8617 }
 0x1fb   :  { %v8620_v33 = vpop.eup %8619 }
 0x1fc   :  { %v370_v34 = vcombine.low %v8618_v31, %v8620_v33  ;;  %v1110_v31 = vld [vmem:[#allocation14 + $0x20] sm:$0xff]  ;;  %v1107_v33 = vld [vmem:[#allocation14 + $0x8] sm:$0xff] }
 0x1fe   :  { %v377_v35 = vrot.slane %v370_v34, %v9203_v32  ;;  %v6985_v34 = vcombine.high %v1106_v29, %v1110_v31 }
 0x200   :  { %v384_v37 = vrot.slane %v377_v35, %v9203_v32  ;;  %v1111_v35 = vld [vmem:[#allocation14 + $0x28] sm:$0xff]  ;;  %2642 = vmatprep.subr.bf16.mxu1 %v6985_v34 }
 0x202   :  { %v386_v40 = vmul.f32 %v384_v37, %v329_v36  ;;  %v6986_v36 = vcombine.low %v1107_v33, %v1111_v35  ;;  %v6987_v37 = vcombine.high %v1107_v33, %v1111_v35  ;;  %v1170_v35 = vld [vmem:[#allocation14 + $0x200] sm:$0xff] }
 0x204   :  { %v391_v41 = vrot.slane %v386_v40, %v9208_v38  ;;  %v395_v42 = vrot.slane %v386_v40, %v9211_v39  ;;  %v6984_v40 = vcombine.low %v1106_v29, %v1110_v31  ;;  %v1167_v29 = vld [vmem:[#allocation14 + $0x1e8] sm:$0xff] }
 0x206   :  { %v398_v43 = vmul.f32 %v391_v41, %v344_v4  ;;  %v399_v44 = vmul.f32 %v395_v42, %v345_v5  ;;  %v420_v45 = vmul.f32 %v395_v42, %v324_v54  ;;  %v419_v46 = vmul.f32 %v391_v41, %v322_v52  ;;  %v7929_v54 = vld [vmem:[#allocation10 + $0x8] ss:$16 sps:$4 sm:$0xff]   ;;  %v7943_v5 = vld [vmem:[#allocation10 + $0x8c] ss:$16 sps:$4 sm:$0xff]   ;;  %2643 = vmatpush1.bf16.msra.mxu1 %v6984_v40 }
 0x207   :  { %v7938_v4 = vld [vmem:[#allocation10 + $0x68] ss:$16 sps:$4 sm:$0xff]  }
 0x208   :  { %v402_v47 = vcombine.low %v398_v43, %v399_v44  ;;  %v1114_v41 = vld [vmem:[#allocation14 + $0x40] sm:$0xff]  ;;  %v1115_v43 = vld [vmem:[#allocation14 + $0x48] sm:$0xff] }
 0x209   :  { %v1118_v42 = vld [vmem:[#allocation14 + $0x60] sm:$0xff] }
 0x20a   :  { %v409_v48 = vrot.slane %v402_v47, %v9203_v32  ;;  %v6993_v44 = vcombine.high %v1114_v41, %v1118_v42 }
 0x20c   :  { %v416_v50 = vrot.slane %v409_v48, %v9203_v32  ;;  %v6992_v48 = vcombine.low %v1114_v41, %v1118_v42  ;;  %2644 = vmatprep.subr.bf16.mxu1 %v6993_v44  ;;  %v1175_v41 = vld [vmem:[#allocation14 + $0x228] sm:$0xff] }
 0x20e   :  { %v418_v51 = vsub.f32 %v330_v49, %v416_v50  ;;  %2645 = vmatpush1.bf16.msra.mxu1 %v6992_v48  ;;  %v1122_v49 = vld [vmem:[#allocation14 + $0x80] sm:$0xff] }
 0x20f   :  { %v1126_v50 = vld [vmem:[#allocation14 + $0xa0] sm:$0xff] }
 0x210   :  { %v429_v53 = vrot.slane %v418_v51, %v9211_v39  ;;  %v425_v55 = vrot.slane %v418_v51, %v9208_v38  ;;  %v1123_v51 = vld [vmem:[#allocation14 + $0x88] sm:$0xff] }
 0x212   :  { %v433_v56 = vadd.f32 %v429_v53, %v420_v45  ;;  %v432_v57 = vadd.f32 %v425_v55, %v419_v46  ;;  %v1119_v45 = vld [vmem:[#allocation14 + $0x68] sm:$0xff]  ;;  %v7001_v53 = vcombine.high %v1122_v49, %v1126_v50 }
 0x213   :  { %v6994_v46 = vcombine.low %v1115_v43, %v1119_v45  ;;  %v6995_v47 = vcombine.high %v1115_v43, %v1119_v45  ;;  %v1127_v55 = vld [vmem:[#allocation14 + $0xa8] sm:$0xff]  ;;  %v1178_v45 = vld [vmem:[#allocation14 + $0x240] sm:$0xff] }
 0x214   :  { %v435_v58 = vmul.f32 0.2, %v433_v56  ;;  %v434_v59 = vmul.f32 0.2, %v432_v57  ;;  %2646 = vmatprep.subr.bf16.mxu1 %v7001_v53 }
 0x216   :  { %v437_v60 = vmax.f32 %v433_v56, %v435_v58  ;;  %v436_v61 = vmax.f32 %v432_v57, %v434_v59  ;;  %v7002_v56 = vcombine.low %v1123_v51, %v1127_v55  ;;  %v7003_v57 = vcombine.high %v1123_v51, %v1127_v55  ;;  %v1130_v59 = vld [vmem:[#allocation14 + $0xc0] sm:$0xff] }
 0x217   :  { %v7000_v58 = vcombine.low %v1122_v49, %v1126_v50  ;;  %v1183_v49 = vld [vmem:[#allocation14 + $0x268] sm:$0xff]  ;;  %v1186_v55 = vld [vmem:[#allocation14 + $0x280] sm:$0xff] }
 0x218   :  { %v439_v62 = vpack.c.bf16 %v437_v60, %v437_v60  ;;  %v9219_v52 = vpack.c.bf16 %v436_v61, %v436_v61  ;;  %v1134_v60 = vld [vmem:[#allocation14 + $0xe0] sm:$0xff]  ;;  %v1131_v61 = vld [vmem:[#allocation14 + $0xc8] sm:$0xff] }
 0x219   :  { %2647 = vmatpush1.bf16.msra.mxu1 %v7000_v58 }
 0x21a   :  { %856 = vmatprep.mubr.bf16.mxu0 %v439_v62 }
 0x21b   :  { %857 = vmatmul.mubr.bf16.vlgmr.msra.gmra.mrb[4].mxu0 %v9219_v52 }
 0x21c   :  { %866 = vmatpush1.bf16.msra.mxu0 %v7929_v54  ;;  %897 = vmatprep.mubr.bf16.mxu0 %v439_v62  ;;  %v7009_v62 = vcombine.high %v1130_v59, %v1134_v60  ;;  %v1135_v54 = vld [vmem:[#allocation14 + $0xe8] sm:$0xff] }
 0x21d   :  { %867 = vmatprep.subr.bf16.mxu0 %v7934_v63  ;;  %v7011_v63 = vcombine.high %v1131_v61, %v1135_v54 }
 0x21e   :  { %2648 = vmatprep.subr.bf16.mxu1 %v7009_v62 }
 0x220   :  { %868 = vmatpush1.bf16.msra.mxu0 %v7932_v0  ;;  %v7008_v0 = vcombine.low %v1130_v59, %v1134_v60  ;;  %v1191_v59 = vld [vmem:[#allocation14 + $0x2a8] sm:$0xff] }
 0x221   :  { %869 = vmatprep.subr.bf16.mxu0 %v7937_v1  ;;  %v1138_v1 = vld [vmem:[#allocation14 + $0x100] sm:$0xff] }
 0x222   :  { %2649 = vmatpush1.bf16.msra.mxu1 %v7008_v0 }
 0x224   :  { %870 = vmatpush1.bf16.msra.mxu0 %v7935_v2  ;;  %v1142_v2 = vld [vmem:[#allocation14 + $0x120] sm:$0xff] }
 0x225   :  { %871 = vmatprep.subr.bf16.mxu0 %v7940_v3  ;;  %v1139_v3 = vld [vmem:[#allocation14 + $0x108] sm:$0xff] }
 0x228   :  { %872 = vmatpush1.bf16.msra.mxu0 %v7938_v4  ;;  %v7017_v4 = vcombine.high %v1138_v1, %v1142_v2 }
 0x229   :  { %873 = vmatprep.subr.bf16.mxu0 %v7943_v5  ;;  %v1143_v5 = vld [vmem:[#allocation14 + $0x128] sm:$0xff] }
 0x22a   :  { %2650 = vmatprep.subr.bf16.mxu1 %v7017_v4 }
 0x22c   :  { %874 = vmatpush1.bf16.msra.mxu0 %v7941_v6  ;;  %v7018_v6 = vcombine.low %v1139_v3, %v1143_v5 }
 0x22d   :  { %875 = vmatprep.subr.bf16.mxu0 %v7946_v7  ;;  %v7019_v7 = vcombine.high %v1139_v3, %v1143_v5  ;;  %v1202_v5 = vld [vmem:[#allocation14 + $0x300] sm:$0xff] }
 0x230   :  { %876 = vmatpush1.bf16.msra.mxu0 %v7944_v8  ;;  %v7016_v8 = vcombine.low %v1138_v1, %v1142_v2  ;;  %v1199_v1 = vld [vmem:[#allocation14 + $0x2e8] sm:$0xff] }
 0x231   :  { %877 = vmatprep.subr.bf16.mxu0 %v7949_v9  ;;  %v1146_v9 = vld [vmem:[#allocation14 + $0x140] sm:$0xff] }
 0x232   :  { %2651 = vmatpush1.bf16.msra.mxu1 %v7016_v8 }
 0x234   :  { %878 = vmatpush1.bf16.msra.mxu0 %v7947_v10  ;;  %v1150_v10 = vld [vmem:[#allocation14 + $0x160] sm:$0xff] }
 0x235   :  { %879 = vmatprep.subr.bf16.mxu0 %v7952_v11  ;;  %v1147_v11 = vld [vmem:[#allocation14 + $0x148] sm:$0xff] }
 0x238   :  { %880 = vmatpush1.bf16.msra.mxu0 %v7950_v12  ;;  %v1151_v12 = vld [vmem:[#allocation14 + $0x168] sm:$0xff] }
 0x239   :  { %881 = vmatprep.subr.bf16.mxu0 %v7955_v13  ;;  %v7025_v13 = vcombine.high %v1146_v9, %v1150_v10 }
 0x23b   :  { %2652 = vmatprep.subr.bf16.mxu1 %v7025_v13 }
 0x23c   :  { %882 = vmatpush1.bf16.msra.mxu0 %v7953_v14  ;;  %v7026_v14 = vcombine.low %v1147_v11, %v1151_v12 }
 0x23d   :  { %883 = vmatprep.subr.bf16.mxu0 %v7958_v15  ;;  %v7027_v15 = vcombine.high %v1147_v11, %v1151_v12 }
 0x240   :  { %884 = vmatpush1.bf16.msra.mxu0 %v7956_v16  ;;  %v7024_v16 = vcombine.low %v1146_v9, %v1150_v10  ;;  %v1207_v10 = vld [vmem:[#allocation14 + $0x328] sm:$0xff] }
 0x241   :  { %885 = vmatprep.subr.bf16.mxu0 %v7961_v17  ;;  %v1154_v17 = vld [vmem:[#allocation14 + $0x180] sm:$0xff] }
 0x242   :  { %2653 = vmatpush1.bf16.msra.mxu1 %v7024_v16 }
 0x244   :  { %886 = vmatpush1.bf16.msra.mxu0 %v7959_v18  ;;  %v1158_v18 = vld [vmem:[#allocation14 + $0x1a0] sm:$0xff] }
 0x245   :  { %887 = vmatprep.subr.bf16.mxu0 %v7964_v19  ;;  %v1155_v19 = vld [vmem:[#allocation14 + $0x188] sm:$0xff] }
 0x248   :  { %888 = vmatpush1.bf16.msra.mxu0 %v7962_v20  ;;  %v7033_v20 = vcombine.high %v1154_v17, %v1158_v18 }
 0x249   :  { %889 = vmatprep.subr.bf16.mxu0 %v7967_v21  ;;  %v1159_v21 = vld [vmem:[#allocation14 + $0x1a8] sm:$0xff] }
 0x24a   :  { %2654 = vmatprep.subr.bf16.mxu1 %v7033_v20  ;;  %v1210_v20 = vld [vmem:[#allocation14 + $0x340] sm:$0xff] }
 0x24c   :  { %890 = vmatpush1.bf16.msra.mxu0 %v7965_v22  ;;  %v7034_v22 = vcombine.low %v1155_v19, %v1159_v21 }
 0x24d   :  { %891 = vmatprep.subr.bf16.mxu0 %v7970_v23  ;;  %v7035_v23 = vcombine.high %v1155_v19, %v1159_v21  ;;  %v1214_v21 = vld [vmem:[#allocation14 + $0x360] sm:$0xff] }
 0x250   :  { %892 = vmatpush1.bf16.msra.mxu0 %v7968_v24  ;;  %v7032_v24 = vcombine.low %v1154_v17, %v1158_v18 }
 0x251   :  { %893 = vmatprep.subr.bf16.mxu0 %v7973_v25  ;;  %v1162_v25 = vld [vmem:[#allocation14 + $0x1c0] sm:$0xff] }
 0x252   :  { %2655 = vmatpush1.bf16.msra.mxu1 %v7032_v24  ;;  %v7089_v24 = vcombine.high %v1210_v20, %v1214_v21 }
 0x254   :  { %894 = vmatpush1.bf16.msra.mxu0 %v7971_v26  ;;  %v1166_v26 = vld [vmem:[#allocation14 + $0x1e0] sm:$0xff] }
 0x255   :  { %895 = vmatprep.subr.bf16.mxu0 %v7976_v27  ;;  %v1163_v27 = vld [vmem:[#allocation14 + $0x1c8] sm:$0xff]  ;;  %v7040_v34 = vcombine.low %v1162_v25, %v1166_v26 }
 0x256   :  { %v7042_v31 = vcombine.low %v1163_v27, %v1167_v29  ;;  %v7043_v33 = vcombine.high %v1163_v27, %v1167_v29  ;;  %v7088_v29 = vcombine.low %v1210_v20, %v1214_v21 }
 0x258   :  { %896 = vmatpush1.bf16.msra.mxu0 %v7974_v28  ;;  %v7041_v28 = vcombine.high %v1162_v25, %v1166_v26  ;;  %v1215_v25 = vld [vmem:[#allocation14 + $0x368] sm:$0xff] }
 0x259   :  { %2724 = vmatprep.subr.bf16.mxu0 %v6987_v37  ;;  %v1171_v37 = vld [vmem:[#allocation14 + $0x208] sm:$0xff] }
 0x25a   :  { %2656 = vmatprep.subr.bf16.mxu1 %v7041_v28  ;;  %v7050_v42 = vcombine.low %v1171_v37, %v1175_v41  ;;  %v7051_v43 = vcombine.high %v1171_v37, %v1175_v41  ;;  %v1223_v41 = vld [vmem:[#allocation14 + $0x3a8] sm:$0xff] }
 0x25b   :  { %898 = vmatmul.mubr.bf16.vlgmr.msra.gmra.mrb[8].mxu0 %v9219_v52  ;;  %v7010_v52 = vcombine.low %v1131_v61, %v1135_v54  ;;  %2657 = vmatpush1.bf16.msra.mxu1 %v7040_v34  ;;  %v1194_v54 = vld [vmem:[#allocation14 + $0x2c0] sm:$0xff] }
 0x25c   :  { %2725 = vmatpush1.bf16.msra.mxu0 %v6986_v36  ;;  %v1174_v36 = vld [vmem:[#allocation14 + $0x220] sm:$0xff] }
 0x25d   :  { %2726 = vmatprep.subr.bf16.mxu0 %v6995_v47  ;;  %v7049_v40 = vcombine.high %v1170_v35, %v1174_v36  ;;  %v7048_v44 = vcombine.low %v1170_v35, %v1174_v36  ;;  %v1179_v47 = vld [vmem:[#allocation14 + $0x248] sm:$0xff]  ;;  %v1218_v34 = vld [vmem:[#allocation14 + $0x380] sm:$0xff] }
 0x25e   :  { %v7058_v50 = vcombine.low %v1179_v47, %v1183_v49  ;;  %v7059_v51 = vcombine.high %v1179_v47, %v1183_v49  ;;  %v1222_v35 = vld [vmem:[#allocation14 + $0x3a0] sm:$0xff]  ;;  %v1219_v36 = vld [vmem:[#allocation14 + $0x388] sm:$0xff] }
 0x25f   :  { %2658 = vmatprep.subr.bf16.mxu1 %v7049_v40  ;;  %v7097_v40 = vcombine.high %v1218_v34, %v1222_v35  ;;  %v1230_v49 = vld [vmem:[#allocation14 + $0x3e0] sm:$0xff] }
 0x260   :  { %2727 = vmatpush1.bf16.msra.mxu0 %v6994_v46  ;;  %v1182_v46 = vld [vmem:[#allocation14 + $0x260] sm:$0xff]  ;;  %2659 = vmatpush1.bf16.msra.mxu1 %v7048_v44  ;;  %v7099_v44 = vcombine.high %v1219_v36, %v1223_v41 }
 0x261   :  { %2728 = vmatprep.subr.bf16.mxu0 %v7003_v57  ;;  %v7057_v48 = vcombine.high %v1178_v45, %v1182_v46  ;;  %v7056_v53 = vcombine.low %v1178_v45, %v1182_v46  ;;  %v1187_v57 = vld [vmem:[#allocation14 + $0x288] sm:$0xff]  ;;  %v7096_v45 = vcombine.low %v1218_v34, %v1222_v35 }
 0x262   :  { %v7066_v60 = vcombine.low %v1187_v57, %v1191_v59  ;;  %v7067_v61 = vcombine.high %v1187_v57, %v1191_v59 }
 0x263   :  { %2660 = vmatprep.subr.bf16.mxu1 %v7057_v48  ;;  %v1226_v48 = vld [vmem:[#allocation14 + $0x3c0] sm:$0xff] }
 0x264   :  { %2729 = vmatpush1.bf16.msra.mxu0 %v7002_v56  ;;  %v1190_v56 = vld [vmem:[#allocation14 + $0x2a0] sm:$0xff]  ;;  %2661 = vmatpush1.bf16.msra.mxu1 %v7056_v53  ;;  %v7105_v53 = vcombine.high %v1226_v48, %v1230_v49 }
 0x265   :  { %2730 = vmatprep.subr.bf16.mxu0 %v7011_v63  ;;  %v7065_v58 = vcombine.high %v1186_v55, %v1190_v56  ;;  %v7064_v62 = vcombine.low %v1186_v55, %v1190_v56  ;;  %v1195_v63 = vld [vmem:[#allocation14 + $0x2c8] sm:$0xff]  ;;  %v7104_v56 = vcombine.low %v1226_v48, %v1230_v49 }
 0x266   :  { %v7074_v2 = vcombine.low %v1195_v63, %v1199_v1  ;;  %v7075_v3 = vcombine.high %v1195_v63, %v1199_v1  ;;  %v1231_v55 = vld [vmem:[#allocation14 + $0x3e8] sm:$0xff] }
 0x267   :  { %2662 = vmatprep.subr.bf16.mxu1 %v7065_v58  ;;  %v9247_v1 = vld [vmem:[#allocation14 + $0x428] sm:$0xff] }
 0x268   :  { %2731 = vmatpush1.bf16.msra.mxu0 %v7010_v52  ;;  %v1198_v52 = vld [vmem:[#allocation14 + $0x2e0] sm:$0xff]  ;;  %2663 = vmatpush1.bf16.msra.mxu1 %v7064_v62 }
 0x269   :  { %2732 = vmatprep.subr.bf16.mxu0 %v7019_v7  ;;  %v7073_v0 = vcombine.high %v1194_v54, %v1198_v52  ;;  %v7072_v4 = vcombine.low %v1194_v54, %v1198_v52  ;;  %v1203_v7 = vld [vmem:[#allocation14 + $0x308] sm:$0xff]  ;;  %v9237_v62 = vld [vmem:[#allocation14 + $0x400] sm:$0xff] }
 0x26a   :  { %v7082_v13 = vcombine.low %v1203_v7, %v1207_v10  ;;  %v9239_v54 = vld [vmem:[#allocation14 + $0x420] sm:$0xff]  ;;  %v9241_v52 = vld [vmem:[#allocation14 + $0x408] sm:$0xff] }
 0x26b   :  { %2664 = vmatprep.subr.bf16.mxu1 %v7073_v0  ;;  %v7113_v0 = vcombine.high %v9237_v62, %v9239_v54 }
 0x26c   :  { %2733 = vmatpush1.bf16.msra.mxu0 %v7018_v6  ;;  %v1206_v6 = vld [vmem:[#allocation14 + $0x320] sm:$0xff]  ;;  %2665 = vmatpush1.bf16.msra.mxu1 %v7072_v4  ;;  %v7114_v4 = vcombine.low %v9241_v52, %v9247_v1 }
 0x26d   :  { %2734 = vmatprep.subr.bf16.mxu0 %v7027_v15  ;;  %v7081_v9 = vcombine.high %v1202_v5, %v1206_v6  ;;  %v7080_v15 = vcombine.low %v1202_v5, %v1206_v6  ;;  %v7115_v5 = vcombine.high %v9241_v52, %v9247_v1 }
 0x26f   :  { %2666 = vmatprep.subr.bf16.mxu1 %v7081_v9 }
 0x270   :  { %2735 = vmatpush1.bf16.msra.mxu0 %v7026_v14  ;;  %v7083_v14 = vcombine.high %v1203_v7, %v1207_v10  ;;  %2667 = vmatpush1.bf16.msra.mxu1 %v7080_v15 }
 0x271   :  { %2736 = vmatprep.subr.bf16.mxu0 %v7035_v23  ;;  %2668 = vmatprep.subr.bf16.mxu1 %v7089_v24 }
 0x274   :  { %2737 = vmatpush1.bf16.msra.mxu0 %v7034_v22  ;;  %v1211_v22 = vld [vmem:[#allocation14 + $0x348] sm:$0xff]  ;;  %2669 = vmatpush1.bf16.msra.mxu1 %v7088_v29 }
 0x275   :  { %2738 = vmatprep.subr.bf16.mxu0 %v7043_v33  ;;  %v7090_v27 = vcombine.low %v1211_v22, %v1215_v25  ;;  %v7091_v28 = vcombine.high %v1211_v22, %v1215_v25  ;;  %2670 = vmatprep.subr.bf16.mxu1 %v7097_v40 }
 0x278   :  { %2739 = vmatpush1.bf16.msra.mxu0 %v7042_v31  ;;  %2671 = vmatpush1.bf16.msra.mxu1 %v7096_v45 }
 0x279   :  { %2740 = vmatprep.subr.bf16.mxu0 %v7051_v43  ;;  %v7098_v43 = vcombine.low %v1219_v36, %v1223_v41  ;;  %2672 = vmatprep.subr.bf16.mxu1 %v7105_v53 }
 0x27c   :  { %2741 = vmatpush1.bf16.msra.mxu0 %v7050_v42  ;;  %2673 = vmatpush1.bf16.msra.mxu1 %v7104_v56 }
 0x27d   :  { %2742 = vmatprep.subr.bf16.mxu0 %v7059_v51  ;;  %2683 = vmatprep.subr.bf16.mxu1 %v7113_v0 }
 0x280   :  { %2743 = vmatpush1.bf16.msra.mxu0 %v7058_v50  ;;  %v1227_v50 = vld [vmem:[#allocation14 + $0x3c8] sm:$0xff] }
 0x281   :  { %2744 = vmatprep.subr.bf16.mxu0 %v7067_v61  ;;  %v7106_v58 = vcombine.low %v1227_v50, %v1231_v55  ;;  %v7107_v59 = vcombine.high %v1227_v50, %v1231_v55 }
 0x284   :  { %2745 = vmatpush1.bf16.msra.mxu0 %v7066_v60 }
 0x285   :  { %2746 = vmatprep.subr.bf16.mxu0 %v7075_v3  ;;  %v7112_v3 = vcombine.low %v9237_v62, %v9239_v54 }
 0x288   :  { %2747 = vmatpush1.bf16.msra.mxu0 %v7074_v2 }
 0x289   :  { %2748 = vmatprep.subr.bf16.mxu0 %v7083_v14 }
 0x28c   :  { %2749 = vmatpush1.bf16.msra.mxu0 %v7082_v13 }
 0x28d   :  { %2750 = vmatprep.subr.bf16.mxu0 %v7091_v28 }
 0x290   :  { %2751 = vmatpush1.bf16.msra.mxu0 %v7090_v27 }
 0x291   :  { %2752 = vmatprep.subr.bf16.mxu0 %v7099_v44 }
 0x294   :  { %2753 = vmatpush1.bf16.msra.mxu0 %v7098_v43 }
 0x295   :  { %2754 = vmatprep.subr.bf16.mxu0 %v7107_v59 }
 0x298   :  { %2755 = vmatpush1.bf16.msra.mxu0 %v7106_v58 }
 0x299   :  { %2765 = vmatprep.subr.bf16.mxu0 %v7115_v5 }
 0x2ee   :  { %v9223_v8 = vpop.f32.mrb[4].mxu0 }
 0x2ef   :  { %v908_v11 = vrot.slane %v9223_v8, 4  ;;  %v9226_v12 = vpop.f32.mrb[5].mxu0 }
 0x2f0   :  { %v914_v16 = vrot.slane %v9226_v12, 4  ;;  %v862_v17 = vpop.f32.mrb[6].mxu0 }
 0x2f1   :  { %v909_v18 = vadd.f32 %v908_v11, %v9223_v8  ;;  %v863_v19 = vpop.f32.mrb[7].mxu0 }
 0x2f2   :  { %v915_v23 = vadd.f32 %v914_v16, %v9226_v12 }
 0x2f3   :  { %v910_v26 = vrot.slane %v909_v18, 2 }
 0x2f4   :  { %v916_v31 = vrot.slane %v915_v23, 2 }
 0x2f5   :  { %v911_v33 = vadd.f32 %v910_v26, %v909_v18 }
 0x2f6   :  { %v917_v37 = vadd.f32 %v916_v31, %v915_v23 }
 0x2f7   :  { %v912_v42 = vrot.slane %v911_v33, 1 }
 0x2f8   :  { %v918_v46 = vrot.slane %v917_v37, 1 }
 0x2f9   :  { %v913_v47 = vadd.f32 %v912_v42, %v911_v33 }
 0x2fa   :  { %v919_v51 = vadd.f32 %v918_v46, %v917_v37 }
 0x2fb   :  { %v9231_v57 = vmul.f32 0.125, %v913_v47 }
 0x2fc   :  { %v9233_v60 = vmul.f32 0.125, %v919_v51 }
 0x2fd   :  { %v936_v61 = vsub.f32 %v9223_v8, %v9231_v57 }
 0x2fe   :  { %v937_v63 = vsub.f32 %v9226_v12, %v9233_v60 }
 0x2ff   :  { %v940_v2 = vmul.f32 %v936_v61, %v936_v61 }
 0x300   :  { %v941_v6 = vmul.f32 %v937_v63, %v937_v63 }
 0x301   :  { %v944_v7 = vrot.slane %v940_v2, 4 }
 0x302   :  { %v950_v9 = vrot.slane %v941_v6, 4 }
 0x303   :  { %v945_v10 = vadd.f32 %v944_v7, %v940_v2 }
 0x304   :  { %v951_v11 = vadd.f32 %v950_v9, %v941_v6 }
 0x305   :  { %v946_v13 = vrot.slane %v945_v10, 2 }
 0x306   :  { %v952_v14 = vrot.slane %v951_v11, 2 }
 0x307   :  { %v947_v15 = vadd.f32 %v946_v13, %v945_v10 }
 0x308   :  { %v953_v16 = vadd.f32 %v952_v14, %v951_v11 }
 0x309   :  { %v948_v17 = vrot.slane %v947_v15, 1 }
 0x30a   :  { %v954_v18 = vrot.slane %v953_v16, 1 }
 0x30b   :  { %v949_v19 = vadd.f32 %v948_v17, %v947_v15 }
 0x30c   :  { %v955_v20 = vadd.f32 %v954_v18, %v953_v16 }
 0x30d   :  { %v968_v21 = vmul.f32 0.125, %v949_v19 }
 0x30e   :  { %v969_v22 = vmul.f32 0.125, %v955_v20 }
 0x30f   :  { %v972_v23 = vadd.f32 1e-05, %v968_v21 }
 0x310   :  { %v973_v24 = vadd.f32 1e-05, %v969_v22  ;;  %v906_v22 = vld [vmem:[#allocation11] sm:$0xf] }
 0x311   :  { %8621 = vrsqrt.f32 %v972_v23 }
 0x312   :  { %8623 = vrsqrt.f32 %v973_v24  ;;  %v9259_v24 = vsub.s32 2, %v9200_v30 }
 0x31b   :  { %v8622_v25 = vpop.eup %8621 }
 0x31c   :  { %v8624_v26 = vpop.eup %8623 }
 0x31d   :  { %v984_v27 = vcombine.low %v8622_v25, %v8624_v26  ;;  %v9262_v25 = vsub.s32 3, %v9200_v30 }
 0x31f   :  { %v992_v19 = vrot.slane %v984_v27, %v9203_v32 }
 0x32e   :  { %v899_v28 = vpop.f32.mrb[8].mxu0 }
 0x32f   :  { %v920_v29 = vrot.slane %v899_v28, 4  ;;  %v901_v31 = vpop.f32.mrb[9].mxu0 }
 0x330   :  { %v926_v33 = vrot.slane %v901_v31, 4  ;;  %v903_v34 = vpop.f32.mrb[10].mxu0 }
 0x331   :  { %v921_v35 = vadd.f32 %v920_v29, %v899_v28  ;;  %v904_v36 = vpop.f32.mrb[11].mxu0 }
 0x332   :  { %v927_v37 = vadd.f32 %v926_v33, %v901_v31 }
 0x333   :  { %v922_v40 = vrot.slane %v921_v35, 2 }
 0x334   :  { %v928_v41 = vrot.slane %v927_v37, 2 }
 0x335   :  { %v923_v42 = vadd.f32 %v922_v40, %v921_v35 }
 0x336   :  { %v929_v43 = vadd.f32 %v928_v41, %v927_v37 }
 0x337   :  { %v924_v44 = vrot.slane %v923_v42, 1 }
 0x338   :  { %v930_v45 = vrot.slane %v929_v43, 1 }
 0x339   :  { %v925_v46 = vadd.f32 %v924_v44, %v923_v42 }
 0x33a   :  { %v931_v47 = vadd.f32 %v930_v45, %v929_v43 }
 0x33b   :  { %v934_v48 = vmul.f32 0.125, %v925_v46 }
 0x33c   :  { %v935_v49 = vmul.f32 0.125, %v931_v47 }
 0x33d   :  { %v938_v50 = vsub.f32 %v899_v28, %v934_v48 }
 0x33e   :  { %v939_v51 = vsub.f32 %v901_v31, %v935_v49 }
 0x33f   :  { %v942_v53 = vmul.f32 %v938_v50, %v938_v50 }
 0x340   :  { %v943_v55 = vmul.f32 %v939_v51, %v939_v51 }
 0x341   :  { %v956_v56 = vrot.slane %v942_v53, 4 }
 0x342   :  { %v962_v58 = vrot.slane %v943_v55, 4 }
 0x343   :  { %v957_v59 = vadd.f32 %v956_v56, %v942_v53  ;;  %v907_v53 = vld [vmem:[#allocation13] sm:$0xf] }
 0x344   :  { %v963_v61 = vadd.f32 %v962_v58, %v943_v55 }
 0x345   :  { %v958_v63 = vrot.slane %v957_v59, 2 }
 0x346   :  { %v964_v0 = vrot.slane %v963_v61, 2 }
 0x347   :  { %v959_v2 = vadd.f32 %v958_v63, %v957_v59 }
 0x348   :  { %v965_v5 = vadd.f32 %v964_v0, %v963_v61 }
 0x349   :  { %v960_v6 = vrot.slane %v959_v2, 1 }
 0x34a   :  { %v966_v7 = vrot.slane %v965_v5, 1 }
 0x34b   :  { %v961_v9 = vadd.f32 %v960_v6, %v959_v2  ;;  %v1242_v2 = vld [vmem:[#allocation14 + $0x440] sm:$0xff] }
 0x34c   :  { %v967_v10 = vadd.f32 %v966_v7, %v965_v5  ;;  %v1246_v6 = vld [vmem:[#allocation14 + $0x460] sm:$0xff]  ;;  %v1243_v7 = vld [vmem:[#allocation14 + $0x448] sm:$0xff] }
 0x34d   :  { %v970_v11 = vmul.f32 0.125, %v961_v9  ;;  %v1247_v9 = vld [vmem:[#allocation14 + $0x468] sm:$0xff] }
 0x34e   :  { %v971_v13 = vmul.f32 0.125, %v967_v10 }
 0x34f   :  { %v974_v14 = vadd.f32 1e-05, %v970_v11 }
 0x350   :  { %v975_v15 = vadd.f32 1e-05, %v971_v13  ;;  %v1250_v13 = vld [vmem:[#allocation14 + $0x480] sm:$0xff] }
 0x351   :  { %8625 = vrsqrt.f32 %v974_v14  ;;  %v7121_v14 = vcombine.high %v1242_v2, %v1246_v6 }
 0x352   :  { %8627 = vrsqrt.f32 %v975_v15  ;;  %v7123_v15 = vcombine.high %v1243_v7, %v1247_v9 }
 0x35b   :  { %v8626_v16 = vpop.eup %8625 }
 0x35c   :  { %v8628_v17 = vpop.eup %8627 }
 0x35d   :  { %v985_v18 = vcombine.low %v8626_v16, %v8628_v17  ;;  %v1254_v16 = vld [vmem:[#allocation14 + $0x4a0] sm:$0xff]  ;;  %v1251_v17 = vld [vmem:[#allocation14 + $0x488] sm:$0xff] }
 0x35e   :  { %v7128_v62 = vcombine.low %v1250_v13, %v1254_v16 }
 0x35f   :  { %v999_v20 = vrot.slane %v985_v18, %v9203_v32  ;;  %v1255_v18 = vld [vmem:[#allocation14 + $0x4a8] sm:$0xff] }
 0x360   :  { %v7130_v54 = vcombine.low %v1251_v17, %v1255_v18 }
 0x361   :  { %v1000_v21 = vcombine.low %v992_v19, %v999_v20  ;;  %v7120_v20 = vcombine.low %v1242_v2, %v1246_v6  ;;  %v1302_v6 = vld [vmem:[#allocation14 + $0x620] sm:$0xff] }
 0x363   :  { %v1007_v23 = vrot.slane %v1000_v21, %v9203_v32  ;;  %v7122_v21 = vcombine.low %v1243_v7, %v1247_v9  ;;  %v1299_v7 = vld [vmem:[#allocation14 + $0x608] sm:$0xff] }
 0x364   :  { %v1303_v9 = vld [vmem:[#allocation14 + $0x628] sm:$0xff] }
 0x365   :  { %v1009_v26 = vmul.f32 %v1007_v23, %v906_v22  ;;  %v7129_v22 = vcombine.high %v1250_v13, %v1254_v16  ;;  %v7131_v23 = vcombine.high %v1251_v17, %v1255_v18  ;;  %v7179_v16 = vcombine.high %v1299_v7, %v1303_v9  ;;  %v1306_v17 = vld [vmem:[#allocation14 + $0x640] sm:$0xff] }
 0x366   :  { %v1310_v18 = vld [vmem:[#allocation14 + $0x660] sm:$0xff] }
 0x367   :  { %v1014_v29 = vrot.slane %v1009_v26, %v9208_v38  ;;  %v1018_v33 = vrot.slane %v1009_v26, %v9211_v39  ;;  %v1022_v34 = vrot.slane %v1009_v26, %v9259_v24  ;;  %v1026_v27 = vrot.slane %v1009_v26, %v9262_v25  ;;  %v1258_v26 = vld [vmem:[#allocation14 + $0x4c0] sm:$0xff] }
 0x369   :  { %v1031_v35 = vmul.f32 %v1014_v29, %v9231_v57  ;;  %v1032_v36 = vmul.f32 %v1018_v33, %v9233_v60  ;;  %v1033_v37 = vmul.f32 %v1022_v34, %v934_v48  ;;  %v1034_v40 = vmul.f32 %v1026_v27, %v935_v49 }
 0x36a   :  { %v1068_v41 = vmul.f32 %v1026_v27, %v901_v31  ;;  %v1066_v42 = vmul.f32 %v1018_v33, %v9226_v12  ;;  %v1065_v43 = vmul.f32 %v1014_v29, %v9223_v8  ;;  %v1067_v44 = vmul.f32 %v1022_v34, %v899_v28  ;;  %v1262_v29 = vld [vmem:[#allocation14 + $0x4e0] sm:$0xff]  ;;  %v1259_v33 = vld [vmem:[#allocation14 + $0x4c8] sm:$0xff] }
 0x36b   :  { %v1039_v45 = vcombine.low %v1031_v35, %v1032_v36  ;;  %v1040_v46 = vcombine.low %v1033_v37, %v1034_v40  ;;  %v1263_v34 = vld [vmem:[#allocation14 + $0x4e8] sm:$0xff]  ;;  %v7137_v52 = vcombine.high %v1258_v26, %v1262_v29  ;;  %v7136_v36 = vcombine.low %v1258_v26, %v1262_v29 }
 0x36c   :  { %v7139_v1 = vcombine.high %v1259_v33, %v1263_v34  ;;  %v1267_v27 = vld [vmem:[#allocation14 + $0x508] sm:$0xff]  ;;  %v7138_v37 = vcombine.low %v1259_v33, %v1263_v34  ;;  %v7185_v26 = vcombine.high %v1306_v17, %v1310_v18  ;;  %v1314_v33 = vld [vmem:[#allocation14 + $0x680] sm:$0xff] }
 0x36d   :  { %v1047_v47 = vrot.slane %v1039_v45, %v9203_v32  ;;  %v1054_v50 = vrot.slane %v1040_v46, %v9203_v32  ;;  %v1271_v35 = vld [vmem:[#allocation14 + $0x528] sm:$0xff]  ;;  %v1318_v34 = vld [vmem:[#allocation14 + $0x6a0] sm:$0xff] }
 0x36e   :  { %v1279_v45 = vld [vmem:[#allocation14 + $0x568] sm:$0xff] }
 0x36f   :  { %v1055_v51 = vcombine.low %v1047_v47, %v1054_v50  ;;  %v7146_v47 = vcombine.low %v1267_v27, %v1271_v35 }
 0x371   :  { %v1062_v57 = vrot.slane %v1055_v51, %v9203_v32 }
 0x373   :  { %v1064_v55 = vsub.f32 %v907_v53, %v1062_v57  ;;  %v1282_v53 = vld [vmem:[#allocation14 + $0x580] sm:$0xff] }
 0x374   :  { %v1286_v57 = vld [vmem:[#allocation14 + $0x5a0] sm:$0xff] }
 0x375   :  { %v1085_v60 = vrot.slane %v1064_v55, %v9262_v25  ;;  %v1077_v31 = vrot.slane %v1064_v55, %v9211_v39  ;;  %v1073_v12 = vrot.slane %v1064_v55, %v9208_v38  ;;  %v1081_v8 = vrot.slane %v1064_v55, %v9259_v24  ;;  %v1283_v55 = vld [vmem:[#allocation14 + $0x588] sm:$0xff] }
 0x377   :  { %v1093_v28 = vadd.f32 %v1085_v60, %v1068_v41  ;;  %v1091_v48 = vadd.f32 %v1077_v31, %v1066_v42  ;;  %v1090_v49 = vadd.f32 %v1073_v12, %v1065_v43  ;;  %v9279_v56 = vadd.f32 %v1081_v8, %v1067_v44  ;;  %v1274_v42 = vld [vmem:[#allocation14 + $0x540] sm:$0xff]  ;;  %v1275_v44 = vld [vmem:[#allocation14 + $0x548] sm:$0xff] }
 0x378   :  { %v7147_v41 = vcombine.high %v1267_v27, %v1271_v35  ;;  %v1278_v43 = vld [vmem:[#allocation14 + $0x560] sm:$0xff]  ;;  %v7155_v51 = vcombine.high %v1275_v44, %v1279_v45  ;;  %v1287_v60 = vld [vmem:[#allocation14 + $0x5a8] sm:$0xff]  ;;  %v7154_v12 = vcombine.low %v1275_v44, %v1279_v45  ;;  %v7161_v8 = vcombine.high %v1282_v53, %v1286_v57 }
 0x379   :  { %v1097_v58 = vmul.f32 0.2, %v1093_v28  ;;  %v1095_v59 = vmul.f32 0.2, %v1091_v48  ;;  %v1094_v61 = vmul.f32 0.2, %v1090_v49  ;;  %v7153_v50 = vcombine.high %v1274_v42, %v1278_v43 }
 0x37a   :  { %v7152_v31 = vcombine.low %v1274_v42, %v1278_v43  ;;  %v1322_v27 = vld [vmem:[#allocation14 + $0x6c0] sm:$0xff] }
 0x37b   :  { %v1099_v63 = vmax.f32 %v1091_v48, %v1095_v59  ;;  %v1098_v0 = vmax.f32 %v1090_v49, %v1094_v61  ;;  %v1101_v5 = vmax.f32 %v1093_v28, %v1097_v58  ;;  %v7163_v28 = vcombine.high %v1283_v55, %v1287_v60  ;;  %v1290_v48 = vld [vmem:[#allocation14 + $0x5c0] sm:$0xff]  ;;  %v1291_v58 = vld [vmem:[#allocation14 + $0x5c8] sm:$0xff] }
 0x37c   :  { %v1294_v49 = vld [vmem:[#allocation14 + $0x5e0] sm:$0xff]  ;;  %v1295_v59 = vld [vmem:[#allocation14 + $0x5e8] sm:$0xff]  ;;  %v7160_v61 = vcombine.low %v1282_v53, %v1286_v57 }
 0x37d   :  { %v9281_v10 = vpack.c.bf16 %v1099_v63, %v1099_v63  ;;  %v9283_v11 = vpack.c.bf16 %v1098_v0, %v1098_v0  ;;  %v9289_v19 = vpack.c.bf16 %v1101_v5, %v1101_v5  ;;  %v7162_v63 = vcombine.low %v1283_v55, %v1287_v60  ;;  %v1298_v5 = vld [vmem:[#allocation14 + $0x600] sm:$0xff] }
 0x37e   :  { %v7169_v0 = vcombine.high %v1290_v48, %v1294_v49  ;;  %v7171_v2 = vcombine.high %v1291_v58, %v1295_v59  ;;  %v7168_v13 = vcombine.low %v1290_v48, %v1294_v49  ;;  %v1326_v35 = vld [vmem:[#allocation14 + $0x6e0] sm:$0xff] }
 0x37f   :  { %2674 = vmatprep.mubr.bf16.mxu1 %v9281_v10  ;;  %2756 = vmatprep.mubr.bf16.mxu0 %v9281_v10  ;;  %v7201_v42 = vcombine.high %v1322_v27, %v1326_v35  ;;  %v1330_v44 = vld [vmem:[#allocation14 + $0x700] sm:$0xff] }
 0x380   :  { %2675 = vmatmul.mubr.bf16.vlgmr.msra.gmra.mrb[0].mxu1 %v9283_v11  ;;  %2757 = vmatmul.mubr.bf16.vlgmr.msra.gmra.mrb[12].mxu0 %v9283_v11  ;;  %v1334_v45 = vld [vmem:[#allocation14 + $0x720] sm:$0xff] }
 0x381   :  { %2684 = vmatpush1.bf16.msra.mxu1 %v7112_v3  ;;  %2766 = vmatpush1.bf16.msra.mxu0 %v7114_v4  ;;  %v1266_v3 = vld [vmem:[#allocation14 + $0x500] sm:$0xff]  ;;  %v7209_v53 = vcombine.high %v1330_v44, %v1334_v45 }
 0x382   :  { %2715 = vmatprep.mubr.bf16.mxu1 %v9289_v19  ;;  %2797 = vmatprep.mubr.bf16.mxu0 %v9289_v19  ;;  %v1270_v4 = vld [vmem:[#allocation14 + $0x520] sm:$0xff] }
 0x383   :  { %2685 = vmatprep.subr.bf16.mxu1 %v7121_v14  ;;  %2767 = vmatprep.subr.bf16.mxu0 %v7123_v15  ;;  %v7145_v40 = vcombine.high %v1266_v3, %v1270_v4  ;;  %v7144_v46 = vcombine.low %v1266_v3, %v1270_v4  ;;  %v7170_v14 = vcombine.low %v1291_v58, %v1295_v59  ;;  %v1338_v55 = vld [vmem:[#allocation14 + $0x740] sm:$0xff] }
 0x384   :  { %v7177_v15 = vcombine.high %v1298_v5, %v1302_v6  ;;  %v7193_v3 = vcombine.high %v1314_v33, %v1318_v34  ;;  %v1342_v60 = vld [vmem:[#allocation14 + $0x760] sm:$0xff] }
 0x385   :  { %2686 = vmatpush1.bf16.msra.mxu1 %v7120_v20  ;;  %2768 = vmatpush1.bf16.msra.mxu0 %v7122_v21  ;;  %v1307_v20 = vld [vmem:[#allocation14 + $0x648] sm:$0xff]  ;;  %v7217_v48 = vcombine.high %v1338_v55, %v1342_v60  ;;  %v1346_v58 = vld [vmem:[#allocation14 + $0x780] sm:$0xff] }
 0x386   :  { %2687 = vmatprep.subr.bf16.mxu1 %v7129_v22  ;;  %2769 = vmatprep.subr.bf16.mxu0 %v7131_v23  ;;  %v1311_v21 = vld [vmem:[#allocation14 + $0x668] sm:$0xff]  ;;  %v7176_v22 = vcombine.low %v1298_v5, %v1302_v6  ;;  %v7178_v23 = vcombine.low %v1299_v7, %v1303_v9  ;;  %v1350_v59 = vld [vmem:[#allocation14 + $0x7a0] sm:$0xff] }
 0x387   :  { %v7187_v29 = vcombine.high %v1307_v20, %v1311_v21  ;;  %v7225_v5 = vcombine.high %v1346_v58, %v1350_v59  ;;  %v1354_v7 = vld [vmem:[#allocation14 + $0x7c0] sm:$0xff] }
 0x388   :  { %v1358_v9 = vld [vmem:[#allocation14 + $0x7e0] sm:$0xff] }
 0x389   :  { %2688 = vmatpush1.bf16.msra.mxu1 %v7128_v62  ;;  %2770 = vmatpush1.bf16.msra.mxu0 %v7130_v54  ;;  %v1315_v62 = vld [vmem:[#allocation14 + $0x688] sm:$0xff] }
 0x38a   :  { %2689 = vmatprep.subr.bf16.mxu1 %v7137_v52  ;;  %2771 = vmatprep.subr.bf16.mxu0 %v7139_v1  ;;  %v1319_v54 = vld [vmem:[#allocation14 + $0x6a8] sm:$0xff]  ;;  %v7184_v52 = vcombine.low %v1306_v17, %v1310_v18  ;;  %v7186_v1 = vcombine.low %v1307_v20, %v1311_v21  ;;  %v7233_v17 = vcombine.high %v1354_v7, %v1358_v9  ;;  %v1096_v20 = vmul.f32 0.2, %v9279_v56  ;;  %v1108_v21 = vld [vmem:[#allocation14 + $0x10] sm:$0xff] }
 0x38b   :  { %v7195_v4 = vcombine.high %v1315_v62, %v1319_v54 }
 0x38d   :  { %2690 = vmatpush1.bf16.msra.mxu1 %v7136_v36  ;;  %2772 = vmatpush1.bf16.msra.mxu0 %v7138_v37  ;;  %v1323_v36 = vld [vmem:[#allocation14 + $0x6c8] sm:$0xff] }
 0x38e   :  { %2691 = vmatprep.subr.bf16.mxu1 %v7145_v40  ;;  %2773 = vmatprep.subr.bf16.mxu0 %v7147_v41  ;;  %v1327_v37 = vld [vmem:[#allocation14 + $0x6e8] sm:$0xff]  ;;  %v7192_v40 = vcombine.low %v1314_v33, %v1318_v34  ;;  %v7194_v41 = vcombine.low %v1315_v62, %v1319_v54  ;;  %v1100_v34 = vmax.f32 %v9279_v56, %v1096_v20  ;;  %v1125_v56 = vld [vmem:[#allocation14 + $0x98] sm:$0xff] }
 0x38f   :  { %v7203_v43 = vcombine.high %v1323_v36, %v1327_v37 }
 0x391   :  { %2692 = vmatpush1.bf16.msra.mxu1 %v7144_v46  ;;  %2774 = vmatpush1.bf16.msra.mxu0 %v7146_v47  ;;  %v1331_v46 = vld [vmem:[#allocation14 + $0x708] sm:$0xff] }
 0x392   :  { %2693 = vmatprep.subr.bf16.mxu1 %v7153_v50  ;;  %2775 = vmatprep.subr.bf16.mxu0 %v7155_v51  ;;  %v1335_v47 = vld [vmem:[#allocation14 + $0x728] sm:$0xff]  ;;  %v7200_v50 = vcombine.low %v1322_v27, %v1326_v35  ;;  %v7202_v51 = vcombine.low %v1323_v36, %v1327_v37  ;;  %v9301_v35 = vpack.c.bf16 %v1100_v34, %v1100_v34 }
 0x393   :  { %v7211_v57 = vcombine.high %v1331_v46, %v1335_v47 }
 0x395   :  { %2694 = vmatpush1.bf16.msra.mxu1 %v7152_v31  ;;  %2776 = vmatpush1.bf16.msra.mxu0 %v7154_v12  ;;  %v1339_v31 = vld [vmem:[#allocation14 + $0x748] sm:$0xff] }
 0x396   :  { %2695 = vmatprep.subr.bf16.mxu1 %v7161_v8  ;;  %2777 = vmatprep.subr.bf16.mxu0 %v7163_v28  ;;  %v1343_v12 = vld [vmem:[#allocation14 + $0x768] sm:$0xff]  ;;  %v7208_v8 = vcombine.low %v1330_v44, %v1334_v45  ;;  %v7210_v28 = vcombine.low %v1331_v46, %v1335_v47 }
 0x397   :  { %v7219_v49 = vcombine.high %v1339_v31, %v1343_v12 }
 0x399   :  { %2696 = vmatpush1.bf16.msra.mxu1 %v7160_v61  ;;  %2778 = vmatpush1.bf16.msra.mxu0 %v7162_v63  ;;  %v1347_v61 = vld [vmem:[#allocation14 + $0x788] sm:$0xff] }
 0x39a   :  { %2697 = vmatprep.subr.bf16.mxu1 %v7169_v0  ;;  %2779 = vmatprep.subr.bf16.mxu0 %v7171_v2  ;;  %v1351_v63 = vld [vmem:[#allocation14 + $0x7a8] sm:$0xff]  ;;  %v7216_v0 = vcombine.low %v1338_v55, %v1342_v60  ;;  %v7218_v2 = vcombine.low %v1339_v31, %v1343_v12 }
 0x39b   :  { %v7227_v6 = vcombine.high %v1347_v61, %v1351_v63 }
 0x39d   :  { %2698 = vmatpush1.bf16.msra.mxu1 %v7168_v13  ;;  %2780 = vmatpush1.bf16.msra.mxu0 %v7170_v14  ;;  %v1355_v13 = vld [vmem:[#allocation14 + $0x7c8] sm:$0xff] }
 0x39e   :  { %2699 = vmatprep.subr.bf16.mxu1 %v7177_v15  ;;  %2781 = vmatprep.subr.bf16.mxu0 %v7179_v16  ;;  %v1359_v14 = vld [vmem:[#allocation14 + $0x7e8] sm:$0xff]  ;;  %v7224_v15 = vcombine.low %v1346_v58, %v1350_v59  ;;  %v7226_v16 = vcombine.low %v1347_v61, %v1351_v63  ;;  %v1148_v63 = vld [vmem:[#allocation14 + $0x150] sm:$0xff] }
 0x39f   :  { %v7235_v18 = vcombine.high %v1355_v13, %v1359_v14  ;;  %v7234_v33 = vcombine.low %v1355_v13, %v1359_v14  ;;  %v1156_v14 = vld [vmem:[#allocation14 + $0x190] sm:$0xff] }
 0x3a1   :  { %2700 = vmatpush1.bf16.msra.mxu1 %v7176_v22  ;;  %2782 = vmatpush1.bf16.msra.mxu0 %v7178_v23  ;;  %v1112_v22 = vld [vmem:[#allocation14 + $0x30] sm:$0xff]  ;;  %v1109_v23 = vld [vmem:[#allocation14 + $0x18] sm:$0xff] }
 0x3a2   :  { %2701 = vmatprep.subr.bf16.mxu1 %v7185_v26  ;;  %2783 = vmatprep.subr.bf16.mxu0 %v7187_v29  ;;  %v1113_v26 = vld [vmem:[#allocation14 + $0x38] sm:$0xff]  ;;  %v7232_v29 = vcombine.low %v1354_v7, %v1358_v9  ;;  %v6989_v62 = vcombine.high %v1108_v21, %v1112_v22  ;;  %v6988_v27 = vcombine.low %v1108_v21, %v1112_v22 }
 0x3a3   :  { %v6991_v54 = vcombine.high %v1109_v23, %v1113_v26  ;;  %v6990_v36 = vcombine.low %v1109_v23, %v1113_v26  ;;  %v1164_v23 = vld [vmem:[#allocation14 + $0x1d0] sm:$0xff] }
 0x3a4   :  { %v1168_v26 = vld [vmem:[#allocation14 + $0x1f0] sm:$0xff] }
 0x3a5   :  { %2702 = vmatpush1.bf16.msra.mxu1 %v7184_v52  ;;  %2784 = vmatpush1.bf16.msra.mxu0 %v7186_v1  ;;  %v1116_v52 = vld [vmem:[#allocation14 + $0x50] sm:$0xff] }
 0x3a6   :  { %2703 = vmatprep.subr.bf16.mxu1 %v7193_v3  ;;  %2785 = vmatprep.subr.bf16.mxu0 %v7195_v4  ;;  %v1120_v1 = vld [vmem:[#allocation14 + $0x70] sm:$0xff]  ;;  %v1117_v3 = vld [vmem:[#allocation14 + $0x58] sm:$0xff] }
 0x3a7   :  { %v1121_v4 = vld [vmem:[#allocation14 + $0x78] sm:$0xff]  ;;  %v6997_v37 = vcombine.high %v1116_v52, %v1120_v1  ;;  %v6996_v44 = vcombine.low %v1116_v52, %v1120_v1  ;;  %v1172_v1 = vld [vmem:[#allocation14 + $0x210] sm:$0xff] }
 0x3a8   :  { %v6998_v45 = vcombine.low %v1117_v3, %v1121_v4 }
 0x3a9   :  { %2704 = vmatpush1.bf16.msra.mxu1 %v7192_v40  ;;  %2786 = vmatpush1.bf16.msra.mxu0 %v7194_v41  ;;  %v6999_v40 = vcombine.high %v1117_v3, %v1121_v4  ;;  %v1124_v41 = vld [vmem:[#allocation14 + $0x90] sm:$0xff]  ;;  %v1173_v4 = vld [vmem:[#allocation14 + $0x218] sm:$0xff] }
 0x3aa   :  { %2705 = vmatprep.subr.bf16.mxu1 %v7201_v42  ;;  %2787 = vmatprep.subr.bf16.mxu0 %v7203_v43  ;;  %v1128_v42 = vld [vmem:[#allocation14 + $0xb0] sm:$0xff]  ;;  %v1129_v43 = vld [vmem:[#allocation14 + $0xb8] sm:$0xff] }
 0x3ab   :  { %v7005_v46 = vcombine.high %v1124_v41, %v1128_v42  ;;  %v7007_v47 = vcombine.high %v1125_v56, %v1129_v43  ;;  %v7004_v55 = vcombine.low %v1124_v41, %v1128_v42  ;;  %v7006_v60 = vcombine.low %v1125_v56, %v1129_v43  ;;  %v1176_v3 = vld [vmem:[#allocation14 + $0x230] sm:$0xff]  ;;  %v1181_v43 = vld [vmem:[#allocation14 + $0x258] sm:$0xff] }
 0x3ac   :  { %v1180_v42 = vld [vmem:[#allocation14 + $0x250] sm:$0xff] }
 0x3ad   :  { %2706 = vmatpush1.bf16.msra.mxu1 %v7200_v50  ;;  %2788 = vmatpush1.bf16.msra.mxu0 %v7202_v51  ;;  %v1132_v50 = vld [vmem:[#allocation14 + $0xd0] sm:$0xff] }
 0x3ae   :  { %2707 = vmatprep.subr.bf16.mxu1 %v7209_v53  ;;  %2789 = vmatprep.subr.bf16.mxu0 %v7211_v57  ;;  %v1136_v51 = vld [vmem:[#allocation14 + $0xf0] sm:$0xff]  ;;  %v1133_v53 = vld [vmem:[#allocation14 + $0xd8] sm:$0xff] }
 0x3af   :  { %v1137_v57 = vld [vmem:[#allocation14 + $0xf8] sm:$0xff]  ;;  %v7013_v31 = vcombine.high %v1132_v50, %v1136_v51  ;;  %v1184_v56 = vld [vmem:[#allocation14 + $0x270] sm:$0xff] }
 0x3b0   :  { %v7015_v12 = vcombine.high %v1133_v53, %v1137_v57  ;;  %v7014_v58 = vcombine.low %v1133_v53, %v1137_v57  ;;  %v1192_v53 = vld [vmem:[#allocation14 + $0x2b0] sm:$0xff]  ;;  %v1189_v57 = vld [vmem:[#allocation14 + $0x298] sm:$0xff] }
 0x3b1   :  { %2708 = vmatpush1.bf16.msra.mxu1 %v7208_v8  ;;  %2790 = vmatpush1.bf16.msra.mxu0 %v7210_v28  ;;  %v1140_v8 = vld [vmem:[#allocation14 + $0x110] sm:$0xff] }
 0x3b2   :  { %2709 = vmatprep.subr.bf16.mxu1 %v7217_v48  ;;  %2791 = vmatprep.subr.bf16.mxu0 %v7219_v49  ;;  %v1144_v28 = vld [vmem:[#allocation14 + $0x130] sm:$0xff]  ;;  %v1145_v48 = vld [vmem:[#allocation14 + $0x138] sm:$0xff]  ;;  %v7012_v49 = vcombine.low %v1132_v50, %v1136_v51 }
 0x3b3   :  { %v7021_v59 = vcombine.high %v1140_v8, %v1144_v28  ;;  %v1188_v51 = vld [vmem:[#allocation14 + $0x290] sm:$0xff] }
 0x3b5   :  { %2710 = vmatpush1.bf16.msra.mxu1 %v7216_v0  ;;  %2792 = vmatpush1.bf16.msra.mxu0 %v7218_v2  ;;  %v1152_v0 = vld [vmem:[#allocation14 + $0x170] sm:$0xff]  ;;  %v1149_v2 = vld [vmem:[#allocation14 + $0x158] sm:$0xff] }
 0x3b6   :  { %2711 = vmatprep.subr.bf16.mxu1 %v7225_v5  ;;  %2793 = vmatprep.subr.bf16.mxu0 %v7227_v6  ;;  %v1153_v5 = vld [vmem:[#allocation14 + $0x178] sm:$0xff]  ;;  %v7020_v6 = vcombine.low %v1140_v8, %v1144_v28  ;;  %v7029_v9 = vcombine.high %v1148_v63, %v1152_v0  ;;  %v1196_v28 = vld [vmem:[#allocation14 + $0x2d0] sm:$0xff] }
 0x3b7   :  { %v7031_v13 = vcombine.high %v1149_v2, %v1153_v5  ;;  %v7030_v20 = vcombine.low %v1149_v2, %v1153_v5  ;;  %v1208_v2 = vld [vmem:[#allocation14 + $0x330] sm:$0xff]  ;;  %v1205_v5 = vld [vmem:[#allocation14 + $0x318] sm:$0xff] }
 0x3b9   :  { %2712 = vmatpush1.bf16.msra.mxu1 %v7224_v15  ;;  %2794 = vmatpush1.bf16.msra.mxu0 %v7226_v16  ;;  %v1160_v15 = vld [vmem:[#allocation14 + $0x1b0] sm:$0xff]  ;;  %v1157_v16 = vld [vmem:[#allocation14 + $0x198] sm:$0xff] }
 0x3ba   :  { %2713 = vmatprep.subr.bf16.mxu1 %v7233_v17  ;;  %2795 = vmatprep.subr.bf16.mxu0 %v7235_v18  ;;  %v1161_v17 = vld [vmem:[#allocation14 + $0x1b8] sm:$0xff]  ;;  %v7028_v18 = vcombine.low %v1148_v63, %v1152_v0  ;;  %v7037_v21 = vcombine.high %v1156_v14, %v1160_v15  ;;  %v7036_v34 = vcombine.low %v1156_v14, %v1160_v15  ;;  %v1204_v0 = vld [vmem:[#allocation14 + $0x310] sm:$0xff] }
 0x3bb   :  { %v7039_v22 = vcombine.high %v1157_v16, %v1161_v17  ;;  %v1212_v15 = vld [vmem:[#allocation14 + $0x350] sm:$0xff] }
 0x3bd   :  { %2714 = vmatpush1.bf16.msra.mxu1 %v7232_v29  ;;  %2796 = vmatpush1.bf16.msra.mxu0 %v7234_v33  ;;  %v1165_v29 = vld [vmem:[#allocation14 + $0x1d8] sm:$0xff] }
 0x3be   :  { %2806 = vmatprep.subr.bf16.mxu1 %v6989_v62  ;;  %2888 = vmatprep.subr.bf16.mxu0 %v6991_v54  ;;  %v1169_v33 = vld [vmem:[#allocation14 + $0x1f8] sm:$0xff]  ;;  %v7038_v62 = vcombine.low %v1157_v16, %v1161_v17  ;;  %v7045_v54 = vcombine.high %v1164_v23, %v1168_v26  ;;  %v1216_v16 = vld [vmem:[#allocation14 + $0x370] sm:$0xff] }
 0x3bf   :  { %v7047_v52 = vcombine.high %v1165_v29, %v1169_v33  ;;  %v1213_v17 = vld [vmem:[#allocation14 + $0x358] sm:$0xff] }
 0x3c0   :  { %2716 = vmatmul.mubr.bf16.vlgmr.msra.gmra.mrb[0].mxu1 %v9301_v35  ;;  %2798 = vmatmul.mubr.bf16.vlgmr.msra.gmra.mrb[12].mxu0 %v9301_v35 }
 0x3c1   :  { %2807 = vmatpush1.bf16.msra.mxu1 %v6988_v27  ;;  %2838 = vmatprep.mubr.bf16.mxu1 %v9281_v10  ;;  %v1177_v27 = vld [vmem:[#allocation14 + $0x238] sm:$0xff] }
 0x3c2   :  { %2889 = vmatpush1.bf16.msra.mxu0 %v6990_v36  ;;  %2920 = vmatprep.mubr.bf16.mxu0 %v9281_v10  ;;  %v1141_v10 = vld [vmem:[#allocation14 + $0x118] sm:$0xff]  ;;  %v7044_v36 = vcombine.low %v1164_v23, %v1168_v26  ;;  %v7055_v41 = vcombine.high %v1173_v4, %v1177_v27  ;;  %v1220_v26 = vld [vmem:[#allocation14 + $0x390] sm:$0xff] }
 0x3c3   :  { %2808 = vmatprep.subr.bf16.mxu1 %v6997_v37  ;;  %2890 = vmatprep.subr.bf16.mxu0 %v6999_v40  ;;  %v7023_v61 = vcombine.high %v1141_v10, %v1145_v48  ;;  %v7022_v7 = vcombine.low %v1141_v10, %v1145_v48  ;;  %v7046_v37 = vcombine.low %v1165_v29, %v1169_v33  ;;  %v1200_v10 = vld [vmem:[#allocation14 + $0x2f0] sm:$0xff]  ;;  %v1197_v48 = vld [vmem:[#allocation14 + $0x2d8] sm:$0xff] }
 0x3c4   :  { %v7053_v40 = vcombine.high %v1172_v1, %v1176_v3  ;;  %v1224_v29 = vld [vmem:[#allocation14 + $0x3b0] sm:$0xff]  ;;  %v1221_v33 = vld [vmem:[#allocation14 + $0x398] sm:$0xff] }
 0x3c5   :  { %2809 = vmatpush1.bf16.msra.mxu1 %v6996_v44  ;;  %v1185_v44 = vld [vmem:[#allocation14 + $0x278] sm:$0xff] }
 0x3c6   :  { %2891 = vmatpush1.bf16.msra.mxu0 %v6998_v45  ;;  %2810 = vmatprep.subr.bf16.mxu1 %v7005_v46  ;;  %v7052_v45 = vcombine.low %v1172_v1, %v1176_v3  ;;  %v7054_v46 = vcombine.low %v1173_v4, %v1177_v27  ;;  %v7063_v50 = vcombine.high %v1181_v43, %v1185_v44  ;;  %v1228_v3 = vld [vmem:[#allocation14 + $0x3d0] sm:$0xff]  ;;  %v1229_v27 = vld [vmem:[#allocation14 + $0x3d8] sm:$0xff] }
 0x3c7   :  { %2892 = vmatprep.subr.bf16.mxu0 %v7007_v47  ;;  %v7061_v47 = vcombine.high %v1180_v42, %v1184_v56  ;;  %v1232_v4 = vld [vmem:[#allocation14 + $0x3f0] sm:$0xff] }
 0x3c9   :  { %2811 = vmatpush1.bf16.msra.mxu1 %v7004_v55  ;;  %v1193_v55 = vld [vmem:[#allocation14 + $0x2b8] sm:$0xff] }
 0x3ca   :  { %2893 = vmatpush1.bf16.msra.mxu0 %v7006_v60  ;;  %2812 = vmatprep.subr.bf16.mxu1 %v7013_v31  ;;  %v7060_v60 = vcombine.low %v1180_v42, %v1184_v56  ;;  %v7062_v31 = vcombine.low %v1181_v43, %v1185_v44  ;;  %v7071_v8 = vcombine.high %v1189_v57, %v1193_v55  ;;  %v1236_v56 = vld [vmem:[#allocation14 + $0x410] sm:$0xff]  ;;  %v1237_v44 = vld [vmem:[#allocation14 + $0x418] sm:$0xff] }
 0x3cb   :  { %2894 = vmatprep.subr.bf16.mxu0 %v7015_v12  ;;  %v7069_v12 = vcombine.high %v1188_v51, %v1192_v53  ;;  %v1240_v43 = vld [vmem:[#allocation14 + $0x430] sm:$0xff] }
 0x3cd   :  { %2813 = vmatpush1.bf16.msra.mxu1 %v7012_v49  ;;  %v1201_v49 = vld [vmem:[#allocation14 + $0x2f8] sm:$0xff] }
 0x3ce   :  { %2895 = vmatpush1.bf16.msra.mxu0 %v7014_v58  ;;  %2814 = vmatprep.subr.bf16.mxu1 %v7021_v59  ;;  %v7068_v58 = vcombine.low %v1188_v51, %v1192_v53  ;;  %v7070_v59 = vcombine.low %v1189_v57, %v1193_v55  ;;  %v7079_v63 = vcombine.high %v1197_v48, %v1201_v49  ;;  %v1244_v53 = vld [vmem:[#allocation14 + $0x450] sm:$0xff] }
 0x3cf   :  { %2896 = vmatprep.subr.bf16.mxu0 %v7023_v61  ;;  %v7077_v61 = vcombine.high %v1196_v28, %v1200_v10  ;;  %v1248_v57 = vld [vmem:[#allocation14 + $0x470] sm:$0xff]  ;;  %v7116_v55 = vcombine.low %v1236_v56, %v1240_v43 }
 0x3d1   :  { %2815 = vmatpush1.bf16.msra.mxu1 %v7020_v6  ;;  %v1209_v6 = vld [vmem:[#allocation14 + $0x338] sm:$0xff] }
 0x3d2   :  { %2897 = vmatpush1.bf16.msra.mxu0 %v7022_v7  ;;  %2816 = vmatprep.subr.bf16.mxu1 %v7029_v9  ;;  %v7076_v7 = vcombine.low %v1196_v28, %v1200_v10  ;;  %v7078_v9 = vcombine.low %v1197_v48, %v1201_v49  ;;  %v7087_v14 = vcombine.high %v1205_v5, %v1209_v6  ;;  %v1252_v28 = vld [vmem:[#allocation14 + $0x490] sm:$0xff]  ;;  %v1253_v49 = vld [vmem:[#allocation14 + $0x498] sm:$0xff] }
 0x3d3   :  { %2898 = vmatprep.subr.bf16.mxu0 %v7031_v13  ;;  %v7085_v13 = vcombine.high %v1204_v0, %v1208_v2  ;;  %v1256_v10 = vld [vmem:[#allocation14 + $0x4b0] sm:$0xff] }
 0x3d5   :  { %2817 = vmatpush1.bf16.msra.mxu1 %v7028_v18  ;;  %v1217_v18 = vld [vmem:[#allocation14 + $0x378] sm:$0xff] }
 0x3d6   :  { %2899 = vmatpush1.bf16.msra.mxu0 %v7030_v20  ;;  %2818 = vmatprep.subr.bf16.mxu1 %v7037_v21  ;;  %v7084_v20 = vcombine.low %v1204_v0, %v1208_v2  ;;  %v7086_v21 = vcombine.low %v1205_v5, %v1209_v6  ;;  %v7095_v23 = vcombine.high %v1213_v17, %v1217_v18  ;;  %v1260_v2 = vld [vmem:[#allocation14 + $0x4d0] sm:$0xff]  ;;  %v1261_v6 = vld [vmem:[#allocation14 + $0x4d8] sm:$0xff] }
 0x3d7   :  { %2900 = vmatprep.subr.bf16.mxu0 %v7039_v22  ;;  %v7093_v22 = vcombine.high %v1212_v15, %v1216_v16  ;;  %v1264_v5 = vld [vmem:[#allocation14 + $0x4f0] sm:$0xff] }
 0x3d9   :  { %2819 = vmatpush1.bf16.msra.mxu1 %v7036_v34  ;;  %v1225_v34 = vld [vmem:[#allocation14 + $0x3b8] sm:$0xff] }
 0x3da   :  { %2901 = vmatpush1.bf16.msra.mxu0 %v7038_v62  ;;  %2820 = vmatprep.subr.bf16.mxu1 %v7045_v54  ;;  %v7092_v62 = vcombine.low %v1212_v15, %v1216_v16  ;;  %v7094_v54 = vcombine.low %v1213_v17, %v1217_v18  ;;  %v7103_v1 = vcombine.high %v1221_v33, %v1225_v34  ;;  %v1268_v15 = vld [vmem:[#allocation14 + $0x510] sm:$0xff]  ;;  %v1269_v17 = vld [vmem:[#allocation14 + $0x518] sm:$0xff] }
 0x3db   :  { %2902 = vmatprep.subr.bf16.mxu0 %v7047_v52  ;;  %v7101_v52 = vcombine.high %v1220_v26, %v1224_v29  ;;  %v1272_v16 = vld [vmem:[#allocation14 + $0x530] sm:$0xff]  ;;  %v1273_v18 = vld [vmem:[#allocation14 + $0x538] sm:$0xff] }
 0x3dd   :  { %2821 = vmatpush1.bf16.msra.mxu1 %v7044_v36  ;;  %v1233_v36 = vld [vmem:[#allocation14 + $0x3f8] sm:$0xff] }
 0x3de   :  { %2903 = vmatpush1.bf16.msra.mxu0 %v7046_v37  ;;  %2822 = vmatprep.subr.bf16.mxu1 %v7053_v40  ;;  %v7100_v37 = vcombine.low %v1220_v26, %v1224_v29  ;;  %v7102_v40 = vcombine.low %v1221_v33, %v1225_v34  ;;  %v7111_v42 = vcombine.high %v1229_v27, %v1233_v36  ;;  %v1280_v26 = vld [vmem:[#allocation14 + $0x570] sm:$0xff]  ;;  %v1277_v29 = vld [vmem:[#allocation14 + $0x558] sm:$0xff] }
 0x3df   :  { %2904 = vmatprep.subr.bf16.mxu0 %v7055_v41  ;;  %v7109_v41 = vcombine.high %v1228_v3, %v1232_v4  ;;  %v1281_v33 = vld [vmem:[#allocation14 + $0x578] sm:$0xff]  ;;  %v7148_v34 = vcombine.low %v1268_v15, %v1272_v16 }
 0x3e1   :  { %2823 = vmatpush1.bf16.msra.mxu1 %v7052_v45  ;;  %v1241_v45 = vld [vmem:[#allocation14 + $0x438] sm:$0xff] }
 0x3e2   :  { %2905 = vmatpush1.bf16.msra.mxu0 %v7054_v46  ;;  %2824 = vmatprep.subr.bf16.mxu1 %v7061_v47  ;;  %v7108_v46 = vcombine.low %v1228_v3, %v1232_v4  ;;  %v7110_v47 = vcombine.low %v1229_v27, %v1233_v36  ;;  %v7119_v51 = vcombine.high %v1237_v44, %v1241_v45  ;;  %v1288_v3 = vld [vmem:[#allocation14 + $0x5b0] sm:$0xff]  ;;  %v1285_v4 = vld [vmem:[#allocation14 + $0x598] sm:$0xff] }
 0x3e3   :  { %2906 = vmatprep.subr.bf16.mxu0 %v7063_v50  ;;  %v7117_v50 = vcombine.high %v1236_v56, %v1240_v43  ;;  %v1289_v27 = vld [vmem:[#allocation14 + $0x5b8] sm:$0xff]  ;;  %v1296_v56 = vld [vmem:[#allocation14 + $0x5f0] sm:$0xff] }
 0x3e4   :  { %v1293_v43 = vld [vmem:[#allocation14 + $0x5d8] sm:$0xff] }
 0x3e5   :  { %2825 = vmatpush1.bf16.msra.mxu1 %v7060_v60  ;;  %v1245_v60 = vld [vmem:[#allocation14 + $0x458] sm:$0xff] }
 0x3e6   :  { %2907 = vmatpush1.bf16.msra.mxu0 %v7062_v31  ;;  %2826 = vmatprep.subr.bf16.mxu1 %v7069_v12  ;;  %v1249_v31 = vld [vmem:[#allocation14 + $0x478] sm:$0xff]  ;;  %v7118_v12 = vcombine.low %v1237_v44, %v1241_v45 }
 0x3e7   :  { %2908 = vmatprep.subr.bf16.mxu0 %v7071_v8  ;;  %v7125_v8 = vcombine.high %v1244_v53, %v1248_v57  ;;  %v7127_v48 = vcombine.high %v1245_v60, %v1249_v31  ;;  %v1297_v44 = vld [vmem:[#allocation14 + $0x5f8] sm:$0xff] }
 0x3e9   :  { %2827 = vmatpush1.bf16.msra.mxu1 %v7068_v58  ;;  %v1257_v58 = vld [vmem:[#allocation14 + $0x4b8] sm:$0xff] }
 0x3ea   :  { %2909 = vmatpush1.bf16.msra.mxu0 %v7070_v59  ;;  %2828 = vmatprep.subr.bf16.mxu1 %v7077_v61  ;;  %v7124_v59 = vcombine.low %v1244_v53, %v1248_v57  ;;  %v7126_v61 = vcombine.low %v1245_v60, %v1249_v31  ;;  %v7135_v0 = vcombine.high %v1253_v49, %v1257_v58  ;;  %v1304_v53 = vld [vmem:[#allocation14 + $0x630] sm:$0xff]  ;;  %v1301_v57 = vld [vmem:[#allocation14 + $0x618] sm:$0xff] }
 0x3eb   :  { %2910 = vmatprep.subr.bf16.mxu0 %v7079_v63  ;;  %v7133_v63 = vcombine.high %v1252_v28, %v1256_v10  ;;  %v7174_v31 = vcombine.low %v1293_v43, %v1297_v44 }
 0x3ed   :  { %2829 = vmatpush1.bf16.msra.mxu1 %v7076_v7  ;;  %v1265_v7 = vld [vmem:[#allocation14 + $0x4f8] sm:$0xff] }
 0x3ee   :  { %2911 = vmatpush1.bf16.msra.mxu0 %v7078_v9  ;;  %2830 = vmatprep.subr.bf16.mxu1 %v7085_v13  ;;  %v7132_v9 = vcombine.low %v1252_v28, %v1256_v10  ;;  %v7141_v13 = vcombine.high %v1260_v2, %v1264_v5  ;;  %v1308_v28 = vld [vmem:[#allocation14 + $0x650] sm:$0xff] }
 0x3ef   :  { %2912 = vmatprep.subr.bf16.mxu0 %v7087_v14  ;;  %v7143_v14 = vcombine.high %v1261_v6, %v1265_v7  ;;  %v1312_v10 = vld [vmem:[#allocation14 + $0x670] sm:$0xff] }
 0x3f1   :  { %2831 = vmatpush1.bf16.msra.mxu1 %v7084_v20  ;;  %v7142_v20 = vcombine.low %v1261_v6, %v1265_v7  ;;  %v1321_v6 = vld [vmem:[#allocation14 + $0x6b8] sm:$0xff]  ;;  %v7188_v7 = vcombine.low %v1308_v28, %v1312_v10 }
 0x3f2   :  { %2913 = vmatpush1.bf16.msra.mxu0 %v7086_v21  ;;  %2832 = vmatprep.subr.bf16.mxu1 %v7093_v22  ;;  %v7149_v21 = vcombine.high %v1268_v15, %v1272_v16  ;;  %v7151_v22 = vcombine.high %v1269_v17, %v1273_v18  ;;  %v1328_v15 = vld [vmem:[#allocation14 + $0x6f0] sm:$0xff]  ;;  %v1325_v16 = vld [vmem:[#allocation14 + $0x6d8] sm:$0xff] }
 0x3f3   :  { %2914 = vmatprep.subr.bf16.mxu0 %v7095_v23  ;;  %v1276_v23 = vld [vmem:[#allocation14 + $0x550] sm:$0xff] }
 0x3f4   :  { %v7156_v36 = vcombine.low %v1276_v23, %v1280_v26 }
 0x3f5   :  { %2833 = vmatpush1.bf16.msra.mxu1 %v7092_v62  ;;  %v7150_v62 = vcombine.low %v1269_v17, %v1273_v18  ;;  %v1329_v17 = vld [vmem:[#allocation14 + $0x6f8] sm:$0xff] }
 0x3f6   :  { %2915 = vmatpush1.bf16.msra.mxu0 %v7094_v54  ;;  %2834 = vmatprep.subr.bf16.mxu1 %v7101_v52  ;;  %v7157_v54 = vcombine.high %v1276_v23, %v1280_v26  ;;  %v7159_v52 = vcombine.high %v1277_v29, %v1281_v33  ;;  %v1336_v23 = vld [vmem:[#allocation14 + $0x730] sm:$0xff]  ;;  %v1333_v26 = vld [vmem:[#allocation14 + $0x718] sm:$0xff] }
 0x3f7   :  { %2916 = vmatprep.subr.bf16.mxu0 %v7103_v1  ;;  %v1284_v1 = vld [vmem:[#allocation14 + $0x590] sm:$0xff] }
 0x3f8   :  { %v7164_v45 = vcombine.low %v1284_v1, %v1288_v3 }
 0x3f9   :  { %2835 = vmatpush1.bf16.msra.mxu1 %v7100_v37  ;;  %v7158_v37 = vcombine.low %v1277_v29, %v1281_v33  ;;  %v1337_v29 = vld [vmem:[#allocation14 + $0x738] sm:$0xff] }
 0x3fa   :  { %2917 = vmatpush1.bf16.msra.mxu0 %v7102_v40  ;;  %2836 = vmatprep.subr.bf16.mxu1 %v7109_v41  ;;  %v7165_v40 = vcombine.high %v1284_v1, %v1288_v3  ;;  %v7167_v41 = vcombine.high %v1285_v4, %v1289_v27  ;;  %v1344_v1 = vld [vmem:[#allocation14 + $0x770] sm:$0xff]  ;;  %v1341_v3 = vld [vmem:[#allocation14 + $0x758] sm:$0xff] }
 0x3fb   :  { %2918 = vmatprep.subr.bf16.mxu0 %v7111_v42  ;;  %v1292_v42 = vld [vmem:[#allocation14 + $0x5d0] sm:$0xff] }
 0x3fc   :  { %v7172_v60 = vcombine.low %v1292_v42, %v1296_v56 }
 0x3fd   :  { %2837 = vmatpush1.bf16.msra.mxu1 %v7108_v46  ;;  %v7166_v46 = vcombine.low %v1285_v4, %v1289_v27  ;;  %v1345_v4 = vld [vmem:[#allocation14 + $0x778] sm:$0xff] }
 0x3fe   :  { %2919 = vmatpush1.bf16.msra.mxu0 %v7110_v47  ;;  %2847 = vmatprep.subr.bf16.mxu1 %v7117_v50  ;;  %v7173_v47 = vcombine.high %v1292_v42, %v1296_v56  ;;  %v7175_v50 = vcombine.high %v1293_v43, %v1297_v44  ;;  %v1352_v42 = vld [vmem:[#allocation14 + $0x7b0] sm:$0xff]  ;;  %v1349_v56 = vld [vmem:[#allocation14 + $0x798] sm:$0xff] }
 0x3ff   :  { %2929 = vmatprep.subr.bf16.mxu0 %v7119_v51  ;;  %v1300_v51 = vld [vmem:[#allocation14 + $0x610] sm:$0xff]  ;;  %v1353_v43 = vld [vmem:[#allocation14 + $0x7b8] sm:$0xff] }
 0x400   :  { %2839 = vmatmul.mubr.bf16.vlgmr.msra.gmra.mrb[4].mxu1 %v9283_v11 }
 0x401   :  { %2921 = vmatmul.mubr.bf16.vlgmr.msra.gmra.mrb[16].mxu0 %v9283_v11  ;;  %2848 = vmatpush1.bf16.msra.mxu1 %v7116_v55  ;;  %v7134_v11 = vcombine.low %v1253_v49, %v1257_v58  ;;  %v1305_v55 = vld [vmem:[#allocation14 + $0x638] sm:$0xff]  ;;  %v7180_v58 = vcombine.low %v1300_v51, %v1304_v53 }
 0x402   :  { %2879 = vmatprep.mubr.bf16.mxu1 %v9289_v19  ;;  %2930 = vmatpush1.bf16.msra.mxu0 %v7118_v12  ;;  %v7181_v12 = vcombine.high %v1300_v51, %v1304_v53  ;;  %v1313_v49 = vld [vmem:[#allocation14 + $0x678] sm:$0xff]  ;;  %v1360_v51 = vld [vmem:[#allocation14 + $0x7f0] sm:$0xff] }
 0x403   :  { %2961 = vmatprep.mubr.bf16.mxu0 %v9289_v19  ;;  %2849 = vmatprep.subr.bf16.mxu1 %v7125_v8  ;;  %v7140_v19 = vcombine.low %v1260_v2, %v1264_v5  ;;  %v7183_v8 = vcombine.high %v1301_v57, %v1305_v55  ;;  %v1320_v2 = vld [vmem:[#allocation14 + $0x6b0] sm:$0xff]  ;;  %v1317_v5 = vld [vmem:[#allocation14 + $0x698] sm:$0xff] }
 0x404   :  { %2931 = vmatprep.subr.bf16.mxu0 %v7127_v48  ;;  %v1309_v48 = vld [vmem:[#allocation14 + $0x658] sm:$0xff] }
 0x405   :  { %2850 = vmatpush1.bf16.msra.mxu1 %v7124_v59  ;;  %v7182_v59 = vcombine.low %v1301_v57, %v1305_v55  ;;  %v1357_v53 = vld [vmem:[#allocation14 + $0x7d8] sm:$0xff] }
 0x406   :  { %2932 = vmatpush1.bf16.msra.mxu0 %v7126_v61  ;;  %2851 = vmatprep.subr.bf16.mxu1 %v7133_v63  ;;  %v7189_v61 = vcombine.high %v1308_v28, %v1312_v10  ;;  %v7191_v63 = vcombine.high %v1309_v48, %v1313_v49  ;;  %v1361_v57 = vld [vmem:[#allocation14 + $0x7f8] sm:$0xff] }
 0x407   :  { %2933 = vmatprep.subr.bf16.mxu0 %v7135_v0  ;;  %v1316_v0 = vld [vmem:[#allocation14 + $0x690] sm:$0xff]  ;;  %v7238_v28 = vcombine.low %v1357_v53, %v1361_v57 }
 0x408   :  { %v7196_v18 = vcombine.low %v1316_v0, %v1320_v2 }
 0x409   :  { %2852 = vmatpush1.bf16.msra.mxu1 %v7132_v9  ;;  %v7190_v9 = vcombine.low %v1309_v48, %v1313_v49 }
 0x40a   :  { %2934 = vmatpush1.bf16.msra.mxu0 %v7134_v11  ;;  %2853 = vmatprep.subr.bf16.mxu1 %v7141_v13  ;;  %v7197_v11 = vcombine.high %v1316_v0, %v1320_v2  ;;  %v7199_v13 = vcombine.high %v1317_v5, %v1321_v6 }
 0x40b   :  { %2935 = vmatprep.subr.bf16.mxu0 %v7143_v14  ;;  %v1324_v14 = vld [vmem:[#allocation14 + $0x6d0] sm:$0xff] }
 0x40c   :  { %v7204_v33 = vcombine.low %v1324_v14, %v1328_v15 }
 0x40d   :  { %2854 = vmatpush1.bf16.msra.mxu1 %v7140_v19  ;;  %v7198_v19 = vcombine.low %v1317_v5, %v1321_v6 }
 0x40e   :  { %2936 = vmatpush1.bf16.msra.mxu0 %v7142_v20  ;;  %2855 = vmatprep.subr.bf16.mxu1 %v7149_v21  ;;  %v7205_v20 = vcombine.high %v1324_v14, %v1328_v15  ;;  %v7207_v21 = vcombine.high %v1325_v16, %v1329_v17 }
 0x40f   :  { %2937 = vmatprep.subr.bf16.mxu0 %v7151_v22  ;;  %v1332_v22 = vld [vmem:[#allocation14 + $0x710] sm:$0xff] }
 0x410   :  { %v7212_v27 = vcombine.low %v1332_v22, %v1336_v23 }
 0x411   :  { %2856 = vmatpush1.bf16.msra.mxu1 %v7148_v34  ;;  %v7206_v34 = vcombine.low %v1325_v16, %v1329_v17 }
 0x412   :  { %2938 = vmatpush1.bf16.msra.mxu0 %v7150_v62  ;;  %2857 = vmatprep.subr.bf16.mxu1 %v7157_v54  ;;  %v7213_v62 = vcombine.high %v1332_v22, %v1336_v23  ;;  %v7215_v54 = vcombine.high %v1333_v26, %v1337_v29 }
 0x413   :  { %2939 = vmatprep.subr.bf16.mxu0 %v7159_v52  ;;  %v1340_v52 = vld [vmem:[#allocation14 + $0x750] sm:$0xff] }
 0x414   :  { %v7220_v44 = vcombine.low %v1340_v52, %v1344_v1 }
 0x415   :  { %2858 = vmatpush1.bf16.msra.mxu1 %v7156_v36  ;;  %v7214_v36 = vcombine.low %v1333_v26, %v1337_v29 }
 0x416   :  { %2940 = vmatpush1.bf16.msra.mxu0 %v7158_v37  ;;  %2859 = vmatprep.subr.bf16.mxu1 %v7165_v40  ;;  %v7221_v37 = vcombine.high %v1340_v52, %v1344_v1  ;;  %v7223_v40 = vcombine.high %v1341_v3, %v1345_v4 }
 0x417   :  { %2941 = vmatprep.subr.bf16.mxu0 %v7167_v41  ;;  %v1348_v41 = vld [vmem:[#allocation14 + $0x790] sm:$0xff] }
 0x418   :  { %v7228_v55 = vcombine.low %v1348_v41, %v1352_v42 }
 0x419   :  { %2860 = vmatpush1.bf16.msra.mxu1 %v7164_v45  ;;  %v7222_v45 = vcombine.low %v1341_v3, %v1345_v4 }
 0x41a   :  { %2942 = vmatpush1.bf16.msra.mxu0 %v7166_v46  ;;  %2861 = vmatprep.subr.bf16.mxu1 %v7173_v47  ;;  %v7229_v46 = vcombine.high %v1348_v41, %v1352_v42  ;;  %v7231_v47 = vcombine.high %v1349_v56, %v1353_v43 }
 0x41b   :  { %2943 = vmatprep.subr.bf16.mxu0 %v7175_v50  ;;  %v1356_v50 = vld [vmem:[#allocation14 + $0x7d0] sm:$0xff] }
 0x41d   :  { %2862 = vmatpush1.bf16.msra.mxu1 %v7172_v60  ;;  %v7230_v60 = vcombine.low %v1349_v56, %v1353_v43 }
 0x41e   :  { %2944 = vmatpush1.bf16.msra.mxu0 %v7174_v31  ;;  %2863 = vmatprep.subr.bf16.mxu1 %v7181_v12  ;;  %v7237_v31 = vcombine.high %v1356_v50, %v1360_v51  ;;  %v7239_v12 = vcombine.high %v1357_v53, %v1361_v57 }
 0x41f   :  { %2945 = vmatprep.subr.bf16.mxu0 %v7183_v8  ;;  %v7236_v8 = vcombine.low %v1356_v50, %v1360_v51 }
 0x421   :  { %2864 = vmatpush1.bf16.msra.mxu1 %v7180_v58 }
 0x422   :  { %2946 = vmatpush1.bf16.msra.mxu0 %v7182_v59  ;;  %2865 = vmatprep.subr.bf16.mxu1 %v7189_v61 }
 0x423   :  { %2947 = vmatprep.subr.bf16.mxu0 %v7191_v63 }
 0x425   :  { %2866 = vmatpush1.bf16.msra.mxu1 %v7188_v7 }
 0x426   :  { %2948 = vmatpush1.bf16.msra.mxu0 %v7190_v9  ;;  %2867 = vmatprep.subr.bf16.mxu1 %v7197_v11 }
 0x427   :  { %2949 = vmatprep.subr.bf16.mxu0 %v7199_v13 }
 0x429   :  { %2868 = vmatpush1.bf16.msra.mxu1 %v7196_v18 }
 0x42a   :  { %2950 = vmatpush1.bf16.msra.mxu0 %v7198_v19  ;;  %2869 = vmatprep.subr.bf16.mxu1 %v7205_v20 }
 0x42b   :  { %2951 = vmatprep.subr.bf16.mxu0 %v7207_v21 }
 0x42d   :  { %2870 = vmatpush1.bf16.msra.mxu1 %v7204_v33 }
 0x42e   :  { %2952 = vmatpush1.bf16.msra.mxu0 %v7206_v34  ;;  %2871 = vmatprep.subr.bf16.mxu1 %v7213_v62 }
 0x42f   :  { %2953 = vmatprep.subr.bf16.mxu0 %v7215_v54 }
 0x431   :  { %2872 = vmatpush1.bf16.msra.mxu1 %v7212_v27 }
 0x432   :  { %2954 = vmatpush1.bf16.msra.mxu0 %v7214_v36  ;;  %2873 = vmatprep.subr.bf16.mxu1 %v7221_v37 }
 0x433   :  { %2955 = vmatprep.subr.bf16.mxu0 %v7223_v40 }
 0x435   :  { %2874 = vmatpush1.bf16.msra.mxu1 %v7220_v44 }
 0x436   :  { %2956 = vmatpush1.bf16.msra.mxu0 %v7222_v45  ;;  %2875 = vmatprep.subr.bf16.mxu1 %v7229_v46 }
 0x437   :  { %2957 = vmatprep.subr.bf16.mxu0 %v7231_v47 }
 0x439   :  { %2876 = vmatpush1.bf16.msra.mxu1 %v7228_v55 }
 0x43a   :  { %2958 = vmatpush1.bf16.msra.mxu0 %v7230_v60  ;;  %2877 = vmatprep.subr.bf16.mxu1 %v7237_v31  ;;  %v7979_v31 = vld [vmem:[#allocation19 + $0x4] ss:$28 sps:$4 sm:$0xff]  }
 0x43b   :  { %2959 = vmatprep.subr.bf16.mxu0 %v7239_v12  ;;  %v7982_v12 = vld [vmem:[#allocation19 + $0xc] ss:$28 sps:$4 sm:$0xff]  }
 0x43d   :  { %2878 = vmatpush1.bf16.msra.mxu1 %v7236_v8 }
 0x43e   :  { %2960 = vmatpush1.bf16.msra.mxu0 %v7238_v28  ;;  %6217 = vmatprep.subr.bf16.mxu1 %v7979_v31  ;;  %v8018_v31 = vld [vmem:[#allocation19 + $0x15c] ss:$28 sps:$4 sm:$0xff]  }
 0x43f   :  { %6381 = vmatprep.subr.bf16.mxu0 %v7982_v12 }
 0x440   :  { %2880 = vmatmul.mubr.bf16.vlgmr.msra.gmra.mrb[4].mxu1 %v9301_v35 }
 0x441   :  { %2962 = vmatmul.mubr.bf16.vlgmr.msra.gmra.mrb[16].mxu0 %v9301_v35 }
 0x493   :  { %v9313_v10 = vpop.f32.mrb[0].mxu1  ;;  %v9315_v48 = vpop.f32.mrb[12].mxu0 }
 0x494   :  { %v2972_v49 = vrot.slane %v9313_v10, 4  ;;  %v2984_v58 = vrot.slane %v9315_v48, 4  ;;  %v9319_v59 = vpop.f32.mrb[1].mxu1  ;;  %v9321_v61 = vpop.f32.mrb[13].mxu0 }
 0x495   :  { %v2978_v63 = vrot.slane %v9319_v59, 4  ;;  %v2990_v0 = vrot.slane %v9321_v61, 4  ;;  %v2721_v2 = vpop.f32.mrb[2].mxu1  ;;  %v2803_v5 = vpop.f32.mrb[14].mxu0 }
 0x496   :  { %v2973_v35 = vadd.f32 %v2972_v49, %v9313_v10  ;;  %v2985_v6 = vadd.f32 %v2984_v58, %v9315_v48  ;;  %v2722_v7 = vpop.f32.mrb[3].mxu1  ;;  %v2804_v9 = vpop.f32.mrb[15].mxu0  ;;  %v7977_v49 = vld [vmem:[#allocation19] ss:$28 sps:$4 sm:$0xff]   ;;  %v7980_v58 = vld [vmem:[#allocation19 + $0x8] ss:$28 sps:$4 sm:$0xff]  }
 0x497   :  { %v2979_v11 = vadd.f32 %v2978_v63, %v9319_v59  ;;  %v2991_v13 = vadd.f32 %v2990_v0, %v9321_v61  ;;  %6218 = vmatpush1.bf16.msra.mxu1 %v7977_v49  ;;  %6382 = vmatpush1.bf16.msra.mxu0 %v7980_v58  ;;  %v7985_v7 = vld [vmem:[#allocation19 + $0x3c] ss:$28 sps:$4 sm:$0xff]   ;;  %v7988_v9 = vld [vmem:[#allocation19 + $0x44] ss:$28 sps:$4 sm:$0xff]  }
 0x498   :  { %v2974_v14 = vrot.slane %v2973_v35, 2  ;;  %v2986_v15 = vrot.slane %v2985_v6, 2  ;;  %6219 = vmatprep.subr.bf16.mxu1 %v7985_v7  ;;  %6383 = vmatprep.subr.bf16.mxu0 %v7988_v9  ;;  %v8016_v49 = vld [vmem:[#allocation19 + $0x158] ss:$28 sps:$4 sm:$0xff]   ;;  %v8027_v9 = vld [vmem:[#allocation19 + $0x1c4] ss:$28 sps:$4 sm:$0xff]  }
 0x499   :  { %v2980_v16 = vrot.slane %v2979_v11, 2  ;;  %v2992_v17 = vrot.slane %v2991_v13, 2 }
 0x49a   :  { %v2975_v18 = vadd.f32 %v2974_v14, %v2973_v35  ;;  %v2987_v19 = vadd.f32 %v2986_v15, %v2985_v6  ;;  %v7983_v14 = vld [vmem:[#allocation19 + $0x38] ss:$28 sps:$4 sm:$0xff]   ;;  %v7986_v15 = vld [vmem:[#allocation19 + $0x40] ss:$28 sps:$4 sm:$0xff]  }
 0x49b   :  { %v2981_v20 = vadd.f32 %v2980_v16, %v2979_v11  ;;  %v2993_v21 = vadd.f32 %v2992_v17, %v2991_v13  ;;  %6220 = vmatpush1.bf16.msra.mxu1 %v7983_v14  ;;  %6384 = vmatpush1.bf16.msra.mxu0 %v7986_v15  ;;  %v8028_v14 = vld [vmem:[#allocation19 + $0x1c8] ss:$28 sps:$4 sm:$0xff]   ;;  %v8033_v15 = vld [vmem:[#allocation19 + $0x1fc] ss:$28 sps:$4 sm:$0xff]  }
 0x49c   :  { %v2976_v22 = vrot.slane %v2975_v18, 1  ;;  %v2988_v23 = vrot.slane %v2987_v19, 1 }
 0x49d   :  { %v2982_v26 = vrot.slane %v2981_v20, 1  ;;  %v2994_v29 = vrot.slane %v2993_v21, 1 }
 0x49e   :  { %v2977_v33 = vadd.f32 %v2976_v22, %v2975_v18  ;;  %v2989_v34 = vadd.f32 %v2988_v23, %v2987_v19  ;;  %v7991_v22 = vld [vmem:[#allocation19 + $0x74] ss:$28 sps:$4 sm:$0xff]   ;;  %v7994_v23 = vld [vmem:[#allocation19 + $0x7c] ss:$28 sps:$4 sm:$0xff]  }
 0x49f   :  { %v2983_v62 = vadd.f32 %v2982_v26, %v2981_v20  ;;  %v2995_v54 = vadd.f32 %v2994_v29, %v2993_v21  ;;  %6221 = vmatprep.subr.bf16.mxu1 %v7991_v22  ;;  %6385 = vmatprep.subr.bf16.mxu0 %v7994_v23  ;;  %v8040_v22 = vld [vmem:[#allocation19 + $0x238] ss:$28 sps:$4 sm:$0xff]   ;;  %v8045_v23 = vld [vmem:[#allocation19 + $0x26c] ss:$28 sps:$4 sm:$0xff]  }
 0x4a0   :  { %v9329_v52 = vmul.f32 0.125, %v2977_v33  ;;  %v9331_v1 = vmul.f32 0.125, %v2989_v34  ;;  %v7989_v33 = vld [vmem:[#allocation19 + $0x70] ss:$28 sps:$4 sm:$0xff]   ;;  %v7992_v34 = vld [vmem:[#allocation19 + $0x78] ss:$28 sps:$4 sm:$0xff]  }
 0x4a1   :  { %v9333_v3 = vmul.f32 0.125, %v2983_v62  ;;  %v9335_v4 = vmul.f32 0.125, %v2995_v54  ;;  %6222 = vmatpush1.bf16.msra.mxu1 %v7989_v33  ;;  %6386 = vmatpush1.bf16.msra.mxu0 %v7992_v34  ;;  %v8046_v33 = vld [vmem:[#allocation19 + $0x270] ss:$28 sps:$4 sm:$0xff]   ;;  %v8051_v34 = vld [vmem:[#allocation19 + $0x2a4] ss:$28 sps:$4 sm:$0xff]  }
 0x4a2   :  { %v3028_v27 = vsub.f32 %v9313_v10, %v9329_v52  ;;  %v3030_v36 = vsub.f32 %v9315_v48, %v9331_v1 }
 0x4a3   :  { %v3029_v37 = vsub.f32 %v9319_v59, %v9333_v3  ;;  %v3031_v40 = vsub.f32 %v9321_v61, %v9335_v4 }
 0x4a4   :  { %v3036_v41 = vmul.f32 %v3028_v27, %v3028_v27  ;;  %v3038_v42 = vmul.f32 %v3030_v36, %v3030_v36 }
 0x4a5   :  { %v3037_v56 = vmul.f32 %v3029_v37, %v3029_v37  ;;  %v3039_v43 = vmul.f32 %v3031_v40, %v3031_v40  ;;  %v7997_v37 = vld [vmem:[#allocation19 + $0xac] ss:$28 sps:$4 sm:$0xff]   ;;  %v8000_v40 = vld [vmem:[#allocation19 + $0xb4] ss:$28 sps:$4 sm:$0xff]  }
 0x4a6   :  { %v3044_v44 = vrot.slane %v3036_v41, 4  ;;  %v3056_v45 = vrot.slane %v3038_v42, 4  ;;  %6223 = vmatprep.subr.bf16.mxu1 %v7997_v37  ;;  %6387 = vmatprep.subr.bf16.mxu0 %v8000_v40  ;;  %v8060_v37 = vld [vmem:[#allocation19 + $0x2e4] ss:$28 sps:$4 sm:$0xff]   ;;  %v8055_v40 = vld [vmem:[#allocation19 + $0x2d8] ss:$28 sps:$4 sm:$0xff]  }
 0x4a7   :  { %v3050_v46 = vrot.slane %v3037_v56, 4  ;;  %v3062_v47 = vrot.slane %v3039_v43, 4 }
 0x4a8   :  { %v3045_v50 = vadd.f32 %v3044_v44, %v3036_v41  ;;  %v3057_v51 = vadd.f32 %v3056_v45, %v3038_v42  ;;  %v7995_v41 = vld [vmem:[#allocation19 + $0xa8] ss:$28 sps:$4 sm:$0xff]   ;;  %v7998_v42 = vld [vmem:[#allocation19 + $0xb0] ss:$28 sps:$4 sm:$0xff]   ;;  %v8001_v44 = vld [vmem:[#allocation19 + $0xe0] ss:$28 sps:$4 sm:$0xff]  }
 0x4a9   :  { %v3051_v53 = vadd.f32 %v3050_v46, %v3037_v56  ;;  %v3063_v57 = vadd.f32 %v3062_v47, %v3039_v43  ;;  %6224 = vmatpush1.bf16.msra.mxu1 %v7995_v41  ;;  %6388 = vmatpush1.bf16.msra.mxu0 %v7998_v42  ;;  %v8003_v56 = vld [vmem:[#allocation19 + $0xe4] ss:$28 sps:$4 sm:$0xff]   ;;  %v8006_v43 = vld [vmem:[#allocation19 + $0xec] ss:$28 sps:$4 sm:$0xff]   ;;  %v8009_v46 = vld [vmem:[#allocation19 + $0x11c] ss:$28 sps:$4 sm:$0xff]  }
 0x4aa   :  { %v3046_v55 = vrot.slane %v3045_v50, 2  ;;  %v3058_v60 = vrot.slane %v3057_v51, 2  ;;  %v8004_v45 = vld [vmem:[#allocation19 + $0xe8] ss:$28 sps:$4 sm:$0xff]   ;;  %6225 = vmatprep.subr.bf16.mxu1 %v8003_v56  ;;  %6389 = vmatprep.subr.bf16.mxu0 %v8006_v43  ;;  %v8058_v41 = vld [vmem:[#allocation19 + $0x2e0] ss:$28 sps:$4 sm:$0xff]  }
 0x4ab   :  { %v3052_v8 = vrot.slane %v3051_v53, 2  ;;  %v3064_v28 = vrot.slane %v3063_v57, 2  ;;  %v8012_v47 = vld [vmem:[#allocation19 + $0x124] ss:$28 sps:$4 sm:$0xff]   ;;  %v8063_v42 = vld [vmem:[#allocation19 + $0x314] ss:$28 sps:$4 sm:$0xff]  }
 0x4ac   :  { %v3047_v63 = vadd.f32 %v3046_v55, %v3045_v50  ;;  %v3059_v0 = vadd.f32 %v3058_v60, %v3057_v51  ;;  %v8007_v50 = vld [vmem:[#allocation19 + $0x118] ss:$28 sps:$4 sm:$0xff]   ;;  %v8010_v51 = vld [vmem:[#allocation19 + $0x120] ss:$28 sps:$4 sm:$0xff]   ;;  %v8061_v43 = vld [vmem:[#allocation19 + $0x310] ss:$28 sps:$4 sm:$0xff]  }
 0x4ad   :  { %v3053_v2 = vadd.f32 %v3052_v8, %v3051_v53  ;;  %v3065_v5 = vadd.f32 %v3064_v28, %v3063_v57  ;;  %6226 = vmatpush1.bf16.msra.mxu1 %v8001_v44  ;;  %6390 = vmatpush1.bf16.msra.mxu0 %v8004_v45  ;;  %v8015_v60 = vld [vmem:[#allocation19 + $0x154] ss:$28 sps:$4 sm:$0xff]   ;;  %v8066_v56 = vld [vmem:[#allocation19 + $0x31c] ss:$28 sps:$4 sm:$0xff]   ;;  %v8067_v45 = vld [vmem:[#allocation19 + $0x348] ss:$28 sps:$4 sm:$0xff]  }
 0x4ae   :  { %v3048_v35 = vrot.slane %v3047_v63, 1  ;;  %v3060_v6 = vrot.slane %v3059_v0, 1  ;;  %6227 = vmatprep.subr.bf16.mxu1 %v8009_v46  ;;  %6391 = vmatprep.subr.bf16.mxu0 %v8012_v47  ;;  %v8013_v28 = vld [vmem:[#allocation19 + $0x150] ss:$28 sps:$4 sm:$0xff]   ;;  %v8064_v44 = vld [vmem:[#allocation19 + $0x318] ss:$28 sps:$4 sm:$0xff]  }
 0x4af   :  { %v3054_v11 = vrot.slane %v3053_v2, 1  ;;  %v3066_v13 = vrot.slane %v3065_v5, 1  ;;  %v8069_v46 = vld [vmem:[#allocation19 + $0x34c] ss:$28 sps:$4 sm:$0xff]  }
 0x4b0   :  { %v3049_v16 = vadd.f32 %v3048_v35, %v3047_v63  ;;  %v3061_v17 = vadd.f32 %v3060_v6, %v3059_v0  ;;  %v8019_v35 = vld [vmem:[#allocation19 + $0x188] ss:$28 sps:$4 sm:$0xff]   ;;  %v8022_v6 = vld [vmem:[#allocation19 + $0x190] ss:$28 sps:$4 sm:$0xff]  }
 0x4b1   :  { %v3055_v18 = vadd.f32 %v3054_v11, %v3053_v2  ;;  %v3067_v19 = vadd.f32 %v3066_v13, %v3065_v5  ;;  %6228 = vmatpush1.bf16.msra.mxu1 %v8007_v50  ;;  %6392 = vmatpush1.bf16.msra.mxu0 %v8010_v51  ;;  %v8021_v2 = vld [vmem:[#allocation19 + $0x18c] ss:$28 sps:$4 sm:$0xff]   ;;  %v8024_v5 = vld [vmem:[#allocation19 + $0x194] ss:$28 sps:$4 sm:$0xff]   ;;  %v8025_v13 = vld [vmem:[#allocation19 + $0x1c0] ss:$28 sps:$4 sm:$0xff]  }
 0x4b2   :  { %v3092_v20 = vmul.f32 0.125, %v3049_v16  ;;  %v3094_v21 = vmul.f32 0.125, %v3061_v17  ;;  %6229 = vmatprep.subr.bf16.mxu1 %v8015_v60  ;;  %6393 = vmatprep.subr.bf16.mxu0 %v8018_v31  ;;  %v8030_v11 = vld [vmem:[#allocation19 + $0x1cc] ss:$28 sps:$4 sm:$0xff]   ;;  %v8036_v16 = vld [vmem:[#allocation19 + $0x204] ss:$28 sps:$4 sm:$0xff]  }
 0x4b3   :  { %v3093_v26 = vmul.f32 0.125, %v3055_v18  ;;  %v3095_v29 = vmul.f32 0.125, %v3067_v19  ;;  %v8031_v17 = vld [vmem:[#allocation19 + $0x1f8] ss:$28 sps:$4 sm:$0xff]   ;;  %v8034_v18 = vld [vmem:[#allocation19 + $0x200] ss:$28 sps:$4 sm:$0xff]  }
 0x4b4   :  { %v3100_v62 = vadd.f32 1e-05, %v3092_v20  ;;  %v3102_v54 = vadd.f32 1e-05, %v3094_v21  ;;  %v8039_v19 = vld [vmem:[#allocation19 + $0x234] ss:$28 sps:$4 sm:$0xff]  }
 0x4b5   :  { %v3101_v27 = vadd.f32 1e-05, %v3093_v26  ;;  %v3103_v36 = vadd.f32 1e-05, %v3095_v29  ;;  %6230 = vmatpush1.bf16.msra.mxu1 %v8013_v28  ;;  %6394 = vmatpush1.bf16.msra.mxu0 %v8016_v49  ;;  %v8042_v20 = vld [vmem:[#allocation19 + $0x23c] ss:$28 sps:$4 sm:$0xff]  }
 0x4b6   :  { %8629 = vrsqrt.f32 %v3100_v62  ;;  %6231 = vmatprep.subr.bf16.mxu1 %v8021_v2  ;;  %6395 = vmatprep.subr.bf16.mxu0 %v8024_v5  ;;  %v8037_v21 = vld [vmem:[#allocation19 + $0x230] ss:$28 sps:$4 sm:$0xff]   ;;  %v8043_v29 = vld [vmem:[#allocation19 + $0x268] ss:$28 sps:$4 sm:$0xff]  }
 0x4b7   :  { %8631 = vrsqrt.f32 %v3102_v54  ;;  %v8048_v26 = vld [vmem:[#allocation19 + $0x274] ss:$28 sps:$4 sm:$0xff]   ;;  %v8054_v62 = vld [vmem:[#allocation19 + $0x2ac] ss:$28 sps:$4 sm:$0xff]   ;;  %v8049_v54 = vld [vmem:[#allocation19 + $0x2a0] ss:$28 sps:$4 sm:$0xff]  }
 0x4b8   :  { %8633 = vrsqrt.f32 %v3101_v27  ;;  %v8052_v27 = vld [vmem:[#allocation19 + $0x2a8] ss:$28 sps:$4 sm:$0xff]   ;;  %v8070_v47 = vld [vmem:[#allocation19 + $0x350] ss:$28 sps:$4 sm:$0xff]  }
 0x4b9   :  { %8635 = vrsqrt.f32 %v3103_v36  ;;  %6232 = vmatpush1.bf16.msra.mxu1 %v8019_v35  ;;  %6396 = vmatpush1.bf16.msra.mxu0 %v8022_v6  ;;  %v8057_v36 = vld [vmem:[#allocation19 + $0x2dc] ss:$28 sps:$4 sm:$0xff]   ;;  %v8072_v50 = vld [vmem:[#allocation19 + $0x354] ss:$28 sps:$4 sm:$0xff]   ;;  %v8075_v51 = vld [vmem:[#allocation19 + $0x384] ss:$28 sps:$4 sm:$0xff]  }
 0x4ba   :  { %6233 = vmatprep.subr.bf16.mxu1 %v8027_v9  ;;  %6397 = vmatprep.subr.bf16.mxu0 %v8030_v11 }
 0x4bd   :  { %6234 = vmatpush1.bf16.msra.mxu1 %v8025_v13  ;;  %6398 = vmatpush1.bf16.msra.mxu0 %v8028_v14 }
 0x4be   :  { %6235 = vmatprep.subr.bf16.mxu1 %v8033_v15  ;;  %6399 = vmatprep.subr.bf16.mxu0 %v8036_v16 }
 0x4c0   :  { %v8630_v53 = vpop.eup %8629 }
 0x4c1   :  { %v8632_v57 = vpop.eup %8631  ;;  %6236 = vmatpush1.bf16.msra.mxu1 %v8031_v17  ;;  %6400 = vmatpush1.bf16.msra.mxu0 %v8034_v18 }
 0x4c2   :  { %v8634_v55 = vpop.eup %8633  ;;  %6237 = vmatprep.subr.bf16.mxu1 %v8039_v19  ;;  %6401 = vmatprep.subr.bf16.mxu0 %v8042_v20 }
 0x4c3   :  { %v8636_v12 = vpop.eup %8635  ;;  %v3124_v8 = vcombine.low %v8630_v53, %v8634_v55  ;;  %v8078_v53 = vld [vmem:[#allocation19 + $0x38c] ss:$28 sps:$4 sm:$0xff]  }
 0x4c4   :  { %v3125_v58 = vcombine.low %v8632_v57, %v8636_v12 }
 0x4c5   :  { %v9346_v63 = vrot.slane %v3124_v8, %v9203_v32  ;;  %6238 = vmatpush1.bf16.msra.mxu1 %v8037_v21  ;;  %6402 = vmatpush1.bf16.msra.mxu0 %v8040_v22 }
 0x4c6   :  { %v9349_v0 = vrot.slane %v3125_v58, %v9203_v32  ;;  %6239 = vmatprep.subr.bf16.mxu1 %v8045_v23  ;;  %6403 = vmatprep.subr.bf16.mxu0 %v8048_v26 }
 0x4c8   :  { %v3156_v7 = vcombine.low %v9346_v63, %v9349_v0 }
 0x4c9   :  { %6240 = vmatpush1.bf16.msra.mxu1 %v8043_v29  ;;  %6404 = vmatpush1.bf16.msra.mxu0 %v8046_v33 }
 0x4ca   :  { %6241 = vmatprep.subr.bf16.mxu1 %v8051_v34  ;;  %6405 = vmatprep.subr.bf16.mxu0 %v8054_v62 }
 0x4cd   :  { %6242 = vmatpush1.bf16.msra.mxu1 %v8049_v54  ;;  %6406 = vmatpush1.bf16.msra.mxu0 %v8052_v27 }
 0x4ce   :  { %6243 = vmatprep.subr.bf16.mxu1 %v8057_v36  ;;  %6407 = vmatprep.subr.bf16.mxu0 %v8060_v37 }
 0x4d1   :  { %6244 = vmatpush1.bf16.msra.mxu1 %v8055_v40  ;;  %6408 = vmatpush1.bf16.msra.mxu0 %v8058_v41 }
 0x4d2   :  { %6245 = vmatprep.subr.bf16.mxu1 %v8063_v42  ;;  %6409 = vmatprep.subr.bf16.mxu0 %v8066_v56 }
 0x4d5   :  { %6246 = vmatpush1.bf16.msra.mxu1 %v8061_v43  ;;  %6410 = vmatpush1.bf16.msra.mxu0 %v8064_v44 }
 0x4d6   :  { %6247 = vmatprep.subr.bf16.mxu1 %v8069_v46  ;;  %6411 = vmatprep.subr.bf16.mxu0 %v8072_v50 }
 0x4d9   :  { %6248 = vmatpush1.bf16.msra.mxu1 %v8067_v45  ;;  %6412 = vmatpush1.bf16.msra.mxu0 %v8070_v47 }
 0x4da   :  { %6258 = vmatprep.subr.bf16.mxu1 %v8075_v51  ;;  %6422 = vmatprep.subr.bf16.mxu0 %v8078_v53 }
 0x513   :  { %v9353_v57 = vpop.f32.mrb[4].mxu1 }
 0x514   :  { %v2996_v55 = vrot.slane %v9353_v57, 4  ;;  %v9356_v60 = vpop.f32.mrb[16].mxu0  ;;  %v9358_v31 = vpop.f32.mrb[5].mxu1 }
 0x515   :  { %v3008_v12 = vrot.slane %v9356_v60, 4  ;;  %v3002_v8 = vrot.slane %v9358_v31, 4  ;;  %v9362_v28 = vpop.f32.mrb[17].mxu0  ;;  %v2885_v49 = vpop.f32.mrb[6].mxu1 }
 0x516   :  { %v2997_v58 = vadd.f32 %v2996_v55, %v9353_v57  ;;  %v3014_v2 = vrot.slane %v9362_v28, 4  ;;  %v2967_v5 = vpop.f32.mrb[18].mxu0  ;;  %v2886_v35 = vpop.f32.mrb[7].mxu1 }
 0x517   :  { %v3009_v6 = vadd.f32 %v3008_v12, %v9356_v60  ;;  %v3003_v9 = vadd.f32 %v3002_v8, %v9358_v31  ;;  %v2968_v11 = vpop.f32.mrb[19].mxu0 }
 0x518   :  { %v2998_v13 = vrot.slane %v2997_v58, 2  ;;  %v3015_v14 = vadd.f32 %v3014_v2, %v9362_v28 }
 0x519   :  { %v3010_v15 = vrot.slane %v3009_v6, 2  ;;  %v3004_v16 = vrot.slane %v3003_v9, 2 }
 0x51a   :  { %v2999_v17 = vadd.f32 %v2998_v13, %v2997_v58  ;;  %v3016_v18 = vrot.slane %v3015_v14, 2 }
 0x51b   :  { %v3011_v19 = vadd.f32 %v3010_v15, %v3009_v6  ;;  %v3005_v20 = vadd.f32 %v3004_v16, %v3003_v9 }
 0x51c   :  { %v3000_v21 = vrot.slane %v2999_v17, 1  ;;  %v3017_v22 = vadd.f32 %v3016_v18, %v3015_v14 }
 0x51d   :  { %v3012_v23 = vrot.slane %v3011_v19, 1  ;;  %v3006_v26 = vrot.slane %v3005_v20, 1 }
 0x51e   :  { %v3001_v29 = vadd.f32 %v3000_v21, %v2999_v17  ;;  %v3018_v33 = vrot.slane %v3017_v22, 1 }
 0x51f   :  { %v3013_v34 = vadd.f32 %v3012_v23, %v3011_v19  ;;  %v3007_v62 = vadd.f32 %v3006_v26, %v3005_v20 }
 0x520   :  { %v9369_v54 = vmul.f32 0.125, %v3001_v29  ;;  %v3019_v27 = vadd.f32 %v3018_v33, %v3017_v22 }
 0x521   :  { %v9371_v36 = vmul.f32 0.125, %v3013_v34  ;;  %v9373_v37 = vmul.f32 0.125, %v3007_v62 }
 0x522   :  { %v3032_v40 = vsub.f32 %v9353_v57, %v9369_v54  ;;  %v9377_v41 = vmul.f32 0.125, %v3019_v27 }
 0x523   :  { %v3034_v42 = vsub.f32 %v9356_v60, %v9371_v36  ;;  %v3033_v56 = vsub.f32 %v9358_v31, %v9373_v37 }
 0x524   :  { %v3040_v43 = vmul.f32 %v3032_v40, %v3032_v40  ;;  %v3035_v44 = vsub.f32 %v9362_v28, %v9377_v41 }
 0x525   :  { %v3042_v45 = vmul.f32 %v3034_v42, %v3034_v42  ;;  %v3041_v46 = vmul.f32 %v3033_v56, %v3033_v56 }
 0x526   :  { %v3068_v47 = vrot.slane %v3040_v43, 4  ;;  %v3043_v50 = vmul.f32 %v3035_v44, %v3035_v44 }
 0x527   :  { %v3080_v51 = vrot.slane %v3042_v45, 4  ;;  %v3074_v53 = vrot.slane %v3041_v46, 4 }
 0x528   :  { %v3069_v55 = vadd.f32 %v3068_v47, %v3040_v43  ;;  %v3086_v12 = vrot.slane %v3043_v50, 4 }
 0x529   :  { %v3081_v8 = vadd.f32 %v3080_v51, %v3042_v45  ;;  %v3075_v49 = vadd.f32 %v3074_v53, %v3041_v46  ;;  %v3164_v53 = vrot.slane %v3156_v7, %v9203_v32 }
 0x52a   :  { %v3070_v58 = vrot.slane %v3069_v55, 2  ;;  %v3087_v2 = vadd.f32 %v3086_v12, %v3043_v50  ;;  %v2970_v12 = vld [vmem:[#allocation16] sm:$0xff] }
 0x52b   :  { %v3082_v5 = vrot.slane %v3081_v8, 2  ;;  %v3076_v35 = vrot.slane %v3075_v49, 2 }
 0x52c   :  { %v3071_v6 = vadd.f32 %v3070_v58, %v3069_v55  ;;  %v3088_v9 = vrot.slane %v3087_v2, 2  ;;  %v9396_v58 = vsub.s32 5, %v9200_v30 }
 0x52d   :  { %v3083_v11 = vadd.f32 %v3082_v5, %v3081_v8  ;;  %v3077_v13 = vadd.f32 %v3076_v35, %v3075_v49  ;;  %v9393_v49 = vsub.s32 4, %v9200_v30  ;;  %v3206_v5 = vsub.s32 7, %v9200_v30 }
 0x52e   :  { %v3072_v14 = vrot.slane %v3071_v6, 1  ;;  %v3089_v15 = vadd.f32 %v3088_v9, %v3087_v2  ;;  %v9399_v2 = vsub.s32 6, %v9200_v30 }
 0x52f   :  { %v3084_v16 = vrot.slane %v3083_v11, 1  ;;  %v3078_v17 = vrot.slane %v3077_v13, 1 }
 0x530   :  { %v3073_v18 = vadd.f32 %v3072_v14, %v3071_v6  ;;  %v3090_v19 = vrot.slane %v3089_v15, 1 }
 0x531   :  { %v3085_v20 = vadd.f32 %v3084_v16, %v3083_v11  ;;  %v3079_v21 = vadd.f32 %v3078_v17, %v3077_v13 }
 0x532   :  { %v3096_v22 = vmul.f32 0.125, %v3073_v18  ;;  %v3091_v23 = vadd.f32 %v3090_v19, %v3089_v15 }
 0x533   :  { %v3098_v26 = vmul.f32 0.125, %v3085_v20  ;;  %v3097_v29 = vmul.f32 0.125, %v3079_v21 }
 0x534   :  { %v3104_v33 = vadd.f32 1e-05, %v3096_v22  ;;  %v3099_v34 = vmul.f32 0.125, %v3091_v23 }
 0x535   :  { %v3106_v62 = vadd.f32 1e-05, %v3098_v26  ;;  %v3105_v27 = vadd.f32 1e-05, %v3097_v29 }
 0x536   :  { %8637 = vrsqrt.f32 %v3104_v33  ;;  %v3107_v40 = vadd.f32 1e-05, %v3099_v34 }
 0x537   :  { %8639 = vrsqrt.f32 %v3106_v62 }
 0x538   :  { %8641 = vrsqrt.f32 %v3105_v27 }
 0x539   :  { %8643 = vrsqrt.f32 %v3107_v40  ;;  %v2971_v40 = vld [vmem:[#allocation17] sm:$0xff] }
 0x540   :  { %v8638_v42 = vpop.eup %8637 }
 0x541   :  { %v8640_v56 = vpop.eup %8639 }
 0x542   :  { %v8642_v43 = vpop.eup %8641 }
 0x543   :  { %v8644_v44 = vpop.eup %8643  ;;  %v3126_v45 = vcombine.low %v8638_v42, %v8642_v43 }
 0x544   :  { %v3127_v46 = vcombine.low %v8640_v56, %v8644_v44 }
 0x545   :  { %v3148_v47 = vrot.slane %v3126_v45, %v9203_v32 }
 0x546   :  { %v3155_v50 = vrot.slane %v3127_v46, %v9203_v32 }
 0x548   :  { %v3157_v51 = vcombine.low %v3148_v47, %v3155_v50 }
 0x54a   :  { %v3171_v55 = vrot.slane %v3157_v51, %v9203_v32 }
 0x54c   :  { %v3172_v8 = vcombine.low %v3164_v53, %v3171_v55 }
 0x54e   :  { %v3174_v35 = vmul.f32 %v3172_v8, %v2970_v12 }
 0x550   :  { %v3179_v6 = vrot.slane %v3174_v35, %v9208_v38  ;;  %v3183_v63 = vrot.slane %v3174_v35, %v9211_v39  ;;  %v3187_v0 = vrot.slane %v3174_v35, %v9259_v24  ;;  %v3191_v7 = vrot.slane %v3174_v35, %v9262_v25 }
 0x551   :  { %v3195_v9 = vrot.slane %v3174_v35, %v9393_v49  ;;  %v3199_v11 = vrot.slane %v3174_v35, %v9396_v58  ;;  %v3203_v13 = vrot.slane %v3174_v35, %v9399_v2  ;;  %v3207_v14 = vrot.slane %v3174_v35, %v3206_v5 }
 0x552   :  { %v3216_v15 = vmul.f32 %v3179_v6, %v9329_v52  ;;  %v3217_v30 = vmul.f32 %v3183_v63, %v9333_v3  ;;  %v3218_v16 = vmul.f32 %v3187_v0, %v9331_v1  ;;  %v3219_v17 = vmul.f32 %v3191_v7, %v9335_v4 }
 0x553   :  { %v3220_v18 = vmul.f32 %v3195_v9, %v9369_v54  ;;  %v3221_v19 = vmul.f32 %v3199_v11, %v9373_v37  ;;  %v3222_v20 = vmul.f32 %v3203_v13, %v9371_v36  ;;  %v3223_v21 = vmul.f32 %v3207_v14, %v9377_v41 }
 0x554   :  { %v3232_v22 = vcombine.low %v3216_v15, %v3217_v30  ;;  %v3233_v23 = vcombine.low %v3218_v16, %v3219_v17  ;;  %v3290_v26 = vmul.f32 %v3207_v14, %v9362_v28  ;;  %v3284_v52 = vmul.f32 %v3183_v63, %v9319_v59  ;;  %v8081_v15 = vld [vmem:[#allocation19 + $0x3bc] ss:$28 sps:$4 sm:$0xff]   ;;  %v8084_v30 = vld [vmem:[#allocation19 + $0x3c4] ss:$28 sps:$4 sm:$0xff]  }
 0x555   :  { %v3234_v29 = vcombine.low %v3220_v18, %v3221_v19  ;;  %v3235_v3 = vcombine.low %v3222_v20, %v3223_v21  ;;  %v3283_v1 = vmul.f32 %v3179_v6, %v9313_v10  ;;  %v3286_v4 = vmul.f32 %v3191_v7, %v9321_v61  ;;  %v8079_v17 = vld [vmem:[#allocation19 + $0x3b8] ss:$28 sps:$4 sm:$0xff]   ;;  %v8082_v18 = vld [vmem:[#allocation19 + $0x3c0] ss:$28 sps:$4 sm:$0xff]   ;;  %v8085_v21 = vld [vmem:[#allocation19 + $0x3f0] ss:$28 sps:$4 sm:$0xff]  }
 0x556   :  { %v3242_v54 = vrot.slane %v3232_v22, %v9203_v32  ;;  %v3249_v37 = vrot.slane %v3233_v23, %v9203_v32  ;;  %v3285_v36 = vmul.f32 %v3187_v0, %v9315_v48  ;;  %v3288_v41 = vmul.f32 %v3199_v11, %v9358_v31  ;;  %v8073_v11 = vld [vmem:[#allocation19 + $0x380] ss:$28 sps:$4 sm:$0xff]   ;;  %v8087_v19 = vld [vmem:[#allocation19 + $0x3f4] ss:$28 sps:$4 sm:$0xff]   ;;  %v8093_v23 = vld [vmem:[#allocation19 + $0x42c] ss:$28 sps:$4 sm:$0xff]  }
 0x557   :  { %v3256_v33 = vrot.slane %v3234_v29, %v9203_v32  ;;  %v3263_v28 = vrot.slane %v3235_v3, %v9203_v32  ;;  %v3287_v59 = vmul.f32 %v3195_v9, %v9353_v57  ;;  %v3289_v34 = vmul.f32 %v3203_v13, %v9356_v60  ;;  %v8076_v13 = vld [vmem:[#allocation19 + $0x388] ss:$28 sps:$4 sm:$0xff]   ;;  %v8090_v20 = vld [vmem:[#allocation19 + $0x3fc] ss:$28 sps:$4 sm:$0xff]   ;;  %v8094_v29 = vld [vmem:[#allocation19 + $0x430] ss:$28 sps:$4 sm:$0xff]  }
 0x558   :  { %v3264_v62 = vcombine.low %v3242_v54, %v3249_v37  ;;  %v8088_v22 = vld [vmem:[#allocation19 + $0x3f8] ss:$28 sps:$4 sm:$0xff]   ;;  %v8099_v3 = vld [vmem:[#allocation19 + $0x464] ss:$28 sps:$4 sm:$0xff]  }
 0x559   :  { %v3265_v10 = vcombine.low %v3256_v33, %v3263_v28  ;;  %v8100_v54 = vld [vmem:[#allocation19 + $0x468] ss:$28 sps:$4 sm:$0xff]   ;;  %v8105_v37 = vld [vmem:[#allocation19 + $0x49c] ss:$28 sps:$4 sm:$0xff]   ;;  %v8111_v28 = vld [vmem:[#allocation19 + $0x4d4] ss:$28 sps:$4 sm:$0xff]  }
 0x55a   :  { %v3272_v61 = vrot.slane %v3264_v62, %v9203_v32  ;;  %v8106_v33 = vld [vmem:[#allocation19 + $0x4a0] ss:$28 sps:$4 sm:$0xff]   ;;  %v8112_v62 = vld [vmem:[#allocation19 + $0x4d8] ss:$28 sps:$4 sm:$0xff]  }
 0x55b   :  { %v3279_v27 = vrot.slane %v3265_v10, %v9203_v32  ;;  %v8117_v10 = vld [vmem:[#allocation19 + $0x50c] ss:$28 sps:$4 sm:$0xff]  }
 0x55d   :  { %v3280_v42 = vcombine.low %v3272_v61, %v3279_v27  ;;  %v8120_v61 = vld [vmem:[#allocation19 + $0x514] ss:$28 sps:$4 sm:$0xff]   ;;  %v8115_v27 = vld [vmem:[#allocation19 + $0x508] ss:$28 sps:$4 sm:$0xff]  }
 0x55f   :  { %v3282_v56 = vsub.f32 %v2971_v40, %v3280_v42  ;;  %v8118_v40 = vld [vmem:[#allocation19 + $0x510] ss:$28 sps:$4 sm:$0xff]   ;;  %v8123_v42 = vld [vmem:[#allocation19 + $0x544] ss:$28 sps:$4 sm:$0xff]  }
 0x561   :  { %v3323_v48 = vrot.slane %v3282_v56, %v3206_v5  ;;  %v3299_v31 = vrot.slane %v3282_v56, %v9211_v39  ;;  %v3295_v43 = vrot.slane %v3282_v56, %v9208_v38  ;;  %v3307_v44 = vrot.slane %v3282_v56, %v9262_v25 }
 0x562   :  { %v3303_v57 = vrot.slane %v3282_v56, %v9259_v24  ;;  %v3315_v60 = vrot.slane %v3282_v56, %v9396_v58  ;;  %v3311_v45 = vrot.slane %v3282_v56, %v9393_v49  ;;  %v3319_v46 = vrot.slane %v3282_v56, %v9399_v2  ;;  %v8126_v56 = vld [vmem:[#allocation19 + $0x54c] ss:$28 sps:$4 sm:$0xff]  }
 0x563   :  { %v9438_v47 = vadd.f32 %v3323_v48, %v3290_v26  ;;  %v3333_v32 = vadd.f32 %v3299_v31, %v3284_v52  ;;  %v3332_v50 = vadd.f32 %v3295_v43, %v3283_v1  ;;  %v3335_v51 = vadd.f32 %v3307_v44, %v3286_v4  ;;  %v8096_v26 = vld [vmem:[#allocation19 + $0x434] ss:$28 sps:$4 sm:$0xff]   ;;  %v8091_v52 = vld [vmem:[#allocation19 + $0x428] ss:$28 sps:$4 sm:$0xff]   ;;  %v8097_v4 = vld [vmem:[#allocation19 + $0x460] ss:$28 sps:$4 sm:$0xff]  }
 0x564   :  { %v9440_v53 = vadd.f32 %v3303_v57, %v3285_v36  ;;  %v9442_v55 = vadd.f32 %v3315_v60, %v3288_v41  ;;  %v9444_v12 = vadd.f32 %v3311_v45, %v3287_v59  ;;  %v9446_v8 = vadd.f32 %v3319_v46, %v3289_v34  ;;  %v8102_v1 = vld [vmem:[#allocation19 + $0x46c] ss:$28 sps:$4 sm:$0xff]   ;;  %v8108_v36 = vld [vmem:[#allocation19 + $0x4a4] ss:$28 sps:$4 sm:$0xff]   ;;  %v8103_v41 = vld [vmem:[#allocation19 + $0x498] ss:$28 sps:$4 sm:$0xff]  }
 0x565   :  { %v3341_v5 = vmul.f32 0.2, %v3333_v32  ;;  %v3340_v35 = vmul.f32 0.2, %v3332_v50  ;;  %v3343_v6 = vmul.f32 0.2, %v3335_v51 }
 0x566   :  { %v8114_v59 = vld [vmem:[#allocation19 + $0x4dc] ss:$28 sps:$4 sm:$0xff]   ;;  %v8109_v34 = vld [vmem:[#allocation19 + $0x4d0] ss:$28 sps:$4 sm:$0xff]   ;;  %v8124_v31 = vld [vmem:[#allocation19 + $0x548] ss:$28 sps:$4 sm:$0xff]  }
 0x567   :  { %v3349_v63 = vmax.f32 %v3333_v32, %v3341_v5  ;;  %v3348_v0 = vmax.f32 %v3332_v50, %v3340_v35  ;;  %v3351_v7 = vmax.f32 %v3335_v51, %v3343_v6  ;;  %v8121_v48 = vld [vmem:[#allocation19 + $0x540] ss:$28 sps:$4 sm:$0xff]   ;;  %v8127_v57 = vld [vmem:[#allocation19 + $0x578] ss:$28 sps:$4 sm:$0xff]   ;;  %v8133_v32 = vld [vmem:[#allocation19 + $0x5b0] ss:$28 sps:$4 sm:$0xff]  }
 0x568   :  { %v8129_v43 = vld [vmem:[#allocation19 + $0x57c] ss:$28 sps:$4 sm:$0xff]   ;;  %v8132_v44 = vld [vmem:[#allocation19 + $0x584] ss:$28 sps:$4 sm:$0xff]   ;;  %v8135_v45 = vld [vmem:[#allocation19 + $0x5b4] ss:$28 sps:$4 sm:$0xff]  }
 0x569   :  { %v9448_v9 = vpack.c.bf16 %v3349_v63, %v3349_v63  ;;  %v9450_v14 = vpack.c.bf16 %v3348_v0, %v3348_v0  ;;  %v9456_v16 = vpack.c.bf16 %v3351_v7, %v3351_v7  ;;  %v8130_v60 = vld [vmem:[#allocation19 + $0x580] ss:$28 sps:$4 sm:$0xff]   ;;  %v8136_v50 = vld [vmem:[#allocation19 + $0x5b8] ss:$28 sps:$4 sm:$0xff]   ;;  %v8141_v51 = vld [vmem:[#allocation19 + $0x5ec] ss:$28 sps:$4 sm:$0xff]  }
 0x56a   :  { %v8138_v46 = vld [vmem:[#allocation19 + $0x5bc] ss:$28 sps:$4 sm:$0xff]   ;;  %v8144_v5 = vld [vmem:[#allocation19 + $0x5f4] ss:$28 sps:$4 sm:$0xff]   ;;  %v8139_v35 = vld [vmem:[#allocation19 + $0x5e8] ss:$28 sps:$4 sm:$0xff]  }
 0x56b   :  { %6249 = vmatprep.mubr.bf16.mxu1 %v9448_v9  ;;  %6413 = vmatprep.mubr.bf16.mxu0 %v9448_v9  ;;  %v8142_v6 = vld [vmem:[#allocation19 + $0x5f0] ss:$28 sps:$4 sm:$0xff]   ;;  %v8147_v63 = vld [vmem:[#allocation19 + $0x624] ss:$28 sps:$4 sm:$0xff]  }
 0x56c   :  { %6250 = vmatmul.mubr.bf16.vlgmr.msra.gmra.mrb[8].mxu1 %v9450_v14  ;;  %6414 = vmatmul.mubr.bf16.vlgmr.msra.gmra.mrb[20].mxu0 %v9450_v14  ;;  %v8150_v0 = vld [vmem:[#allocation19 + $0x62c] ss:$28 sps:$4 sm:$0xff]   ;;  %v8145_v7 = vld [vmem:[#allocation19 + $0x620] ss:$28 sps:$4 sm:$0xff]  }
 0x56d   :  { %6259 = vmatpush1.bf16.msra.mxu1 %v8073_v11  ;;  %6423 = vmatpush1.bf16.msra.mxu0 %v8076_v13  ;;  %v8148_v11 = vld [vmem:[#allocation19 + $0x628] ss:$28 sps:$4 sm:$0xff]   ;;  %v8153_v13 = vld [vmem:[#allocation19 + $0x65c] ss:$28 sps:$4 sm:$0xff]  }
 0x56e   :  { %6290 = vmatprep.mubr.bf16.mxu1 %v9456_v16  ;;  %6454 = vmatprep.mubr.bf16.mxu0 %v9456_v16 }
 0x56f   :  { %6260 = vmatprep.subr.bf16.mxu1 %v8081_v15  ;;  %6424 = vmatprep.subr.bf16.mxu0 %v8084_v30  ;;  %v8156_v15 = vld [vmem:[#allocation19 + $0x664] ss:$28 sps:$4 sm:$0xff]   ;;  %v8151_v30 = vld [vmem:[#allocation19 + $0x658] ss:$28 sps:$4 sm:$0xff]  }
 0x571   :  { %6261 = vmatpush1.bf16.msra.mxu1 %v8079_v17  ;;  %6425 = vmatpush1.bf16.msra.mxu0 %v8082_v18  ;;  %v8154_v17 = vld [vmem:[#allocation19 + $0x660] ss:$28 sps:$4 sm:$0xff]   ;;  %v8159_v18 = vld [vmem:[#allocation19 + $0x694] ss:$28 sps:$4 sm:$0xff]  }
 0x572   :  { %6262 = vmatprep.subr.bf16.mxu1 %v8087_v19  ;;  %6426 = vmatprep.subr.bf16.mxu0 %v8090_v20  ;;  %v8162_v19 = vld [vmem:[#allocation19 + $0x69c] ss:$28 sps:$4 sm:$0xff]   ;;  %v8157_v20 = vld [vmem:[#allocation19 + $0x690] ss:$28 sps:$4 sm:$0xff]  }
 0x575   :  { %6263 = vmatpush1.bf16.msra.mxu1 %v8085_v21  ;;  %6427 = vmatpush1.bf16.msra.mxu0 %v8088_v22  ;;  %v8160_v21 = vld [vmem:[#allocation19 + $0x698] ss:$28 sps:$4 sm:$0xff]   ;;  %v8165_v22 = vld [vmem:[#allocation19 + $0x6cc] ss:$28 sps:$4 sm:$0xff]  }
 0x576   :  { %6264 = vmatprep.subr.bf16.mxu1 %v8093_v23  ;;  %6428 = vmatprep.subr.bf16.mxu0 %v8096_v26  ;;  %v8168_v23 = vld [vmem:[#allocation19 + $0x6d4] ss:$28 sps:$4 sm:$0xff]   ;;  %v3342_v26 = vmul.f32 0.2, %v9440_v53 }
 0x579   :  { %6265 = vmatpush1.bf16.msra.mxu1 %v8091_v52  ;;  %6429 = vmatpush1.bf16.msra.mxu0 %v8094_v29  ;;  %v3345_v52 = vmul.f32 0.2, %v9442_v55  ;;  %v8163_v29 = vld [vmem:[#allocation19 + $0x6c8] ss:$28 sps:$4 sm:$0xff]  }
 0x57a   :  { %6266 = vmatprep.subr.bf16.mxu1 %v8099_v3  ;;  %6430 = vmatprep.subr.bf16.mxu0 %v8102_v1  ;;  %v8166_v3 = vld [vmem:[#allocation19 + $0x6d0] ss:$28 sps:$4 sm:$0xff]   ;;  %v3350_v1 = vmax.f32 %v9440_v53, %v3342_v26  ;;  %v8175_v53 = vld [vmem:[#allocation19 + $0x738] ss:$28 sps:$4 sm:$0xff]  }
 0x57b   :  { %v8232_v26 = vld [vmem:[#allocation19 + $0x938] ss:$28 sps:$4 sm:$0xff]  }
 0x57d   :  { %6267 = vmatpush1.bf16.msra.mxu1 %v8097_v4  ;;  %6431 = vmatpush1.bf16.msra.mxu0 %v8100_v54  ;;  %v8171_v4 = vld [vmem:[#allocation19 + $0x704] ss:$28 sps:$4 sm:$0xff]   ;;  %v8174_v54 = vld [vmem:[#allocation19 + $0x70c] ss:$28 sps:$4 sm:$0xff]  }
 0x57e   :  { %6268 = vmatprep.subr.bf16.mxu1 %v8105_v37  ;;  %6432 = vmatprep.subr.bf16.mxu0 %v8108_v36  ;;  %v3353_v37 = vmax.f32 %v9442_v55, %v3345_v52  ;;  %v8169_v36 = vld [vmem:[#allocation19 + $0x700] ss:$28 sps:$4 sm:$0xff]   ;;  %v8237_v52 = vld [vmem:[#allocation19 + $0x96c] ss:$28 sps:$4 sm:$0xff]  }
 0x57f   :  { %v8178_v55 = vld [vmem:[#allocation19 + $0x740] ss:$28 sps:$4 sm:$0xff]  }
 0x581   :  { %6269 = vmatpush1.bf16.msra.mxu1 %v8103_v41  ;;  %6433 = vmatpush1.bf16.msra.mxu0 %v8106_v33  ;;  %v9464_v41 = vpack.c.bf16 %v3350_v1, %v3350_v1  ;;  %v8172_v33 = vld [vmem:[#allocation19 + $0x708] ss:$28 sps:$4 sm:$0xff]   ;;  %v8238_v1 = vld [vmem:[#allocation19 + $0x970] ss:$28 sps:$4 sm:$0xff]  }
 0x582   :  { %6270 = vmatprep.subr.bf16.mxu1 %v8111_v28  ;;  %6434 = vmatprep.subr.bf16.mxu0 %v8114_v59  ;;  %v9466_v28 = vpack.c.bf16 %v3353_v37, %v3353_v37  ;;  %v8177_v59 = vld [vmem:[#allocation19 + $0x73c] ss:$28 sps:$4 sm:$0xff]  }
 0x583   :  { %v8241_v37 = vld [vmem:[#allocation19 + $0x9a0] ss:$28 sps:$4 sm:$0xff]  }
 0x585   :  { %6271 = vmatpush1.bf16.msra.mxu1 %v8109_v34  ;;  %6435 = vmatpush1.bf16.msra.mxu0 %v8112_v62  ;;  %v8180_v34 = vld [vmem:[#allocation19 + $0x744] ss:$28 sps:$4 sm:$0xff]   ;;  %v8183_v62 = vld [vmem:[#allocation19 + $0x774] ss:$28 sps:$4 sm:$0xff]  }
 0x586   :  { %6272 = vmatprep.subr.bf16.mxu1 %v8117_v10  ;;  %6436 = vmatprep.subr.bf16.mxu0 %v8120_v61  ;;  %v8186_v10 = vld [vmem:[#allocation19 + $0x77c] ss:$28 sps:$4 sm:$0xff]   ;;  %v8181_v61 = vld [vmem:[#allocation19 + $0x770] ss:$28 sps:$4 sm:$0xff]  }
 0x589   :  { %6273 = vmatpush1.bf16.msra.mxu1 %v8115_v27  ;;  %6437 = vmatpush1.bf16.msra.mxu0 %v8118_v40  ;;  %v8184_v27 = vld [vmem:[#allocation19 + $0x778] ss:$28 sps:$4 sm:$0xff]   ;;  %v8189_v40 = vld [vmem:[#allocation19 + $0x7ac] ss:$28 sps:$4 sm:$0xff]  }
 0x58a   :  { %6274 = vmatprep.subr.bf16.mxu1 %v8123_v42  ;;  %6438 = vmatprep.subr.bf16.mxu0 %v8126_v56  ;;  %v8192_v42 = vld [vmem:[#allocation19 + $0x7b4] ss:$28 sps:$4 sm:$0xff]   ;;  %v8187_v56 = vld [vmem:[#allocation19 + $0x7a8] ss:$28 sps:$4 sm:$0xff]  }
 0x58d   :  { %6275 = vmatpush1.bf16.msra.mxu1 %v8121_v48  ;;  %6439 = vmatpush1.bf16.msra.mxu0 %v8124_v31  ;;  %v8190_v48 = vld [vmem:[#allocation19 + $0x7b0] ss:$28 sps:$4 sm:$0xff]   ;;  %v8195_v31 = vld [vmem:[#allocation19 + $0x7e4] ss:$28 sps:$4 sm:$0xff]  }
 0x58e   :  { %6276 = vmatprep.subr.bf16.mxu1 %v8129_v43  ;;  %6440 = vmatprep.subr.bf16.mxu0 %v8132_v44  ;;  %v8198_v43 = vld [vmem:[#allocation19 + $0x7ec] ss:$28 sps:$4 sm:$0xff]   ;;  %v8193_v44 = vld [vmem:[#allocation19 + $0x7e0] ss:$28 sps:$4 sm:$0xff]  }
 0x591   :  { %6277 = vmatpush1.bf16.msra.mxu1 %v8127_v57  ;;  %6441 = vmatpush1.bf16.msra.mxu0 %v8130_v60  ;;  %v8196_v57 = vld [vmem:[#allocation19 + $0x7e8] ss:$28 sps:$4 sm:$0xff]   ;;  %v8201_v60 = vld [vmem:[#allocation19 + $0x81c] ss:$28 sps:$4 sm:$0xff]  }
 0x592   :  { %6278 = vmatprep.subr.bf16.mxu1 %v8135_v45  ;;  %6442 = vmatprep.subr.bf16.mxu0 %v8138_v46  ;;  %v8204_v45 = vld [vmem:[#allocation19 + $0x824] ss:$28 sps:$4 sm:$0xff]   ;;  %v8199_v46 = vld [vmem:[#allocation19 + $0x818] ss:$28 sps:$4 sm:$0xff]  }
 0x595   :  { %6279 = vmatpush1.bf16.msra.mxu1 %v8133_v32  ;;  %6443 = vmatpush1.bf16.msra.mxu0 %v8136_v50  ;;  %v8202_v32 = vld [vmem:[#allocation19 + $0x820] ss:$28 sps:$4 sm:$0xff]   ;;  %v8207_v50 = vld [vmem:[#allocation19 + $0x854] ss:$28 sps:$4 sm:$0xff]  }
 0x596   :  { %6280 = vmatprep.subr.bf16.mxu1 %v8141_v51  ;;  %6444 = vmatprep.subr.bf16.mxu0 %v8144_v5  ;;  %v8210_v51 = vld [vmem:[#allocation19 + $0x85c] ss:$28 sps:$4 sm:$0xff]   ;;  %v8205_v5 = vld [vmem:[#allocation19 + $0x850] ss:$28 sps:$4 sm:$0xff]  }
 0x599   :  { %6281 = vmatpush1.bf16.msra.mxu1 %v8139_v35  ;;  %6445 = vmatpush1.bf16.msra.mxu0 %v8142_v6  ;;  %v8208_v35 = vld [vmem:[#allocation19 + $0x858] ss:$28 sps:$4 sm:$0xff]   ;;  %v8213_v6 = vld [vmem:[#allocation19 + $0x88c] ss:$28 sps:$4 sm:$0xff]  }
 0x59a   :  { %6282 = vmatprep.subr.bf16.mxu1 %v8147_v63  ;;  %6446 = vmatprep.subr.bf16.mxu0 %v8150_v0  ;;  %v8216_v63 = vld [vmem:[#allocation19 + $0x894] ss:$28 sps:$4 sm:$0xff]   ;;  %v8211_v0 = vld [vmem:[#allocation19 + $0x888] ss:$28 sps:$4 sm:$0xff]  }
 0x59d   :  { %6283 = vmatpush1.bf16.msra.mxu1 %v8145_v7  ;;  %6447 = vmatpush1.bf16.msra.mxu0 %v8148_v11  ;;  %v8214_v7 = vld [vmem:[#allocation19 + $0x890] ss:$28 sps:$4 sm:$0xff]   ;;  %v8219_v11 = vld [vmem:[#allocation19 + $0x8c4] ss:$28 sps:$4 sm:$0xff]  }
 0x59e   :  { %6284 = vmatprep.subr.bf16.mxu1 %v8153_v13  ;;  %6448 = vmatprep.subr.bf16.mxu0 %v8156_v15  ;;  %v8222_v13 = vld [vmem:[#allocation19 + $0x8cc] ss:$28 sps:$4 sm:$0xff]   ;;  %v8217_v15 = vld [vmem:[#allocation19 + $0x8c0] ss:$28 sps:$4 sm:$0xff]  }
 0x5a1   :  { %6285 = vmatpush1.bf16.msra.mxu1 %v8151_v30  ;;  %6449 = vmatpush1.bf16.msra.mxu0 %v8154_v17  ;;  %v8220_v30 = vld [vmem:[#allocation19 + $0x8c8] ss:$28 sps:$4 sm:$0xff]   ;;  %v8225_v17 = vld [vmem:[#allocation19 + $0x8fc] ss:$28 sps:$4 sm:$0xff]  }
 0x5a2   :  { %6286 = vmatprep.subr.bf16.mxu1 %v8159_v18  ;;  %6450 = vmatprep.subr.bf16.mxu0 %v8162_v19  ;;  %v8228_v18 = vld [vmem:[#allocation19 + $0x904] ss:$28 sps:$4 sm:$0xff]   ;;  %v8223_v19 = vld [vmem:[#allocation19 + $0x8f8] ss:$28 sps:$4 sm:$0xff]  }
 0x5a5   :  { %6287 = vmatpush1.bf16.msra.mxu1 %v8157_v20  ;;  %6451 = vmatpush1.bf16.msra.mxu0 %v8160_v21  ;;  %v8226_v20 = vld [vmem:[#allocation19 + $0x900] ss:$28 sps:$4 sm:$0xff]   ;;  %v8231_v21 = vld [vmem:[#allocation19 + $0x934] ss:$28 sps:$4 sm:$0xff]  }
 0x5a6   :  { %6288 = vmatprep.subr.bf16.mxu1 %v8165_v22  ;;  %6452 = vmatprep.subr.bf16.mxu0 %v8168_v23  ;;  %v8234_v22 = vld [vmem:[#allocation19 + $0x93c] ss:$28 sps:$4 sm:$0xff]   ;;  %v8229_v23 = vld [vmem:[#allocation19 + $0x930] ss:$28 sps:$4 sm:$0xff]  }
 0x5a9   :  { %6289 = vmatpush1.bf16.msra.mxu1 %v8163_v29  ;;  %6453 = vmatpush1.bf16.msra.mxu0 %v8166_v3  ;;  %v8240_v29 = vld [vmem:[#allocation19 + $0x974] ss:$28 sps:$4 sm:$0xff]   ;;  %v8235_v3 = vld [vmem:[#allocation19 + $0x968] ss:$28 sps:$4 sm:$0xff]  }
 0x5aa   :  { %6299 = vmatprep.subr.bf16.mxu1 %v8171_v4  ;;  %6463 = vmatprep.subr.bf16.mxu0 %v8174_v54  ;;  %v8243_v4 = vld [vmem:[#allocation19 + $0x9a4] ss:$28 sps:$4 sm:$0xff]   ;;  %v8246_v54 = vld [vmem:[#allocation19 + $0x9ac] ss:$28 sps:$4 sm:$0xff]  }
 0x5ac   :  { %6291 = vmatmul.mubr.bf16.vlgmr.msra.gmra.mrb[8].mxu1 %v9464_v41  ;;  %6455 = vmatmul.mubr.bf16.vlgmr.msra.gmra.mrb[20].mxu0 %v9464_v41 }
 0x5ad   :  { %6300 = vmatpush1.bf16.msra.mxu1 %v8169_v36  ;;  %6331 = vmatprep.mubr.bf16.mxu1 %v9466_v28  ;;  %v8244_v36 = vld [vmem:[#allocation19 + $0x9a8] ss:$28 sps:$4 sm:$0xff]  }
 0x5ae   :  { %6464 = vmatpush1.bf16.msra.mxu0 %v8172_v33  ;;  %6495 = vmatprep.mubr.bf16.mxu0 %v9466_v28  ;;  %v8249_v33 = vld [vmem:[#allocation19 + $0x9dc] ss:$28 sps:$4 sm:$0xff]  }
 0x5af   :  { %6301 = vmatprep.subr.bf16.mxu1 %v8177_v59  ;;  %6465 = vmatprep.subr.bf16.mxu0 %v8180_v34  ;;  %v8252_v59 = vld [vmem:[#allocation19 + $0x9e4] ss:$28 sps:$4 sm:$0xff]   ;;  %v8247_v34 = vld [vmem:[#allocation19 + $0x9d8] ss:$28 sps:$4 sm:$0xff]  }
 0x5b1   :  { %6302 = vmatpush1.bf16.msra.mxu1 %v8175_v53  ;;  %v8250_v53 = vld [vmem:[#allocation19 + $0x9e0] ss:$28 sps:$4 sm:$0xff]  }
 0x5b2   :  { %6466 = vmatpush1.bf16.msra.mxu0 %v8178_v55  ;;  %6303 = vmatprep.subr.bf16.mxu1 %v8183_v62  ;;  %v8255_v55 = vld [vmem:[#allocation19 + $0xa14] ss:$28 sps:$4 sm:$0xff]   ;;  %v8258_v62 = vld [vmem:[#allocation19 + $0xa1c] ss:$28 sps:$4 sm:$0xff]  }
 0x5b3   :  { %6467 = vmatprep.subr.bf16.mxu0 %v8186_v10  ;;  %v8253_v10 = vld [vmem:[#allocation19 + $0xa10] ss:$28 sps:$4 sm:$0xff]  }
 0x5b5   :  { %6304 = vmatpush1.bf16.msra.mxu1 %v8181_v61  ;;  %v8256_v61 = vld [vmem:[#allocation19 + $0xa18] ss:$28 sps:$4 sm:$0xff]  }
 0x5b6   :  { %6468 = vmatpush1.bf16.msra.mxu0 %v8184_v27  ;;  %6305 = vmatprep.subr.bf16.mxu1 %v8189_v40  ;;  %v8261_v27 = vld [vmem:[#allocation19 + $0xa4c] ss:$28 sps:$4 sm:$0xff]   ;;  %v3344_v40 = vmul.f32 0.2, %v9444_v12 }
 0x5b7   :  { %6469 = vmatprep.subr.bf16.mxu0 %v8192_v42  ;;  %v8264_v42 = vld [vmem:[#allocation19 + $0xa54] ss:$28 sps:$4 sm:$0xff]  }
 0x5b9   :  { %6306 = vmatpush1.bf16.msra.mxu1 %v8187_v56  ;;  %v3347_v56 = vmul.f32 0.2, %v9438_v47 }
 0x5ba   :  { %6470 = vmatpush1.bf16.msra.mxu0 %v8190_v48  ;;  %6307 = vmatprep.subr.bf16.mxu1 %v8195_v31  ;;  %v8259_v48 = vld [vmem:[#allocation19 + $0xa48] ss:$28 sps:$4 sm:$0xff]   ;;  %v8262_v31 = vld [vmem:[#allocation19 + $0xa50] ss:$28 sps:$4 sm:$0xff]  }
 0x5bb   :  { %6471 = vmatprep.subr.bf16.mxu0 %v8198_v43  ;;  %v3352_v43 = vmax.f32 %v9444_v12, %v3344_v40  ;;  %v8271_v12 = vld [vmem:[#allocation19 + $0xab8] ss:$28 sps:$4 sm:$0xff]   ;;  %v8325_v40 = vld [vmem:[#allocation19 + $0xcb0] ss:$28 sps:$4 sm:$0xff]  }
 0x5bd   :  { %6308 = vmatpush1.bf16.msra.mxu1 %v8193_v44  ;;  %v8267_v44 = vld [vmem:[#allocation19 + $0xa84] ss:$28 sps:$4 sm:$0xff]  }
 0x5be   :  { %6472 = vmatpush1.bf16.msra.mxu0 %v8196_v57  ;;  %6309 = vmatprep.subr.bf16.mxu1 %v8201_v60  ;;  %v8270_v57 = vld [vmem:[#allocation19 + $0xa8c] ss:$28 sps:$4 sm:$0xff]   ;;  %v3355_v60 = vmax.f32 %v9438_v47, %v3347_v56  ;;  %v8274_v47 = vld [vmem:[#allocation19 + $0xac0] ss:$28 sps:$4 sm:$0xff]  }
 0x5bf   :  { %6473 = vmatprep.subr.bf16.mxu0 %v8204_v45  ;;  %v8265_v45 = vld [vmem:[#allocation19 + $0xa80] ss:$28 sps:$4 sm:$0xff]   ;;  %v8333_v56 = vld [vmem:[#allocation19 + $0xcec] ss:$28 sps:$4 sm:$0xff]  }
 0x5c1   :  { %6310 = vmatpush1.bf16.msra.mxu1 %v8199_v46  ;;  %v9476_v46 = vpack.c.bf16 %v3352_v43, %v3352_v43  ;;  %v8334_v43 = vld [vmem:[#allocation19 + $0xcf0] ss:$28 sps:$4 sm:$0xff]  }
 0x5c2   :  { %6474 = vmatpush1.bf16.msra.mxu0 %v8202_v32  ;;  %6311 = vmatprep.subr.bf16.mxu1 %v8207_v50  ;;  %v8268_v32 = vld [vmem:[#allocation19 + $0xa88] ss:$28 sps:$4 sm:$0xff]   ;;  %v8273_v50 = vld [vmem:[#allocation19 + $0xabc] ss:$28 sps:$4 sm:$0xff]  }
 0x5c3   :  { %6475 = vmatprep.subr.bf16.mxu0 %v8210_v51  ;;  %v9479_v51 = vpack.c.bf16 %v3355_v60, %v3355_v60  ;;  %v8337_v60 = vld [vmem:[#allocation19 + $0xd20] ss:$28 sps:$4 sm:$0xff]  }
 0x5c5   :  { %6312 = vmatpush1.bf16.msra.mxu1 %v8205_v5  ;;  %v8276_v5 = vld [vmem:[#allocation19 + $0xac4] ss:$28 sps:$4 sm:$0xff]  }
 0x5c6   :  { %6476 = vmatpush1.bf16.msra.mxu0 %v8208_v35  ;;  %6313 = vmatprep.subr.bf16.mxu1 %v8213_v6  ;;  %v8279_v35 = vld [vmem:[#allocation19 + $0xaf4] ss:$28 sps:$4 sm:$0xff]   ;;  %v8282_v6 = vld [vmem:[#allocation19 + $0xafc] ss:$28 sps:$4 sm:$0xff]  }
 0x5c7   :  { %6477 = vmatprep.subr.bf16.mxu0 %v8216_v63  ;;  %v8277_v63 = vld [vmem:[#allocation19 + $0xaf0] ss:$28 sps:$4 sm:$0xff]  }
 0x5c9   :  { %6314 = vmatpush1.bf16.msra.mxu1 %v8211_v0  ;;  %v8280_v0 = vld [vmem:[#allocation19 + $0xaf8] ss:$28 sps:$4 sm:$0xff]  }
 0x5ca   :  { %6478 = vmatpush1.bf16.msra.mxu0 %v8214_v7  ;;  %6315 = vmatprep.subr.bf16.mxu1 %v8219_v11  ;;  %v8285_v7 = vld [vmem:[#allocation19 + $0xb2c] ss:$28 sps:$4 sm:$0xff]   ;;  %v8288_v11 = vld [vmem:[#allocation19 + $0xb34] ss:$28 sps:$4 sm:$0xff]  }
 0x5cb   :  { %6479 = vmatprep.subr.bf16.mxu0 %v8222_v13  ;;  %v8283_v13 = vld [vmem:[#allocation19 + $0xb28] ss:$28 sps:$4 sm:$0xff]  }
 0x5cd   :  { %6316 = vmatpush1.bf16.msra.mxu1 %v8217_v15  ;;  %v8286_v15 = vld [vmem:[#allocation19 + $0xb30] ss:$28 sps:$4 sm:$0xff]  }
 0x5ce   :  { %6480 = vmatpush1.bf16.msra.mxu0 %v8220_v30  ;;  %6317 = vmatprep.subr.bf16.mxu1 %v8225_v17  ;;  %v8291_v30 = vld [vmem:[#allocation19 + $0xb64] ss:$28 sps:$4 sm:$0xff]   ;;  %v8294_v17 = vld [vmem:[#allocation19 + $0xb6c] ss:$28 sps:$4 sm:$0xff]  }
 0x5cf   :  { %6481 = vmatprep.subr.bf16.mxu0 %v8228_v18  ;;  %v8289_v18 = vld [vmem:[#allocation19 + $0xb60] ss:$28 sps:$4 sm:$0xff]  }
 0x5d1   :  { %6318 = vmatpush1.bf16.msra.mxu1 %v8223_v19  ;;  %v8292_v19 = vld [vmem:[#allocation19 + $0xb68] ss:$28 sps:$4 sm:$0xff]  }
 0x5d2   :  { %6482 = vmatpush1.bf16.msra.mxu0 %v8226_v20  ;;  %6319 = vmatprep.subr.bf16.mxu1 %v8231_v21  ;;  %v8297_v20 = vld [vmem:[#allocation19 + $0xb9c] ss:$28 sps:$4 sm:$0xff]   ;;  %v8300_v21 = vld [vmem:[#allocation19 + $0xba4] ss:$28 sps:$4 sm:$0xff]  }
 0x5d3   :  { %6483 = vmatprep.subr.bf16.mxu0 %v8234_v22  ;;  %v8295_v22 = vld [vmem:[#allocation19 + $0xb98] ss:$28 sps:$4 sm:$0xff]  }
 0x5d5   :  { %6320 = vmatpush1.bf16.msra.mxu1 %v8229_v23  ;;  %v8298_v23 = vld [vmem:[#allocation19 + $0xba0] ss:$28 sps:$4 sm:$0xff]  }
 0x5d6   :  { %6484 = vmatpush1.bf16.msra.mxu0 %v8232_v26  ;;  %6321 = vmatprep.subr.bf16.mxu1 %v8237_v52  ;;  %v8303_v26 = vld [vmem:[#allocation19 + $0xbd4] ss:$28 sps:$4 sm:$0xff]   ;;  %v8306_v52 = vld [vmem:[#allocation19 + $0xbdc] ss:$28 sps:$4 sm:$0xff]  }
 0x5d7   :  { %6485 = vmatprep.subr.bf16.mxu0 %v8240_v29  ;;  %v8301_v29 = vld [vmem:[#allocation19 + $0xbd0] ss:$28 sps:$4 sm:$0xff]  }
 0x5d9   :  { %6322 = vmatpush1.bf16.msra.mxu1 %v8235_v3  ;;  %v8304_v3 = vld [vmem:[#allocation19 + $0xbd8] ss:$28 sps:$4 sm:$0xff]  }
 0x5da   :  { %6486 = vmatpush1.bf16.msra.mxu0 %v8238_v1  ;;  %6323 = vmatprep.subr.bf16.mxu1 %v8243_v4  ;;  %v8309_v1 = vld [vmem:[#allocation19 + $0xc0c] ss:$28 sps:$4 sm:$0xff]   ;;  %v8312_v4 = vld [vmem:[#allocation19 + $0xc14] ss:$28 sps:$4 sm:$0xff]  }
 0x5db   :  { %6487 = vmatprep.subr.bf16.mxu0 %v8246_v54  ;;  %v8307_v54 = vld [vmem:[#allocation19 + $0xc08] ss:$28 sps:$4 sm:$0xff]  }
 0x5dd   :  { %6324 = vmatpush1.bf16.msra.mxu1 %v8241_v37  ;;  %v8310_v37 = vld [vmem:[#allocation19 + $0xc10] ss:$28 sps:$4 sm:$0xff]  }
 0x5de   :  { %6488 = vmatpush1.bf16.msra.mxu0 %v8244_v36  ;;  %6325 = vmatprep.subr.bf16.mxu1 %v8249_v33  ;;  %v8315_v36 = vld [vmem:[#allocation19 + $0xc44] ss:$28 sps:$4 sm:$0xff]   ;;  %v8318_v33 = vld [vmem:[#allocation19 + $0xc4c] ss:$28 sps:$4 sm:$0xff]  }
 0x5df   :  { %6489 = vmatprep.subr.bf16.mxu0 %v8252_v59  ;;  %v8313_v59 = vld [vmem:[#allocation19 + $0xc40] ss:$28 sps:$4 sm:$0xff]  }
 0x5e1   :  { %6326 = vmatpush1.bf16.msra.mxu1 %v8247_v34  ;;  %v8316_v34 = vld [vmem:[#allocation19 + $0xc48] ss:$28 sps:$4 sm:$0xff]  }
 0x5e2   :  { %6490 = vmatpush1.bf16.msra.mxu0 %v8250_v53  ;;  %6327 = vmatprep.subr.bf16.mxu1 %v8255_v55  ;;  %v8321_v53 = vld [vmem:[#allocation19 + $0xc7c] ss:$28 sps:$4 sm:$0xff]   ;;  %v8324_v55 = vld [vmem:[#allocation19 + $0xc84] ss:$28 sps:$4 sm:$0xff]  }
 0x5e3   :  { %6491 = vmatprep.subr.bf16.mxu0 %v8258_v62  ;;  %v8319_v62 = vld [vmem:[#allocation19 + $0xc78] ss:$28 sps:$4 sm:$0xff]  }
 0x5e5   :  { %6328 = vmatpush1.bf16.msra.mxu1 %v8253_v10  ;;  %v8322_v10 = vld [vmem:[#allocation19 + $0xc80] ss:$28 sps:$4 sm:$0xff]  }
 0x5e6   :  { %6492 = vmatpush1.bf16.msra.mxu0 %v8256_v61  ;;  %6329 = vmatprep.subr.bf16.mxu1 %v8261_v27  ;;  %v8327_v61 = vld [vmem:[#allocation19 + $0xcb4] ss:$28 sps:$4 sm:$0xff]   ;;  %v8330_v27 = vld [vmem:[#allocation19 + $0xcbc] ss:$28 sps:$4 sm:$0xff]  }
 0x5e7   :  { %6493 = vmatprep.subr.bf16.mxu0 %v8264_v42  ;;  %v8328_v42 = vld [vmem:[#allocation19 + $0xcb8] ss:$28 sps:$4 sm:$0xff]  }
 0x5e9   :  { %6330 = vmatpush1.bf16.msra.mxu1 %v8259_v48  ;;  %v8336_v48 = vld [vmem:[#allocation19 + $0xcf4] ss:$28 sps:$4 sm:$0xff]  }
 0x5ea   :  { %6494 = vmatpush1.bf16.msra.mxu0 %v8262_v31  ;;  %6340 = vmatprep.subr.bf16.mxu1 %v8267_v44  ;;  %v8331_v31 = vld [vmem:[#allocation19 + $0xce8] ss:$28 sps:$4 sm:$0xff]  }
 0x5eb   :  { %6504 = vmatprep.subr.bf16.mxu0 %v8270_v57  ;;  %v8339_v44 = vld [vmem:[#allocation19 + $0xd24] ss:$28 sps:$4 sm:$0xff]   ;;  %v8342_v57 = vld [vmem:[#allocation19 + $0xd2c] ss:$28 sps:$4 sm:$0xff]  }
 0x5ec   :  { %6332 = vmatmul.mubr.bf16.vlgmr.msra.gmra.mrb[8].mxu1 %v9476_v46 }
 0x5ed   :  { %6496 = vmatmul.mubr.bf16.vlgmr.msra.gmra.mrb[20].mxu0 %v9476_v46  ;;  %6341 = vmatpush1.bf16.msra.mxu1 %v8265_v45  ;;  %v8340_v45 = vld [vmem:[#allocation19 + $0xd28] ss:$28 sps:$4 sm:$0xff]  }
 0x5ee   :  { %6372 = vmatprep.mubr.bf16.mxu1 %v9479_v51  ;;  %6505 = vmatpush1.bf16.msra.mxu0 %v8268_v32  ;;  %v8345_v32 = vld [vmem:[#allocation19 + $0xd5c] ss:$28 sps:$4 sm:$0xff]  }
 0x5ef   :  { %6536 = vmatprep.mubr.bf16.mxu0 %v9479_v51  ;;  %6342 = vmatprep.subr.bf16.mxu1 %v8273_v50  ;;  %v8348_v50 = vld [vmem:[#allocation19 + $0xd64] ss:$28 sps:$4 sm:$0xff]  }
 0x5f0   :  { %6506 = vmatprep.subr.bf16.mxu0 %v8276_v5  ;;  %v8343_v5 = vld [vmem:[#allocation19 + $0xd58] ss:$28 sps:$4 sm:$0xff]  }
 0x5f1   :  { %6343 = vmatpush1.bf16.msra.mxu1 %v8271_v12  ;;  %v8346_v12 = vld [vmem:[#allocation19 + $0xd60] ss:$28 sps:$4 sm:$0xff]  }
 0x5f2   :  { %6507 = vmatpush1.bf16.msra.mxu0 %v8274_v47  ;;  %6344 = vmatprep.subr.bf16.mxu1 %v8279_v35  ;;  %v8351_v47 = vld [vmem:[#allocation19 + $0xd94] ss:$28 sps:$4 sm:$0xff]   ;;  %v8354_v35 = vld [vmem:[#allocation19 + $0xd9c] ss:$28 sps:$4 sm:$0xff]  }
 0x5f3   :  { %6508 = vmatprep.subr.bf16.mxu0 %v8282_v6  ;;  %v8349_v6 = vld [vmem:[#allocation19 + $0xd90] ss:$28 sps:$4 sm:$0xff]  }
 0x5f5   :  { %6345 = vmatpush1.bf16.msra.mxu1 %v8277_v63  ;;  %v8352_v63 = vld [vmem:[#allocation19 + $0xd98] ss:$28 sps:$4 sm:$0xff]  }
 0x5f6   :  { %6509 = vmatpush1.bf16.msra.mxu0 %v8280_v0  ;;  %6346 = vmatprep.subr.bf16.mxu1 %v8285_v7  ;;  %v8357_v0 = vld [vmem:[#allocation19 + $0xdcc] ss:$28 sps:$4 sm:$0xff]   ;;  %v3346_v7 = vmul.f32 0.2, %v9446_v8 }
 0x5f7   :  { %6510 = vmatprep.subr.bf16.mxu0 %v8288_v11  ;;  %v8360_v11 = vld [vmem:[#allocation19 + $0xdd4] ss:$28 sps:$4 sm:$0xff]  }
 0x5f9   :  { %6347 = vmatpush1.bf16.msra.mxu1 %v8283_v13  ;;  %v8355_v13 = vld [vmem:[#allocation19 + $0xdc8] ss:$28 sps:$4 sm:$0xff]  }
 0x5fa   :  { %6511 = vmatpush1.bf16.msra.mxu0 %v8286_v15  ;;  %6348 = vmatprep.subr.bf16.mxu1 %v8291_v30  ;;  %v8358_v15 = vld [vmem:[#allocation19 + $0xdd0] ss:$28 sps:$4 sm:$0xff]   ;;  %v3354_v30 = vmax.f32 %v9446_v8, %v3346_v7  ;;  %v8419_v7 = vld [vmem:[#allocation19 + $0x600] ss:$28 sps:$4 sm:$0xff]  }
 0x5fb   :  { %6512 = vmatprep.subr.bf16.mxu0 %v8294_v17  ;;  %v8363_v17 = vld [vmem:[#allocation19 + $0x14] ss:$28 sps:$4 sm:$0xff]  }
 0x5fc   :  { %v8370_v8 = vld [vmem:[#allocation19 + $0x50] ss:$28 sps:$4 sm:$0xff]  }
 0x5fd   :  { %6349 = vmatpush1.bf16.msra.mxu1 %v8289_v18  ;;  %v8364_v18 = vld [vmem:[#allocation19 + $0x1d8] ss:$28 sps:$4 sm:$0xff]  }
 0x5fe   :  { %6513 = vmatpush1.bf16.msra.mxu0 %v8292_v19  ;;  %6350 = vmatprep.subr.bf16.mxu1 %v8297_v20  ;;  %v8361_v19 = vld [vmem:[#allocation19 + $0x10] ss:$28 sps:$4 sm:$0xff]   ;;  %v9486_v20 = vpack.c.bf16 %v3354_v30, %v3354_v30  ;;  %v8424_v30 = vld [vmem:[#allocation19 + $0x638] ss:$28 sps:$4 sm:$0xff]  }
 0x5ff   :  { %6514 = vmatprep.subr.bf16.mxu0 %v8300_v21  ;;  %v8365_v21 = vld [vmem:[#allocation19 + $0x18] ss:$28 sps:$4 sm:$0xff]  }
 0x601   :  { %6351 = vmatpush1.bf16.msra.mxu1 %v8295_v22  ;;  %v8368_v22 = vld [vmem:[#allocation19 + $0x4c] ss:$28 sps:$4 sm:$0xff]  }
 0x602   :  { %6515 = vmatpush1.bf16.msra.mxu0 %v8298_v23  ;;  %6352 = vmatprep.subr.bf16.mxu1 %v8303_v26  ;;  %v8369_v23 = vld [vmem:[#allocation19 + $0x210] ss:$28 sps:$4 sm:$0xff]   ;;  %v8366_v26 = vld [vmem:[#allocation19 + $0x48] ss:$28 sps:$4 sm:$0xff]  }
 0x603   :  { %6516 = vmatprep.subr.bf16.mxu0 %v8306_v52  ;;  %v8373_v52 = vld [vmem:[#allocation19 + $0x84] ss:$28 sps:$4 sm:$0xff]  }
 0x605   :  { %6353 = vmatpush1.bf16.msra.mxu1 %v8301_v29  ;;  %v8374_v29 = vld [vmem:[#allocation19 + $0x248] ss:$28 sps:$4 sm:$0xff]  }
 0x606   :  { %6517 = vmatpush1.bf16.msra.mxu0 %v8304_v3  ;;  %6354 = vmatprep.subr.bf16.mxu1 %v8309_v1  ;;  %v8371_v3 = vld [vmem:[#allocation19 + $0x80] ss:$28 sps:$4 sm:$0xff]   ;;  %v8375_v1 = vld [vmem:[#allocation19 + $0x88] ss:$28 sps:$4 sm:$0xff]  }
 0x607   :  { %6518 = vmatprep.subr.bf16.mxu0 %v8312_v4  ;;  %v8378_v4 = vld [vmem:[#allocation19 + $0xbc] ss:$28 sps:$4 sm:$0xff]  }
 0x609   :  { %6355 = vmatpush1.bf16.msra.mxu1 %v8307_v54  ;;  %v8379_v54 = vld [vmem:[#allocation19 + $0x280] ss:$28 sps:$4 sm:$0xff]  }
 0x60a   :  { %6519 = vmatpush1.bf16.msra.mxu0 %v8310_v37  ;;  %6356 = vmatprep.subr.bf16.mxu1 %v8315_v36  ;;  %v8376_v37 = vld [vmem:[#allocation19 + $0xb8] ss:$28 sps:$4 sm:$0xff]   ;;  %v8380_v36 = vld [vmem:[#allocation19 + $0xc0] ss:$28 sps:$4 sm:$0xff]  }
 0x60b   :  { %6520 = vmatprep.subr.bf16.mxu0 %v8318_v33  ;;  %v8383_v33 = vld [vmem:[#allocation19 + $0xf4] ss:$28 sps:$4 sm:$0xff]  }
 0x60d   :  { %6357 = vmatpush1.bf16.msra.mxu1 %v8313_v59  ;;  %v8384_v59 = vld [vmem:[#allocation19 + $0x2b8] ss:$28 sps:$4 sm:$0xff]  }
 0x60e   :  { %6521 = vmatpush1.bf16.msra.mxu0 %v8316_v34  ;;  %6358 = vmatprep.subr.bf16.mxu1 %v8321_v53  ;;  %v8385_v34 = vld [vmem:[#allocation19 + $0xf8] ss:$28 sps:$4 sm:$0xff]   ;;  %v8388_v53 = vld [vmem:[#allocation19 + $0x12c] ss:$28 sps:$4 sm:$0xff]  }
 0x60f   :  { %6522 = vmatprep.subr.bf16.mxu0 %v8324_v55  ;;  %v8389_v55 = vld [vmem:[#allocation19 + $0x2f0] ss:$28 sps:$4 sm:$0xff]  }
 0x611   :  { %6359 = vmatpush1.bf16.msra.mxu1 %v8319_v62  ;;  %v8386_v62 = vld [vmem:[#allocation19 + $0x128] ss:$28 sps:$4 sm:$0xff]  }
 0x612   :  { %6523 = vmatpush1.bf16.msra.mxu0 %v8322_v10  ;;  %6360 = vmatprep.subr.bf16.mxu1 %v8327_v61  ;;  %v8390_v10 = vld [vmem:[#allocation19 + $0x130] ss:$28 sps:$4 sm:$0xff]   ;;  %v8393_v61 = vld [vmem:[#allocation19 + $0x164] ss:$28 sps:$4 sm:$0xff]  }
 0x613   :  { %6524 = vmatprep.subr.bf16.mxu0 %v8330_v27  ;;  %v8394_v27 = vld [vmem:[#allocation19 + $0x328] ss:$28 sps:$4 sm:$0xff]  }
 0x615   :  { %6361 = vmatpush1.bf16.msra.mxu1 %v8325_v40  ;;  %v8391_v40 = vld [vmem:[#allocation19 + $0x160] ss:$28 sps:$4 sm:$0xff]  }
 0x616   :  { %6525 = vmatpush1.bf16.msra.mxu0 %v8328_v42  ;;  %6362 = vmatprep.subr.bf16.mxu1 %v8333_v56  ;;  %v8395_v42 = vld [vmem:[#allocation19 + $0x168] ss:$28 sps:$4 sm:$0xff]   ;;  %v8398_v56 = vld [vmem:[#allocation19 + $0x19c] ss:$28 sps:$4 sm:$0xff]  }
 0x617   :  { %6526 = vmatprep.subr.bf16.mxu0 %v8336_v48  ;;  %v8399_v48 = vld [vmem:[#allocation19 + $0x360] ss:$28 sps:$4 sm:$0xff]  }
 0x619   :  { %6363 = vmatpush1.bf16.msra.mxu1 %v8331_v31  ;;  %v8396_v31 = vld [vmem:[#allocation19 + $0x198] ss:$28 sps:$4 sm:$0xff]  }
 0x61a   :  { %6527 = vmatpush1.bf16.msra.mxu0 %v8334_v43  ;;  %6364 = vmatprep.subr.bf16.mxu1 %v8339_v44  ;;  %v8400_v43 = vld [vmem:[#allocation19 + $0x1a0] ss:$28 sps:$4 sm:$0xff]   ;;  %v8403_v44 = vld [vmem:[#allocation19 + $0x1d4] ss:$28 sps:$4 sm:$0xff]  }
 0x61b   :  { %6528 = vmatprep.subr.bf16.mxu0 %v8342_v57  ;;  %v8404_v57 = vld [vmem:[#allocation19 + $0x558] ss:$28 sps:$4 sm:$0xff]  }
 0x61d   :  { %6365 = vmatpush1.bf16.msra.mxu1 %v8337_v60  ;;  %v8401_v60 = vld [vmem:[#allocation19 + $0x1d0] ss:$28 sps:$4 sm:$0xff]  }
 0x61e   :  { %6529 = vmatpush1.bf16.msra.mxu0 %v8340_v45  ;;  %6366 = vmatprep.subr.bf16.mxu1 %v8345_v32  ;;  %v8405_v45 = vld [vmem:[#allocation19 + $0x398] ss:$28 sps:$4 sm:$0xff]   ;;  %v8408_v32 = vld [vmem:[#allocation19 + $0x20c] ss:$28 sps:$4 sm:$0xff]  }
 0x61f   :  { %6530 = vmatprep.subr.bf16.mxu0 %v8348_v50  ;;  %v8409_v50 = vld [vmem:[#allocation19 + $0x590] ss:$28 sps:$4 sm:$0xff]  }
 0x621   :  { %6367 = vmatpush1.bf16.msra.mxu1 %v8343_v5  ;;  %v8406_v5 = vld [vmem:[#allocation19 + $0x208] ss:$28 sps:$4 sm:$0xff]  }
 0x622   :  { %6531 = vmatpush1.bf16.msra.mxu0 %v8346_v12  ;;  %6368 = vmatprep.subr.bf16.mxu1 %v8351_v47  ;;  %v8410_v12 = vld [vmem:[#allocation19 + $0x3d0] ss:$28 sps:$4 sm:$0xff]   ;;  %v8413_v47 = vld [vmem:[#allocation19 + $0x244] ss:$28 sps:$4 sm:$0xff]  }
 0x623   :  { %6532 = vmatprep.subr.bf16.mxu0 %v8354_v35  ;;  %v8414_v35 = vld [vmem:[#allocation19 + $0x5c8] ss:$28 sps:$4 sm:$0xff]  }
 0x625   :  { %6369 = vmatpush1.bf16.msra.mxu1 %v8349_v6  ;;  %v8411_v6 = vld [vmem:[#allocation19 + $0x240] ss:$28 sps:$4 sm:$0xff]  }
 0x626   :  { %6533 = vmatpush1.bf16.msra.mxu0 %v8352_v63  ;;  %6370 = vmatprep.subr.bf16.mxu1 %v8357_v0  ;;  %v8415_v63 = vld [vmem:[#allocation19 + $0x408] ss:$28 sps:$4 sm:$0xff]   ;;  %v8418_v0 = vld [vmem:[#allocation19 + $0x27c] ss:$28 sps:$4 sm:$0xff]  }
 0x627   :  { %6534 = vmatprep.subr.bf16.mxu0 %v8360_v11  ;;  %v8416_v11 = vld [vmem:[#allocation19 + $0x278] ss:$28 sps:$4 sm:$0xff]  }
 0x629   :  { %6371 = vmatpush1.bf16.msra.mxu1 %v8355_v13  ;;  %v8420_v13 = vld [vmem:[#allocation19 + $0x440] ss:$28 sps:$4 sm:$0xff]  }
 0x62a   :  { %6535 = vmatpush1.bf16.msra.mxu0 %v8358_v15  ;;  %6545 = vmatprep.subr.bf16.mxu1 %v8363_v17  ;;  %v8423_v15 = vld [vmem:[#allocation19 + $0x2b4] ss:$28 sps:$4 sm:$0xff]  }
 0x62b   :  { %7688 = vmatprep.subr.bf16.mxu0 %v8364_v18  ;;  %v8421_v17 = vld [vmem:[#allocation19 + $0x2b0] ss:$28 sps:$4 sm:$0xff]   ;;  %v8425_v18 = vld [vmem:[#allocation19 + $0x478] ss:$28 sps:$4 sm:$0xff]  }
 0x62c   :  { %6373 = vmatmul.mubr.bf16.vlgmr.msra.gmra.mrb[8].mxu1 %v9486_v20 }
 0x62d   :  { %6537 = vmatmul.mubr.bf16.vlgmr.msra.gmra.mrb[20].mxu0 %v9486_v20  ;;  %6546 = vmatpush1.bf16.msra.mxu1 %v8361_v19  ;;  %v8428_v19 = vld [vmem:[#allocation19 + $0x2ec] ss:$28 sps:$4 sm:$0xff]  }
 0x62e   :  { %6577 = vmatprep.mubr.bf16.mxu1 %v9448_v9  ;;  %7689 = vmatpush3.bf16.msra.mxu0 %v8365_v21  ;;  %v8429_v21 = vld [vmem:[#allocation19 + $0x670] ss:$28 sps:$4 sm:$0xff]  }
 0x62f   :  { %6741 = vmatprep.mubr.bf16.mxu0 %v9448_v9  ;;  %6547 = vmatprep.subr.bf16.mxu1 %v8368_v22  ;;  %v8381_v9 = vld [vmem:[#allocation19 + $0xf0] ss:$28 sps:$4 sm:$0xff]   ;;  %v8426_v22 = vld [vmem:[#allocation19 + $0x2e8] ss:$28 sps:$4 sm:$0xff]  }
 0x630   :  { %7690 = vmatprep.subr.bf16.mxu0 %v8369_v23  ;;  %v8430_v23 = vld [vmem:[#allocation19 + $0x4b0] ss:$28 sps:$4 sm:$0xff]  }
 0x631   :  { %6548 = vmatpush1.bf16.msra.mxu1 %v8366_v26  ;;  %v8433_v26 = vld [vmem:[#allocation19 + $0x324] ss:$28 sps:$4 sm:$0xff]  }
 0x632   :  { %7691 = vmatpush3.bf16.msra.mxu0 %v8370_v8  ;;  %6549 = vmatprep.subr.bf16.mxu1 %v8373_v52  ;;  %v8434_v8 = vld [vmem:[#allocation19 + $0x6a8] ss:$28 sps:$4 sm:$0xff]   ;;  %v8431_v52 = vld [vmem:[#allocation19 + $0x320] ss:$28 sps:$4 sm:$0xff]  }
 0x633   :  { %7692 = vmatprep.subr.bf16.mxu0 %v8374_v29  ;;  %v8435_v29 = vld [vmem:[#allocation19 + $0x4e8] ss:$28 sps:$4 sm:$0xff]  }
 0x635   :  { %6550 = vmatpush1.bf16.msra.mxu1 %v8371_v3  ;;  %v8438_v3 = vld [vmem:[#allocation19 + $0x35c] ss:$28 sps:$4 sm:$0xff]  }
 0x636   :  { %7693 = vmatpush3.bf16.msra.mxu0 %v8375_v1  ;;  %6551 = vmatprep.subr.bf16.mxu1 %v8378_v4  ;;  %v8439_v1 = vld [vmem:[#allocation19 + $0x6e0] ss:$28 sps:$4 sm:$0xff]   ;;  %v8436_v4 = vld [vmem:[#allocation19 + $0x358] ss:$28 sps:$4 sm:$0xff]  }
 0x637   :  { %7694 = vmatprep.subr.bf16.mxu0 %v8379_v54  ;;  %v8440_v54 = vld [vmem:[#allocation19 + $0x520] ss:$28 sps:$4 sm:$0xff]  }
 0x639   :  { %6552 = vmatpush1.bf16.msra.mxu1 %v8376_v37  ;;  %v8443_v37 = vld [vmem:[#allocation19 + $0x394] ss:$28 sps:$4 sm:$0xff]  }
 0x63a   :  { %7695 = vmatpush3.bf16.msra.mxu0 %v8380_v36  ;;  %6553 = vmatprep.subr.bf16.mxu1 %v8383_v33  ;;  %v8444_v36 = vld [vmem:[#allocation19 + $0x8d8] ss:$28 sps:$4 sm:$0xff]   ;;  %v8441_v33 = vld [vmem:[#allocation19 + $0x390] ss:$28 sps:$4 sm:$0xff]  }
 0x63b   :  { %7696 = vmatprep.subr.bf16.mxu0 %v8384_v59  ;;  %v8445_v59 = vld [vmem:[#allocation19 + $0x718] ss:$28 sps:$4 sm:$0xff]  }
 0x63d   :  { %6554 = vmatpush1.bf16.msra.mxu1 %v8381_v9  ;;  %v8448_v9 = vld [vmem:[#allocation19 + $0x3cc] ss:$28 sps:$4 sm:$0xff]  }
 0x63e   :  { %7697 = vmatpush3.bf16.msra.mxu0 %v8385_v34  ;;  %6555 = vmatprep.subr.bf16.mxu1 %v8388_v53  ;;  %v8449_v34 = vld [vmem:[#allocation19 + $0x910] ss:$28 sps:$4 sm:$0xff]   ;;  %v8446_v53 = vld [vmem:[#allocation19 + $0x3c8] ss:$28 sps:$4 sm:$0xff]  }
 0x63f   :  { %7698 = vmatprep.subr.bf16.mxu0 %v8389_v55  ;;  %v8450_v55 = vld [vmem:[#allocation19 + $0x750] ss:$28 sps:$4 sm:$0xff]  }
 0x641   :  { %6556 = vmatpush1.bf16.msra.mxu1 %v8386_v62  ;;  %v8453_v62 = vld [vmem:[#allocation19 + $0x404] ss:$28 sps:$4 sm:$0xff]  }
 0x642   :  { %7699 = vmatpush3.bf16.msra.mxu0 %v8390_v10  ;;  %6557 = vmatprep.subr.bf16.mxu1 %v8393_v61  ;;  %v8454_v10 = vld [vmem:[#allocation19 + $0x948] ss:$28 sps:$4 sm:$0xff]   ;;  %v8451_v61 = vld [vmem:[#allocation19 + $0x400] ss:$28 sps:$4 sm:$0xff]  }
 0x643   :  { %7700 = vmatprep.subr.bf16.mxu0 %v8394_v27  ;;  %v8458_v27 = vld [vmem:[#allocation19 + $0x43c] ss:$28 sps:$4 sm:$0xff]  }
 0x645   :  { %6558 = vmatpush1.bf16.msra.mxu1 %v8391_v40  ;;  %v8459_v40 = vld [vmem:[#allocation19 + $0x980] ss:$28 sps:$4 sm:$0xff]  }
 0x646   :  { %7701 = vmatpush3.bf16.msra.mxu0 %v8395_v42  ;;  %6559 = vmatprep.subr.bf16.mxu1 %v8398_v56  ;;  %v8456_v42 = vld [vmem:[#allocation19 + $0x438] ss:$28 sps:$4 sm:$0xff]  }
 0x647   :  { %7702 = vmatprep.subr.bf16.mxu0 %v8399_v48  ;;  %v8463_v56 = vld [vmem:[#allocation19 + $0x474] ss:$28 sps:$4 sm:$0xff]  }
 0x648   :  { %v8464_v48 = vld [vmem:[#allocation19 + $0x9b8] ss:$28 sps:$4 sm:$0xff]  }
 0x649   :  { %6560 = vmatpush1.bf16.msra.mxu1 %v8396_v31  ;;  %v8461_v31 = vld [vmem:[#allocation19 + $0x470] ss:$28 sps:$4 sm:$0xff]  }
 0x64a   :  { %7703 = vmatpush3.bf16.msra.mxu0 %v8400_v43  ;;  %6561 = vmatprep.subr.bf16.mxu1 %v8403_v44  ;;  %v8465_v43 = vld [vmem:[#allocation19 + $0x7f8] ss:$28 sps:$4 sm:$0xff]   ;;  %v8468_v44 = vld [vmem:[#allocation19 + $0x4ac] ss:$28 sps:$4 sm:$0xff]  }
 0x64b   :  { %7710 = vmatprep.subr.bf16.mxu0 %v8404_v57  ;;  %v8469_v57 = vld [vmem:[#allocation19 + $0x9f0] ss:$28 sps:$4 sm:$0xff]  }
 0x64d   :  { %6742 = vmatmul.mubr.bf16.vlgmr.msra.gmra.mrb[24].mxu0 %v9450_v14  ;;  %6562 = vmatpush1.bf16.msra.mxu1 %v8401_v60  ;;  %v8466_v60 = vld [vmem:[#allocation19 + $0x4a8] ss:$28 sps:$4 sm:$0xff]  }
 0x64e   :  { %7711 = vmatpush3.bf16.msra.mxu0 %v8405_v45  ;;  %6781 = vmatprep.mubr.bf16.mxu0 %v9456_v16  ;;  %v8470_v45 = vld [vmem:[#allocation19 + $0x830] ss:$28 sps:$4 sm:$0xff]  }
 0x64f   :  { %6563 = vmatprep.subr.bf16.mxu1 %v8408_v32  ;;  %7712 = vmatprep.subr.bf16.mxu0 %v8409_v50  ;;  %v8473_v32 = vld [vmem:[#allocation19 + $0x4e4] ss:$28 sps:$4 sm:$0xff]  }
 0x650   :  { %v8474_v50 = vld [vmem:[#allocation19 + $0xa28] ss:$28 sps:$4 sm:$0xff]  }
 0x651   :  { %6564 = vmatpush1.bf16.msra.mxu1 %v8406_v5  ;;  %v8471_v5 = vld [vmem:[#allocation19 + $0x4e0] ss:$28 sps:$4 sm:$0xff]  }
 0x652   :  { %7713 = vmatpush3.bf16.msra.mxu0 %v8410_v12  ;;  %6565 = vmatprep.subr.bf16.mxu1 %v8413_v47  ;;  %v8475_v12 = vld [vmem:[#allocation19 + $0x868] ss:$28 sps:$4 sm:$0xff]   ;;  %v8478_v47 = vld [vmem:[#allocation19 + $0x51c] ss:$28 sps:$4 sm:$0xff]  }
 0x653   :  { %7714 = vmatprep.subr.bf16.mxu0 %v8414_v35  ;;  %v8479_v35 = vld [vmem:[#allocation19 + $0xa60] ss:$28 sps:$4 sm:$0xff]  }
 0x655   :  { %6566 = vmatpush1.bf16.msra.mxu1 %v8411_v6  ;;  %v8476_v6 = vld [vmem:[#allocation19 + $0x518] ss:$28 sps:$4 sm:$0xff]  }
 0x656   :  { %7715 = vmatpush3.bf16.msra.mxu0 %v8415_v63  ;;  %6567 = vmatprep.subr.bf16.mxu1 %v8418_v0  ;;  %v8480_v63 = vld [vmem:[#allocation19 + $0x8a0] ss:$28 sps:$4 sm:$0xff]   ;;  %v8483_v0 = vld [vmem:[#allocation19 + $0x554] ss:$28 sps:$4 sm:$0xff]  }
 0x657   :  { %7716 = vmatprep.subr.bf16.mxu0 %v8419_v7  ;;  %v8484_v7 = vld [vmem:[#allocation19 + $0xc58] ss:$28 sps:$4 sm:$0xff]  }
 0x659   :  { %6568 = vmatpush1.bf16.msra.mxu1 %v8416_v11  ;;  %v8481_v11 = vld [vmem:[#allocation19 + $0x550] ss:$28 sps:$4 sm:$0xff]  }
 0x65a   :  { %7717 = vmatpush3.bf16.msra.mxu0 %v8420_v13  ;;  %6569 = vmatprep.subr.bf16.mxu1 %v8423_v15  ;;  %v8485_v13 = vld [vmem:[#allocation19 + $0xa98] ss:$28 sps:$4 sm:$0xff]   ;;  %v8488_v15 = vld [vmem:[#allocation19 + $0x58c] ss:$28 sps:$4 sm:$0xff]  }
 0x65b   :  { %7718 = vmatprep.subr.bf16.mxu0 %v8424_v30  ;;  %v8489_v30 = vld [vmem:[#allocation19 + $0xc90] ss:$28 sps:$4 sm:$0xff]  }
 0x65d   :  { %6570 = vmatpush1.bf16.msra.mxu1 %v8421_v17  ;;  %v8486_v17 = vld [vmem:[#allocation19 + $0x588] ss:$28 sps:$4 sm:$0xff]  }
 0x65e   :  { %7719 = vmatpush3.bf16.msra.mxu0 %v8425_v18  ;;  %6571 = vmatprep.subr.bf16.mxu1 %v8428_v19  ;;  %v8490_v18 = vld [vmem:[#allocation19 + $0xad0] ss:$28 sps:$4 sm:$0xff]   ;;  %v8493_v19 = vld [vmem:[#allocation19 + $0x5c4] ss:$28 sps:$4 sm:$0xff]  }
 0x65f   :  { %7720 = vmatprep.subr.bf16.mxu0 %v8429_v21  ;;  %v8494_v21 = vld [vmem:[#allocation19 + $0xcc8] ss:$28 sps:$4 sm:$0xff]  }
 0x661   :  { %6572 = vmatpush1.bf16.msra.mxu1 %v8426_v22  ;;  %v8491_v22 = vld [vmem:[#allocation19 + $0x5c0] ss:$28 sps:$4 sm:$0xff]  }
 0x662   :  { %7721 = vmatpush3.bf16.msra.mxu0 %v8430_v23  ;;  %6573 = vmatprep.subr.bf16.mxu1 %v8433_v26  ;;  %v8495_v23 = vld [vmem:[#allocation19 + $0xb08] ss:$28 sps:$4 sm:$0xff]   ;;  %v8498_v26 = vld [vmem:[#allocation19 + $0x5fc] ss:$28 sps:$4 sm:$0xff]  }
 0x663   :  { %7722 = vmatprep.subr.bf16.mxu0 %v8434_v8  ;;  %v8499_v8 = vld [vmem:[#allocation19 + $0xd00] ss:$28 sps:$4 sm:$0xff]  }
 0x665   :  { %6574 = vmatpush1.bf16.msra.mxu1 %v8431_v52  ;;  %v8496_v52 = vld [vmem:[#allocation19 + $0x5f8] ss:$28 sps:$4 sm:$0xff]  }
 0x666   :  { %7723 = vmatpush3.bf16.msra.mxu0 %v8435_v29  ;;  %6575 = vmatprep.subr.bf16.mxu1 %v8438_v3  ;;  %v8500_v29 = vld [vmem:[#allocation19 + $0xb40] ss:$28 sps:$4 sm:$0xff]   ;;  %v8503_v3 = vld [vmem:[#allocation19 + $0x634] ss:$28 sps:$4 sm:$0xff]  }
 0x667   :  { %7724 = vmatprep.subr.bf16.mxu0 %v8439_v1  ;;  %v8504_v1 = vld [vmem:[#allocation19 + $0xd38] ss:$28 sps:$4 sm:$0xff]  }
 0x669   :  { %6576 = vmatpush1.bf16.msra.mxu1 %v8436_v4  ;;  %v8501_v4 = vld [vmem:[#allocation19 + $0x630] ss:$28 sps:$4 sm:$0xff]  }
 0x66a   :  { %7725 = vmatpush3.bf16.msra.mxu0 %v8440_v54  ;;  %6586 = vmatprep.subr.bf16.mxu1 %v8443_v37  ;;  %v8505_v54 = vld [vmem:[#allocation19 + $0xb78] ss:$28 sps:$4 sm:$0xff]   ;;  %v8508_v37 = vld [vmem:[#allocation19 + $0x66c] ss:$28 sps:$4 sm:$0xff]  }
 0x66b   :  { %7732 = vmatprep.subr.bf16.mxu0 %v8444_v36  ;;  %v8509_v36 = vld [vmem:[#allocation19 + $0xd70] ss:$28 sps:$4 sm:$0xff]  }
 0x66c   :  { %6578 = vmatmul.mubr.bf16.vlgmr.msra.gmra.mrb[12].mxu1 %v9450_v14  ;;  %v8455_v14 = vld [vmem:[#allocation19 + $0x788] ss:$28 sps:$4 sm:$0xff]  }
 0x66d   :  { %6782 = vmatmul.mubr.bf16.vlgmr.msra.gmra.mrb[28].mxu0 %v9464_v41  ;;  %6587 = vmatpush1.bf16.msra.mxu1 %v8441_v33  ;;  %v8506_v33 = vld [vmem:[#allocation19 + $0x668] ss:$28 sps:$4 sm:$0xff]  }
 0x66e   :  { %6618 = vmatprep.mubr.bf16.mxu1 %v9456_v16  ;;  %7733 = vmatpush3.bf16.msra.mxu0 %v8445_v59  ;;  %v8460_v16 = vld [vmem:[#allocation19 + $0x7c0] ss:$28 sps:$4 sm:$0xff]   ;;  %v8510_v59 = vld [vmem:[#allocation19 + $0xbb0] ss:$28 sps:$4 sm:$0xff]  }
 0x66f   :  { %6821 = vmatprep.mubr.bf16.mxu0 %v9466_v28  ;;  %6588 = vmatprep.subr.bf16.mxu1 %v8448_v9  ;;  %v8513_v9 = vld [vmem:[#allocation19 + $0x6a4] ss:$28 sps:$4 sm:$0xff]  }
 0x670   :  { %7734 = vmatprep.subr.bf16.mxu0 %v8449_v34  ;;  %v8514_v34 = vld [vmem:[#allocation19 + $0xda8] ss:$28 sps:$4 sm:$0xff]  }
 0x671   :  { %6589 = vmatpush1.bf16.msra.mxu1 %v8446_v53  ;;  %v8511_v53 = vld [vmem:[#allocation19 + $0x6a0] ss:$28 sps:$4 sm:$0xff]  }
 0x672   :  { %7735 = vmatpush3.bf16.msra.mxu0 %v8450_v55  ;;  %6590 = vmatprep.subr.bf16.mxu1 %v8453_v62  ;;  %v8515_v55 = vld [vmem:[#allocation19 + $0xbe8] ss:$28 sps:$4 sm:$0xff]   ;;  %v8518_v62 = vld [vmem:[#allocation19 + $0x6dc] ss:$28 sps:$4 sm:$0xff]  }
 0x673   :  { %7736 = vmatprep.subr.bf16.mxu0 %v8454_v10  ;;  %v8519_v10 = vld [vmem:[#allocation19 + $0xde0] ss:$28 sps:$4 sm:$0xff]  }
 0x675   :  { %6591 = vmatpush1.bf16.msra.mxu1 %v8451_v61  ;;  %v8516_v61 = vld [vmem:[#allocation19 + $0x6d8] ss:$28 sps:$4 sm:$0xff]  }
 0x676   :  { %7737 = vmatpush3.bf16.msra.mxu0 %v8455_v14  ;;  %6592 = vmatprep.subr.bf16.mxu1 %v8458_v27  ;;  %v8520_v14 = vld [vmem:[#allocation19 + $0xc20] ss:$28 sps:$4 sm:$0xff]   ;;  %v8523_v27 = vld [vmem:[#allocation19 + $0x714] ss:$28 sps:$4 sm:$0xff]  }
 0x677   :  { %7738 = vmatprep.subr.bf16.mxu0 %v8459_v40  ;;  %v8521_v40 = vld [vmem:[#allocation19 + $0x710] ss:$28 sps:$4 sm:$0xff]  }
 0x679   :  { %6593 = vmatpush1.bf16.msra.mxu1 %v8456_v42  ;;  %v8526_v42 = vld [vmem:[#allocation19 + $0x74c] ss:$28 sps:$4 sm:$0xff]  }
 0x67a   :  { %7739 = vmatpush3.bf16.msra.mxu0 %v8460_v16  ;;  %6594 = vmatprep.subr.bf16.mxu1 %v8463_v56  ;;  %v8524_v16 = vld [vmem:[#allocation19 + $0x748] ss:$28 sps:$4 sm:$0xff]  }
 0x67b   :  { %7740 = vmatprep.subr.bf16.mxu0 %v8464_v48  ;;  %v8529_v56 = vld [vmem:[#allocation19 + $0x784] ss:$28 sps:$4 sm:$0xff]  }
 0x67c   :  { %v8527_v48 = vld [vmem:[#allocation19 + $0x780] ss:$28 sps:$4 sm:$0xff]  }
 0x67d   :  { %6595 = vmatpush1.bf16.msra.mxu1 %v8461_v31  ;;  %v8532_v31 = vld [vmem:[#allocation19 + $0x7bc] ss:$28 sps:$4 sm:$0xff]  }
 0x67e   :  { %7741 = vmatpush3.bf16.msra.mxu0 %v8465_v43  ;;  %6596 = vmatprep.subr.bf16.mxu1 %v8468_v44  ;;  %v8530_v43 = vld [vmem:[#allocation19 + $0x7b8] ss:$28 sps:$4 sm:$0xff]  }
 0x67f   :  { %7742 = vmatprep.subr.bf16.mxu0 %v8469_v57  ;;  %v8535_v44 = vld [vmem:[#allocation19 + $0x7f4] ss:$28 sps:$4 sm:$0xff]  }
 0x680   :  { %v8533_v57 = vld [vmem:[#allocation19 + $0x7f0] ss:$28 sps:$4 sm:$0xff]  }
 0x681   :  { %6597 = vmatpush1.bf16.msra.mxu1 %v8466_v60  ;;  %v8536_v60 = vld [vmem:[#allocation19 + $0x828] ss:$28 sps:$4 sm:$0xff]  }
 0x682   :  { %7743 = vmatpush3.bf16.msra.mxu0 %v8470_v45  ;;  %6598 = vmatprep.subr.bf16.mxu1 %v8473_v32  ;;  %v8541_v45 = vld [vmem:[#allocation19 + $0x864] ss:$28 sps:$4 sm:$0xff]   ;;  %v8544_v32 = vld [vmem:[#allocation19 + $0x89c] ss:$28 sps:$4 sm:$0xff]  }
 0x683   :  { %7744 = vmatprep.subr.bf16.mxu0 %v8474_v50  ;;  %v8542_v50 = vld [vmem:[#allocation19 + $0x898] ss:$28 sps:$4 sm:$0xff]  }
 0x685   :  { %6599 = vmatpush1.bf16.msra.mxu1 %v8471_v5  ;;  %v8547_v5 = vld [vmem:[#allocation19 + $0x8d4] ss:$28 sps:$4 sm:$0xff]  }
 0x686   :  { %7745 = vmatpush3.bf16.msra.mxu0 %v8475_v12  ;;  %6600 = vmatprep.subr.bf16.mxu1 %v8478_v47  ;;  %v8545_v12 = vld [vmem:[#allocation19 + $0x8d0] ss:$28 sps:$4 sm:$0xff]  }
 0x687   :  { %7746 = vmatprep.subr.bf16.mxu0 %v8479_v35  ;;  %v8550_v47 = vld [vmem:[#allocation19 + $0x90c] ss:$28 sps:$4 sm:$0xff]  }
 0x688   :  { %v8548_v35 = vld [vmem:[#allocation19 + $0x908] ss:$28 sps:$4 sm:$0xff]  }
 0x689   :  { %6601 = vmatpush1.bf16.msra.mxu1 %v8476_v6  ;;  %v8553_v6 = vld [vmem:[#allocation19 + $0x944] ss:$28 sps:$4 sm:$0xff]  }
 0x68a   :  { %7747 = vmatpush3.bf16.msra.mxu0 %v8480_v63  ;;  %6602 = vmatprep.subr.bf16.mxu1 %v8483_v0  ;;  %v8551_v63 = vld [vmem:[#allocation19 + $0x940] ss:$28 sps:$4 sm:$0xff]  }
 0x68b   :  { %7754 = vmatprep.subr.bf16.mxu0 %v8484_v7  ;;  %v8556_v0 = vld [vmem:[#allocation19 + $0x97c] ss:$28 sps:$4 sm:$0xff]  }
 0x68c   :  { %v8554_v7 = vld [vmem:[#allocation19 + $0x978] ss:$28 sps:$4 sm:$0xff]  }
 0x68d   :  { %6822 = vmatmul.mubr.bf16.vlgmr.msra.gmra.mrb[32].mxu0 %v9476_v46  ;;  %6603 = vmatpush1.bf16.msra.mxu1 %v8481_v11  ;;  %v8559_v11 = vld [vmem:[#allocation19 + $0x9b4] ss:$28 sps:$4 sm:$0xff]  }
 0x68e   :  { %7755 = vmatpush3.bf16.msra.mxu0 %v8485_v13  ;;  %6861 = vmatprep.mubr.bf16.mxu0 %v9479_v51  ;;  %v8557_v13 = vld [vmem:[#allocation19 + $0x9b0] ss:$28 sps:$4 sm:$0xff]  }
 0x68f   :  { %6604 = vmatprep.subr.bf16.mxu1 %v8488_v15  ;;  %7756 = vmatprep.subr.bf16.mxu0 %v8489_v30  ;;  %v8562_v15 = vld [vmem:[#allocation19 + $0x9ec] ss:$28 sps:$4 sm:$0xff]  }
 0x690   :  { %v8560_v30 = vld [vmem:[#allocation19 + $0x9e8] ss:$28 sps:$4 sm:$0xff]  }
 0x691   :  { %6605 = vmatpush1.bf16.msra.mxu1 %v8486_v17  ;;  %v8565_v17 = vld [vmem:[#allocation19 + $0xa24] ss:$28 sps:$4 sm:$0xff]  }
 0x692   :  { %7757 = vmatpush3.bf16.msra.mxu0 %v8490_v18  ;;  %6606 = vmatprep.subr.bf16.mxu1 %v8493_v19  ;;  %v8563_v18 = vld [vmem:[#allocation19 + $0xa20] ss:$28 sps:$4 sm:$0xff]  }
 0x693   :  { %7758 = vmatprep.subr.bf16.mxu0 %v8494_v21  ;;  %v8568_v19 = vld [vmem:[#allocation19 + $0xa5c] ss:$28 sps:$4 sm:$0xff]  }
 0x694   :  { %v8566_v21 = vld [vmem:[#allocation19 + $0xa58] ss:$28 sps:$4 sm:$0xff]  }
 0x695   :  { %6607 = vmatpush1.bf16.msra.mxu1 %v8491_v22  ;;  %v8571_v22 = vld [vmem:[#allocation19 + $0xa94] ss:$28 sps:$4 sm:$0xff]  }
 0x696   :  { %7759 = vmatpush3.bf16.msra.mxu0 %v8495_v23  ;;  %6608 = vmatprep.subr.bf16.mxu1 %v8498_v26  ;;  %v8569_v23 = vld [vmem:[#allocation19 + $0xa90] ss:$28 sps:$4 sm:$0xff]  }
 0x697   :  { %7760 = vmatprep.subr.bf16.mxu0 %v8499_v8  ;;  %v8574_v26 = vld [vmem:[#allocation19 + $0xacc] ss:$28 sps:$4 sm:$0xff]  }
 0x698   :  { %v8572_v8 = vld [vmem:[#allocation19 + $0xac8] ss:$28 sps:$4 sm:$0xff]  }
 0x699   :  { %6609 = vmatpush1.bf16.msra.mxu1 %v8496_v52  ;;  %v8577_v52 = vld [vmem:[#allocation19 + $0xb04] ss:$28 sps:$4 sm:$0xff]  }
 0x69a   :  { %7761 = vmatpush3.bf16.msra.mxu0 %v8500_v29  ;;  %6610 = vmatprep.subr.bf16.mxu1 %v8503_v3  ;;  %v8575_v29 = vld [vmem:[#allocation19 + $0xb00] ss:$28 sps:$4 sm:$0xff]  }
 0x69b   :  { %7762 = vmatprep.subr.bf16.mxu0 %v8504_v1  ;;  %v8580_v3 = vld [vmem:[#allocation19 + $0xb3c] ss:$28 sps:$4 sm:$0xff]  }
 0x69c   :  { %v8578_v1 = vld [vmem:[#allocation19 + $0xb38] ss:$28 sps:$4 sm:$0xff]  }
 0x69d   :  { %6611 = vmatpush1.bf16.msra.mxu1 %v8501_v4  ;;  %v8583_v4 = vld [vmem:[#allocation19 + $0xb74] ss:$28 sps:$4 sm:$0xff]  }
 0x69e   :  { %7763 = vmatpush3.bf16.msra.mxu0 %v8505_v54  ;;  %6612 = vmatprep.subr.bf16.mxu1 %v8508_v37  ;;  %v8581_v54 = vld [vmem:[#allocation19 + $0xb70] ss:$28 sps:$4 sm:$0xff]   ;;  %v9505_v37 = vld [vmem:[#allocation20] sm:$0xff] }
 0x69f   :  { %7764 = vmatprep.subr.bf16.mxu0 %v8509_v36  ;;  %v3889_v36 = vrot.slane %v9505_v37, %v9259_v24 }
 0x6a1   :  { %6613 = vmatpush1.bf16.msra.mxu1 %v8506_v33  ;;  %v3885_v33 = vrot.slane %v9505_v37, %v9211_v39 }
 0x6a2   :  { %7765 = vmatpush3.bf16.msra.mxu0 %v8510_v59  ;;  %6614 = vmatprep.subr.bf16.mxu1 %v8513_v9  ;;  %v8584_v59 = vld [vmem:[#allocation19 + $0xba8] ss:$28 sps:$4 sm:$0xff]   ;;  %v3893_v9 = vrot.slane %v9505_v37, %v9262_v25 }
 0x6a3   :  { %7766 = vmatprep.subr.bf16.mxu0 %v8514_v34  ;;  %v8589_v34 = vld [vmem:[#allocation19 + $0xbe4] ss:$28 sps:$4 sm:$0xff]  }
 0x6a5   :  { %6615 = vmatpush1.bf16.msra.mxu1 %v8511_v53 }
 0x6a6   :  { %7767 = vmatpush3.bf16.msra.mxu0 %v8515_v55  ;;  %6616 = vmatprep.subr.bf16.mxu1 %v8518_v62 }
 0x6a7   :  { %7768 = vmatprep.subr.bf16.mxu0 %v8519_v10 }
 0x6a9   :  { %6617 = vmatpush1.bf16.msra.mxu1 %v8516_v61 }
 0x6aa   :  { %7769 = vmatpush3.bf16.msra.mxu0 %v8520_v14  ;;  %6627 = vmatprep.subr.bf16.mxu1 %v8523_v27 }
 0x6ac   :  { %6619 = vmatmul.mubr.bf16.vlgmr.msra.gmra.mrb[12].mxu1 %v9464_v41  ;;  %v8538_v41 = vld [vmem:[#allocation19 + $0x82c] ss:$28 sps:$4 sm:$0xff]  }
 0x6ad   :  { %6862 = vmatmul.mubr.bf16.vlgmr.msra.gmra.mrb[36].mxu0 %v9486_v20  ;;  %6628 = vmatpush1.bf16.msra.mxu1 %v8521_v40  ;;  %v8587_v40 = vld [vmem:[#allocation19 + $0xbe0] ss:$28 sps:$4 sm:$0xff]  }
 0x6ae   :  { %6659 = vmatprep.mubr.bf16.mxu1 %v9466_v28  ;;  %6629 = vmatprep.subr.bf16.mxu1 %v8526_v42  ;;  %v8539_v28 = vld [vmem:[#allocation19 + $0x860] ss:$28 sps:$4 sm:$0xff]  }
 0x6b1   :  { %6630 = vmatpush1.bf16.msra.mxu1 %v8524_v16  ;;  %v8592_v16 = vld [vmem:[#allocation19 + $0xc1c] ss:$28 sps:$4 sm:$0xff]  }
 0x6b2   :  { %6631 = vmatprep.subr.bf16.mxu1 %v8529_v56  ;;  %v8590_v56 = vld [vmem:[#allocation19 + $0xc18] ss:$28 sps:$4 sm:$0xff]  }
 0x6b5   :  { %6632 = vmatpush1.bf16.msra.mxu1 %v8527_v48  ;;  %v8595_v48 = vld [vmem:[#allocation19 + $0xc54] ss:$28 sps:$4 sm:$0xff]  }
 0x6b6   :  { %6633 = vmatprep.subr.bf16.mxu1 %v8532_v31  ;;  %v8593_v31 = vld [vmem:[#allocation19 + $0xc50] ss:$28 sps:$4 sm:$0xff]  }
 0x6b9   :  { %6634 = vmatpush1.bf16.msra.mxu1 %v8530_v43  ;;  %v8598_v43 = vld [vmem:[#allocation19 + $0xc8c] ss:$28 sps:$4 sm:$0xff]  }
 0x6ba   :  { %6635 = vmatprep.subr.bf16.mxu1 %v8535_v44 }
 0x6bd   :  { %6636 = vmatpush1.bf16.msra.mxu1 %v8533_v57 }
 0x6be   :  { %6637 = vmatprep.subr.bf16.mxu1 %v8538_v41  ;;  %v8596_v41 = vld [vmem:[#allocation19 + $0xc88] ss:$28 sps:$4 sm:$0xff]  }
 0x6c1   :  { %6638 = vmatpush1.bf16.msra.mxu1 %v8536_v60 }
 0x6c2   :  { %6639 = vmatprep.subr.bf16.mxu1 %v8541_v45  ;;  %v8601_v45 = vld [vmem:[#allocation19 + $0xcc4] ss:$28 sps:$4 sm:$0xff]  }
 0x6c5   :  { %6640 = vmatpush1.bf16.msra.mxu1 %v8539_v28 }
 0x6c6   :  { %6641 = vmatprep.subr.bf16.mxu1 %v8544_v32  ;;  %v8599_v32 = vld [vmem:[#allocation19 + $0xcc0] ss:$28 sps:$4 sm:$0xff]  }
 0x6c9   :  { %6642 = vmatpush1.bf16.msra.mxu1 %v8542_v50  ;;  %v8604_v50 = vld [vmem:[#allocation19 + $0xcfc] ss:$28 sps:$4 sm:$0xff]  }
 0x6ca   :  { %6643 = vmatprep.subr.bf16.mxu1 %v8547_v5  ;;  %v8602_v5 = vld [vmem:[#allocation19 + $0xcf8] ss:$28 sps:$4 sm:$0xff]  }
 0x6cd   :  { %6644 = vmatpush1.bf16.msra.mxu1 %v8545_v12  ;;  %v8607_v12 = vld [vmem:[#allocation19 + $0xd34] ss:$28 sps:$4 sm:$0xff]  }
 0x6ce   :  { %6645 = vmatprep.subr.bf16.mxu1 %v8550_v47  ;;  %v8605_v47 = vld [vmem:[#allocation19 + $0xd30] ss:$28 sps:$4 sm:$0xff]  }
 0x6d1   :  { %6646 = vmatpush1.bf16.msra.mxu1 %v8548_v35  ;;  %v8610_v35 = vld [vmem:[#allocation19 + $0xd6c] ss:$28 sps:$4 sm:$0xff]  }
 0x6d2   :  { %6647 = vmatprep.subr.bf16.mxu1 %v8553_v6  ;;  %v8608_v6 = vld [vmem:[#allocation19 + $0xd68] ss:$28 sps:$4 sm:$0xff]  }
 0x6d5   :  { %6648 = vmatpush1.bf16.msra.mxu1 %v8551_v63  ;;  %v8613_v63 = vld [vmem:[#allocation19 + $0xda4] ss:$28 sps:$4 sm:$0xff]  }
 0x6d6   :  { %6649 = vmatprep.subr.bf16.mxu1 %v8556_v0 }
 0x6d9   :  { %6650 = vmatpush1.bf16.msra.mxu1 %v8554_v7 }
 0x6da   :  { %6651 = vmatprep.subr.bf16.mxu1 %v8559_v11  ;;  %v8611_v11 = vld [vmem:[#allocation19 + $0xda0] ss:$28 sps:$4 sm:$0xff]  }
 0x6dd   :  { %6652 = vmatpush1.bf16.msra.mxu1 %v8557_v13 }
 0x6de   :  { %6653 = vmatprep.subr.bf16.mxu1 %v8562_v15 }
 0x6e1   :  { %6654 = vmatpush1.bf16.msra.mxu1 %v8560_v30  ;;  %v8616_v30 = vld [vmem:[#allocation19 + $0xddc] ss:$28 sps:$4 sm:$0xff]  }
 0x6e2   :  { %6655 = vmatprep.subr.bf16.mxu1 %v8565_v17 }
 0x6e5   :  { %6656 = vmatpush1.bf16.msra.mxu1 %v8563_v18  ;;  %v8614_v18 = vld [vmem:[#allocation19 + $0xdd8] ss:$28 sps:$4 sm:$0xff]  }
 0x6e6   :  { %6657 = vmatprep.subr.bf16.mxu1 %v8568_v19  ;;  %v3905_v19 = vrot.slane %v9505_v37, %v9399_v2 }
 0x6e9   :  { %6658 = vmatpush1.bf16.msra.mxu1 %v8566_v21 }
 0x6ea   :  { %6668 = vmatprep.subr.bf16.mxu1 %v8571_v22 }
 0x6ec   :  { %6660 = vmatmul.mubr.bf16.vlgmr.msra.gmra.mrb[12].mxu1 %v9476_v46  ;;  %v8586_v46 = vld [vmem:[#allocation19 + $0xbac] ss:$28 sps:$4 sm:$0xff]  }
 0x6ed   :  { %6669 = vmatpush1.bf16.msra.mxu1 %v8569_v23  ;;  %6700 = vmatprep.mubr.bf16.mxu1 %v9479_v51  ;;  %v3881_v51 = vrot.slane %v9505_v37, %v9208_v38 }
 0x6ee   :  { %6670 = vmatprep.subr.bf16.mxu1 %v8574_v26 }
 0x6f1   :  { %6671 = vmatpush1.bf16.msra.mxu1 %v8572_v8 }
 0x6f2   :  { %6672 = vmatprep.subr.bf16.mxu1 %v8577_v52 }
 0x6f5   :  { %6673 = vmatpush1.bf16.msra.mxu1 %v8575_v29 }
 0x6f6   :  { %6674 = vmatprep.subr.bf16.mxu1 %v8580_v3 }
 0x6f9   :  { %6675 = vmatpush1.bf16.msra.mxu1 %v8578_v1 }
 0x6fa   :  { %6676 = vmatprep.subr.bf16.mxu1 %v8583_v4 }
 0x6fd   :  { %6677 = vmatpush1.bf16.msra.mxu1 %v8581_v54 }
 0x6fe   :  { %6678 = vmatprep.subr.bf16.mxu1 %v8586_v46 }
 0x6ff   :  { %v6374_v53 = vpop.f32.mrb[8].mxu1 }
 0x700   :  { %v7776_v55 = vadd.f32 %v6374_v53, %v3881_v51  ;;  %v6538_v62 = vpop.f32.mrb[20].mxu0  ;;  %v6376_v10 = vpop.f32.mrb[9].mxu1  ;;  %v3897_v53 = vrot.slane %v9505_v37, %v9393_v49 }
 0x701   :  { %v7778_v61 = vadd.f32 %v6538_v62, %v3889_v36  ;;  %v7777_v14 = vadd.f32 %v6376_v10, %v3885_v33  ;;  %v6540_v38 = vpop.f32.mrb[21].mxu0  ;;  %v6378_v27 = vpop.f32.mrb[10].mxu1  ;;  %6679 = vmatpush1.bf16.msra.mxu1 %v8584_v59 }
 0x702   :  { %8645 = vtanh.f32 %v7776_v55  ;;  %v7779_v24 = vadd.f32 %v6540_v38, %v3893_v9  ;;  %v6542_v42 = vpop.f32.mrb[22].mxu0  ;;  %v6379_v39 = vpop.f32.mrb[11].mxu1  ;;  %6680 = vmatprep.subr.bf16.mxu1 %v8589_v34  ;;  %v3901_v55 = vrot.slane %v9505_v37, %v9396_v58 }
 0x703   :  { %8647 = vtanh.f32 %v7778_v61  ;;  %v6543_v25 = vpop.f32.mrb[23].mxu0 }
 0x704   :  { %8649 = vtanh.f32 %v7777_v14 }
 0x705   :  { %8651 = vtanh.f32 %v7779_v24  ;;  %6681 = vmatpush1.bf16.msra.mxu1 %v8587_v40 }
 0x706   :  { %6682 = vmatprep.subr.bf16.mxu1 %v8592_v16 }
 0x709   :  { %6683 = vmatpush1.bf16.msra.mxu1 %v8590_v56 }
 0x70a   :  { %6684 = vmatprep.subr.bf16.mxu1 %v8595_v48 }
 0x70c   :  { %v8646_v44 = vpop.eup %8645 }
 0x70d   :  { %v8648_v57 = vpop.eup %8647  ;;  %6876 = vst [vmem:[#allocation22] sm:$0xff] %v8646_v44  ;;  %6685 = vmatpush1.bf16.msra.mxu1 %v8593_v31 }
 0x70e   :  { %v8650_v60 = vpop.eup %8649  ;;  %6878 = vst [vmem:[#allocation22 + $0x10] sm:$0xff] %v8648_v57  ;;  %6686 = vmatprep.subr.bf16.mxu1 %v8598_v43 }
 0x70f   :  { %v8652_v28 = vpop.eup %8651  ;;  %6877 = vst [vmem:[#allocation22 + $0x8] sm:$0xff] %v8650_v60 }
 0x710   :  { %6879 = vst [vmem:[#allocation22 + $0x18] sm:$0xff] %v8652_v28 }
 0x711   :  { %6687 = vmatpush1.bf16.msra.mxu1 %v8596_v41 }
 0x712   :  { %6688 = vmatprep.subr.bf16.mxu1 %v8601_v45 }
 0x715   :  { %6689 = vmatpush1.bf16.msra.mxu1 %v8599_v32 }
 0x716   :  { %6690 = vmatprep.subr.bf16.mxu1 %v8604_v50 }
 0x719   :  { %6691 = vmatpush1.bf16.msra.mxu1 %v8602_v5 }
 0x71a   :  { %6692 = vmatprep.subr.bf16.mxu1 %v8607_v12 }
 0x71d   :  { %6693 = vmatpush1.bf16.msra.mxu1 %v8605_v47 }
 0x71e   :  { %6694 = vmatprep.subr.bf16.mxu1 %v8610_v35 }
 0x720   :  { %v7704_v0 = vpop.f32.mrb[24].mxu0 }
 0x721   :  { %v7705_v7 = vpop.f32.mrb[25].mxu0  ;;  %6695 = vmatpush1.bf16.msra.mxu1 %v8608_v6 }
 0x722   :  { %v7706_v13 = vadd.f32 %v7705_v7, %v7704_v0  ;;  %v7707_v15 = vpop.f32.mrb[26].mxu0  ;;  %6696 = vmatprep.subr.bf16.mxu1 %v8613_v63 }
 0x723   :  { %v7708_v17 = vpop.f32.mrb[27].mxu0 }
 0x724   :  { %v6744_v23 = vadd.f32 %v7706_v13, %v3905_v19 }
 0x725   :  { %6697 = vmatpush1.bf16.msra.mxu1 %v8611_v11 }
 0x726   :  { %6698 = vmatprep.subr.bf16.mxu1 %v8616_v30 }
 0x729   :  { %6699 = vmatpush1.bf16.msra.mxu1 %v8614_v18 }
 0x72c   :  { %6701 = vmatmul.mubr.bf16.vlgmr.msra.gmra.mrb[12].mxu1 %v9486_v20 }
 0x740   :  { %v7726_v21 = vpop.f32.mrb[28].mxu0 }
 0x741   :  { %v7727_v22 = vpop.f32.mrb[29].mxu0 }
 0x742   :  { %v7728_v26 = vadd.f32 %v7727_v22, %v7726_v21  ;;  %v7729_v8 = vpop.f32.mrb[30].mxu0 }
 0x743   :  { %v7730_v52 = vpop.f32.mrb[31].mxu0 }
 0x744   :  { %v6784_v29 = vadd.f32 %v7728_v26, %v6744_v23 }
 0x760   :  { %v7748_v3 = vpop.f32.mrb[32].mxu0 }
 0x761   :  { %v7749_v1 = vpop.f32.mrb[33].mxu0 }
 0x762   :  { %v7750_v4 = vadd.f32 %v7749_v1, %v7748_v3  ;;  %v7751_v54 = vpop.f32.mrb[34].mxu0 }
 0x763   :  { %v7752_v46 = vpop.f32.mrb[35].mxu0 }
 0x764   :  { %v6824_v51 = vadd.f32 %v7750_v4, %v6784_v29 }
 0x780   :  { %v7770_v36 = vpop.f32.mrb[36].mxu0 }
 0x781   :  { %v7771_v33 = vpop.f32.mrb[37].mxu0 }
 0x782   :  { %v7772_v59 = vadd.f32 %v7771_v33, %v7770_v36  ;;  %v7773_v20 = vpop.f32.mrb[38].mxu0 }
 0x783   :  { %v7774_v9 = vpop.f32.mrb[39].mxu0 }
 0x784   :  { %v6864_v34 = vadd.f32 %v7772_v59, %v6824_v51 }
 0x786   :  { %8653 = vtanh.f32 %v6864_v34 }
 0x790   :  { %v8654_v2 = vpop.eup %8653 }
 0x791   :  { %6882 = vst [vmem:[#allocation22 + $0x30] sm:$0xff] %v8654_v2 }
 0x7ff   :  { %v6702_v62 = vpop.f32.mrb[12].mxu1 }
 0x800   :  { %v7780_v10 = vadd.f32 %v6702_v62, %v3897_v53  ;;  %v6704_v61 = vpop.f32.mrb[13].mxu1 }
 0x801   :  { %v7781_v14 = vadd.f32 %v6704_v61, %v3901_v55  ;;  %v6706_v38 = vpop.f32.mrb[14].mxu1 }
 0x802   :  { %8655 = vtanh.f32 %v7780_v10  ;;  %v6707_v27 = vpop.f32.mrb[15].mxu1 }
 0x803   :  { %8657 = vtanh.f32 %v7781_v14 }
 0x80c   :  { %v8656_v40 = vpop.eup %8655 }
 0x80d   :  { %v8658_v24 = vpop.eup %8657  ;;  %6880 = vst [vmem:[#allocation22 + $0x20] sm:$0xff] %v8656_v40 }
 0x80e   :  { %6881 = vst [vmem:[#allocation22 + $0x28] sm:$0xff] %v8658_v24 }
 0x80f   :  { %8934 = shalt.err (!%p8931_p2)
}
 0x810   :  { %s8935_s16 = scalar_lea.hbm %s9546_s12, 896 }
 0x811   :  { %p8936_p3 = scmp.ne.s32.totalorder %s9546_s12, %s8935_s16  ;;  %p8939_p4 = scmp.lt.u32.totalorder %s8935_s16, %s9546_s12 }
 0x813   :  { %p8941_p5 = pnand %p8939_p4, %p8936_p3 }
 0x815   :  { %8944 = shalt.err (!%p8941_p5)
}
 0x816   :  { %6892 = dma.vmem_to_hbm [thread:$0]  %s6890_s6, 896, %s9546_s12, [#allocation4]  }
 0x817   :  { %8959 = dma.done.wait [#allocation4], 896  }
 0x818   :  { %8960 = vsyncadd [#allocation4], 4294966400 }
 0x819   :  { %6896 = vsyncpa [#allocation3], 1 }
 0x81a   :  { %6897 = vsyncpa [#allocation6], 1 }
 0x81b   :  { %6898 = vsyncpa [#allocation9], 1 }
 0x81c   :  { %6899 = vsyncpa [#allocation12], 1 }
 0x81d   :  { %6900 = vsyncpa [#allocation15], 1 }
 0x81e   :  { %6901 = vsyncpa [#allocation18], 1 }
 0x81f   :  { %6902 = vsyncpa [#allocation21], 1 }
 0x820   :  { %6903 = vsyncpa [#allocation4], 1 }

</bundles_post_ra>
